<compile_context>
chip_gen: v6e
topology: v6e:2x2x1
jax: 0.10.0
libtpu: 0.0.40
codegen_flags: <defaults>
</compile_context>

<pallas_src>
import jax
import jax.numpy as jnp
from jax import lax
from jax.experimental import pallas as pl
from jax.experimental.pallas import tpu as pltpu


def _round_up(x, m):
    return (x + m - 1) // m * m


def _chip_info():
    """(num TensorCores per device, vmem_limit_bytes) for the local TPU generation."""
    try:
        kind = jax.devices()[0].device_kind.lower()
    except Exception:
        return 1, 32 * 1024 * 1024
    if "v2" in kind or "v3" in kind:
        return 1, 12 * 1024 * 1024
    if "v7" in kind or "7x" in kind:                # v7x: 2 TCs, 64 MiB VMEM/TC -> headroom
        return 2, 48 * 1024 * 1024
    if "lite" in kind or "v5e" in kind or "v6e" in kind:   # single TC, 128 MiB VMEM
        return 1, 96 * 1024 * 1024
    if "v4" in kind or "v5" in kind or "v6" in kind:       # v4 / v5p megacore
        return 2, 96 * 1024 * 1024
    return 1, 32 * 1024 * 1024


_UNROLL_T = 16       # fully unroll the wavefront when the time chunk is <= this
_STEADY_UNROLL = 4   # partial unroll of the steady-state fori_loop


def make_rnn_kernel(nlayers, TC, B_blk):
    """Kernel for one (batch-block, time-chunk) grid cell."""
    L = nlayers
    f32, bf16 = jnp.float32, jnp.bfloat16

    def kernel(*refs):
        x_ref, h0_ref = refs[0], refs[1]                 # bf16 (TC*B_blk, IN_p), f32 (L, B_blk, H_pad)
        w_ih_refs = refs[2:2 + L]                        # bf16 (in_p, H_pad) per layer
        w_hh_refs = refs[2 + L:2 + 2 * L]                # bf16 (H_pad, H_pad) per layer
        wc_ref = refs[2 + 2 * L]                         # bf16 (H_pad, C_pad)
        bc_ref = refs[3 + 2 * L]                         # f32  (1, C_pad)
        logits_ref = refs[4 + 2 * L]                     # bf16 (TC*B_blk, C_pad)
        hN_ref = refs[5 + 2 * L]                         # f32  (L, B_blk, H_pad)
        xproj_scr = refs[6 + 2 * L]                      # VMEM f32 (TC*B_blk, H_pad)
        seq_scr = refs[7 + 2 * L]                        # VMEM f32 (TC*B_blk, H_pad)
        hcar_scr = refs[8 + 2 * L]                       # VMEM f32 (L, B_blk, H_pad)

        c = pl.program_id(1)

        # First time chunk of this batch block: load the initial hidden state.
        @pl.when(c == 0)
        def _():
            hcar_scr[...] = h0_ref[...]

        # Layer-0 input projection hoisted out of the recurrence: one big MXU
        # matmul (bf16 operands, f32 accumulation) for the whole time chunk.
        xproj_scr[...] = jnp.dot(x_ref[...], w_ih_refs[0][...],
                                 preferred_element_type=f32)

        def _row(t):
            r = t * B_blk
            return r if isinstance(t, int) else pl.multiple_of(r, B_blk)

        def cell(l, t, h_prev, below_out):
            # Weights are read from their VMEM refs at the point of use: vld
            # slots are idle on this latency-bound chain, and holding W in
            # vregs across the whole loop would spill for large H_pad.
            if l == 0:
                pre = xproj_scr[pl.ds(_row(t), B_blk), :]
            else:
                pre = jnp.dot(below_out, w_ih_refs[l][...],
                              preferred_element_type=f32)
            return jnp.tanh(
                pre + jnp.dot(h_prev.astype(bf16), w_hh_refs[l][...],
                              preferred_element_type=f32))

        def wave_step(s, hs, prevs, lo, hi):
            """One wavefront step: layer l advances to time t = s - l for
            l in [lo, hi). The per-layer chains within a step only read the
            previous step's values, so they are mutually independent and
            pipeline through the MXU / VPU / EUP."""
            hs = list(hs)
            new_prevs = list(prevs)
            for l in range(lo, hi):
                t = s - l
                h_new = cell(l, t, hs[l], prevs[l - 1] if l > 0 else None)
                hs[l] = h_new
                if l == L - 1:
                    seq_scr[pl.ds(_row(t), B_blk), :] = h_new   # feeds classifier
                else:
                    new_prevs[l] = h_new.astype(bf16)
            return hs, new_prevs

        hs = [hcar_scr[l] for l in range(L)]
        prevs = [None] * L
        total = TC + L - 1

        if TC <= _UNROLL_T or TC < L:
            # Small chunk: fully unrolled wavefront (static slices).
            for s in range(total):
                hs, prevs = wave_step(s, hs, prevs,
                                      max(0, s - TC + 1), min(L, s + 1))
        else:
            # Prologue: layers ramp in.
            for s in range(L - 1):
                hs, prevs = wave_step(s, hs, prevs, 0, s + 1)

            # Steady state: all L layers active; a partially-unrolled fori_loop
            # bounds code size and vreg live ranges at large TC.
            def body(s, carry):
                hs_c = list(carry[0])
                prevs_c = list(carry[1]) + [None]
                hs_n, prevs_n = wave_step(s, hs_c, prevs_c, 0, L)
                return tuple(hs_n), tuple(prevs_n[:L - 1])

            hs_t, prevs_t = lax.fori_loop(
                L - 1, TC, body, (tuple(hs), tuple(prevs[:L - 1])),
                unroll=_STEADY_UNROLL)
            hs, prevs = list(hs_t), list(prevs_t) + [None]

            # Epilogue: layers drain out.
            for s in range(TC, total):
                hs, prevs = wave_step(s, hs, prevs, s - TC + 1, L)

        # Persist the hidden carry for the next time chunk.
        for l in range(L):
            hcar_scr[l] = hs[l]

        # Classifier over the whole chunk (bf16 operands, f32 accumulation);
        # lane-dense C_pad output emitted as bf16 to halve HBM writeback.
        logits_ref[...] = (
            jnp.dot(seq_scr[...].astype(bf16), wc_ref[...],
                    preferred_element_type=f32)
            + bc_ref[...]).astype(logits_ref.dtype)

        # Last time chunk of this batch block: emit the final hidden state.
        @pl.when(c == pl.num_programs(1) - 1)
        def _():
            hN_ref[...] = hcar_scr[...]

    return kernel


def _choose_time_chunk(T, B_blk, IN_budget, H_pad, C_pad, L, vmem_limit):
    """Largest divisor of T whose per-grid-cell VMEM working set fits the budget."""
    bf2, f4 = 2, 4
    # Weights (budgeted x2 in case the fallback layout double-buffers them) + bias.
    w_bytes = (IN_budget * H_pad + (2 * L - 1) * H_pad * H_pad
               + H_pad * C_pad) * bf2 + C_pad * f4
    fixed = 2 * w_bytes
    fixed += 5 * L * B_blk * H_pad * f4          # hidden carry + h0 / hN blocks
    fixed += 2 * 1024 * 1024                     # compiler-internal slack
    # Per-unit-of-TC bytes: double-buffered x / logits blocks (bf16) and the
    # two f32 scratch slabs (layer-0 projection, top-layer outputs).
    per_tc = B_blk * (2 * IN_budget * bf2 + 2 * C_pad * bf2 + 2 * H_pad * f4)
    cap = max(1, (int(vmem_limit * 0.8) - fixed) // per_tc)
    best = 1
    for d in range(1, T + 1):
        if T % d == 0 and d <= cap:
            best = d
    return best


def rnn_model_forward(x, h0, w_ihs, w_hhs, w_cls, b_cls,
                      *, time_chunk=None, batch_block=None):
    """Pallas forward of RNNModel (RNN_TANH, bias=False, eval-mode dropout).

    w_ihs / w_hhs are per-layer weights pre-transposed to (in, out); w_cls is
    (nhid, 2); b_cls is (2,). Returns (logits (T*B, 2), hidden (L, B, nhid)).
    """
    f32, bf16 = jnp.float32, jnp.bfloat16
    T, B, ninp = x.shape
    L, _, H = h0.shape
    C = w_cls.shape[1]

    num_tc, vmem_limit = _chip_info()

    # ----- padded / blocked layout parameters --------------------------------
    B_pad = _round_up(B, 8)
    if batch_block is None:
        # Split the batch only when the chip actually has >=2 TensorCores
        # (v4/v5p/v7x megacore); on single-TC v5e/v6e a split just serializes
        # the latency-bound recurrence twice.
        batch_block = B_pad // 2 if (num_tc >= 2 and B_pad % 16 == 0) else B_pad
    B_blk = batch_block
    if B_blk % 8 != 0 or B_pad % B_blk != 0:
        raise ValueError(f"batch_block={B_blk} must be a multiple of 8 dividing {B_pad}")
    nb = B_pad // B_blk

    H_pad = _round_up(H, 128)
    C_pad = _round_up(C, 128)

    if time_chunk is None:
        time_chunk = _choose_time_chunk(T, B_blk, _round_up(ninp, 128),
                                        H_pad, C_pad, L, vmem_limit)
    TC = time_chunk
    if TC < 1 or T % TC != 0:
        raise ValueError(f"time_chunk={TC} must divide T={T}")
    nc = T // TC

    # ----- wrapper-side padding (pure JAX; layout plumbing only) -------------
    # h0: (L, B, H) -> (nb, L, B_blk, H_pad) f32.
    h0_p = jnp.zeros((L, B_pad, H_pad), f32).at[:, :B, :H].set(h0.astype(f32))
    h0_p = h0_p.reshape(L, nb, B_blk, H_pad).transpose(1, 0, 2, 3)

    # Weights, zero-padded and cast to bf16 (padded rows/cols contribute exact
    # zeros; f32 accumulation happens in the kernel).
    w_ih_rest = [jnp.zeros((H_pad, H_pad), bf16).at[:H, :H].set(w_ihs[l].astype(bf16))
                 for l in range(1, L)]
    w_hh_p = [jnp.zeros((H_pad, H_pad), bf16).at[:H, :H].set(w_hhs[l].astype(bf16))
              for l in range(L)]
    w_cls_p = jnp.zeros((H_pad, C_pad), bf16).at[:H, :C].set(w_cls.astype(bf16))
    b_cls_p = jnp.zeros((1, C_pad), f32).at[0, :C].set(b_cls.astype(f32))

    h0_spec = pl.BlockSpec((None, L, B_blk, H_pad), lambda b, c: (b, 0, 0, 0))
    out_shapes = (
        jax.ShapeDtypeStruct((nb, T * B_blk, C_pad), bf16),   # padded logits
        jax.ShapeDtypeStruct((nb, L, B_blk, H_pad), f32),     # padded final hidden
    )
    out_specs = (
        pl.BlockSpec((None, TC * B_blk, C_pad), lambda b, c: (b, c, 0)),
        pl.BlockSpec((None, L, B_blk, H_pad), lambda b, c: (b, 0, 0, 0)),
    )

    kernel = make_rnn_kernel(L, TC, B_blk)

    def run(in_p, resident):
        # x: (T, B, ninp) -> (nb, T*B_blk, in_p) bf16, row index = t*B_blk + j.
        x_p = jnp.zeros((T, B_pad, in_p), bf16).at[:, :B, :ninp].set(x.astype(bf16))
        x_p = (x_p.reshape(T, nb, B_blk, in_p)
                  .transpose(1, 0, 2, 3)
                  .reshape(nb, T * B_blk, in_p))
        w_ih0 = jnp.zeros((in_p, H_pad), bf16).at[:ninp, :H].set(w_ihs[0].astype(bf16))
        args = [x_p, h0_p, w_ih0, *w_ih_rest, *w_hh_p, w_cls_p, b_cls_p]

        x_spec = pl.BlockSpec((None, TC * B_blk, in_p), lambda b, c: (b, c, 0))
        if resident:
            # Whole-array VMEM residents: single copy, no dead second buffer.
            w_specs = [pl.BlockSpec(memory_space=pltpu.MemorySpace.VMEM)
                       for _ in range(2 * L + 2)]
        else:
            w_shapes = ([w_ih0.shape] + [w.shape for w in w_ih_rest]
                        + [w.shape for w in w_hh_p]
                        + [w_cls_p.shape, b_cls_p.shape])
            w_specs = [pl.BlockSpec(s, lambda b, c: (0, 0)) for s in w_shapes]

        return pl.pallas_call(
            kernel,
            out_shape=out_shapes,
            grid=(nb, nc),
            in_specs=[x_spec, h0_spec, *w_specs],
            out_specs=out_specs,
            scratch_shapes=[
                pltpu.VMEM((TC * B_blk, H_pad), f32),   # hoisted layer-0 projection
                pltpu.VMEM((TC * B_blk, H_pad), f32),   # top-layer output slab
                pltpu.VMEM((L, B_blk, H_pad), f32),     # hidden-state carry
            ],
            compiler_params=pltpu.CompilerParams(
                dimension_semantics=("parallel", "arbitrary"),
                vmem_limit_bytes=vmem_limit),
        )(*args)

    try:
        # Optimized layout: lane-light bf16 x, single-copy VMEM-resident weights.
        logits_p, hN_p = run(_round_up(ninp, 16), resident=True)
    except Exception:
        # Conservative fallback: 128-lane-padded x and classic full-block
        # (pipeline double-buffered) weight specs.
        logits_p, hN_p = run(_round_up(ninp, 128), resident=False)

    # ----- undo padding / batch blocking --------------------------------------
    logits_full = (logits_p.reshape(nb, T, B_blk, C_pad)
                           .transpose(1, 0, 2, 3)
                           .reshape(T, B_pad, C_pad))
    logits = logits_full[:, :B, :C].reshape(T * B, C).astype(x.dtype)

    hN_full = hN_p.transpose(1, 0, 2, 3).reshape(L, B_pad, H_pad)
    hidden = hN_full[:, :B, :H].astype(h0.dtype)
    return logits, hidden


def rnn_model_reference(x, h0, w_ihs, w_hhs, w_cls, b_cls,
                        matmul_dtype=jnp.float32):
    """Pure-JAX reference. matmul_dtype=bfloat16 mimics the kernel's bf16
    operands with f32 accumulation; float32 is the exact module semantics."""
    md = matmul_dtype
    f32 = jnp.float32
    hi = lax.Precision.HIGHEST
    T, B, _ = x.shape
    L, _, H = h0.shape
    seq = x
    h_finals = []
    for l in range(L):
        h = h0[l]
        w_ih = w_ihs[l].astype(md)
        w_hh = w_hhs[l].astype(md)
        outs = []
        for t in range(T):
            pre = (jnp.dot(seq[t].astype(md), w_ih,
                           preferred_element_type=f32, precision=hi)
                   + jnp.dot(h.astype(md), w_hh,
                             preferred_element_type=f32, precision=hi))
            h = jnp.tanh(pre)
            outs.append(h)
        seq = jnp.stack(outs)
        h_finals.append(h)
    logits = (jnp.dot(seq.reshape(T * B, H).astype(md), w_cls.astype(md),
                      preferred_element_type=f32, precision=hi) + b_cls)
    return logits, jnp.stack(h_finals)


def _run_case(name, key, *, T, B, ninp, nhid, nlayers, tol_bf, tol_f32, **fwd_kw):
    keys = jax.random.split(key, 2 * nlayers + 3)
    bound = 1.0 / (nhid ** 0.5)          # PyTorch nn.RNN default init range
    w_ihs, w_hhs = [], []
    for l in range(nlayers):
        in_dim = ninp if l == 0 else nhid
        w_ihs.append(jax.random.uniform(keys[2 * l], (in_dim, nhid),
                                        jnp.float32, -bound, bound))
        w_hhs.append(jax.random.uniform(keys[2 * l + 1], (nhid, nhid),
                                        jnp.float32, -bound, bound))
    w_cls = jax.random.uniform(keys[2 * nlayers], (nhid, 2),
                               jnp.float32, -bound, bound)
    b_cls = jax.random.uniform(keys[2 * nlayers + 1], (2,),
                               jnp.float32, -bound, bound)
    x = jax.random.normal(keys[2 * nlayers + 2], (T, B, ninp), jnp.float32)
    h0 = jnp.zeros((nlayers, B, nhid), jnp.float32)     # init_hidden()

    logits, hidden = rnn_model_forward(x, h0, w_ihs, w_hhs, w_cls, b_cls, **fwd_kw)
    jax.block_until_ready((logits, hidden))

    assert logits.shape == (T * B, 2) and hidden.shape == (nlayers, B, nhid)

    # Reference using the same bf16-operand / f32-accumulation matmuls (tight).
    ref_l, ref_h = rnn_model_reference(x, h0, w_ihs, w_hhs, w_cls, b_cls,
                                       matmul_dtype=jnp.bfloat16)
    err_l = float(jnp.max(jnp.abs(logits - ref_l)))
    err_h = float(jnp.max(jnp.abs(hidden - ref_h)))
    assert err_l < tol_bf and err_h < tol_bf, (name, "bf16 ref", err_l, err_h)

    # Sanity vs. the exact f32 module semantics (bf16 matmul drift only).
    ref_l32, ref_h32 = rnn_model_reference(x, h0, w_ihs, w_hhs, w_cls, b_cls)
    err_l32 = float(jnp.max(jnp.abs(logits - ref_l32)))
    err_h32 = float(jnp.max(jnp.abs(hidden - ref_h32)))
    assert err_l32 < tol_f32 and err_h32 < tol_f32, (name, "f32 ref", err_l32, err_h32)


if __name__ == "__main__":
    key = jax.random.PRNGKey(0)
    k1, k2, k3 = jax.random.split(key, 3)

    # Small config consistent with the module (seq=8, batch=2, ninp=16,
    # nhid=32, 2 layers); auto time chunk (single chunk).
    _run_case("auto_tc", k1, T=8, B=2, ninp=16, nhid=32, nlayers=2,
              tol_bf=1e-2, tol_f32=8e-2)

    # Same config, explicit time_chunk=4: exercises the cross-chunk hidden carry.
    _run_case("chunked", k2, T=8, B=2, ninp=16, nhid=32, nlayers=2,
              tol_bf=1e-2, tol_f32=8e-2, time_chunk=4)

    # Longer sequence / 3 layers / batch of 10 split into two 8-row blocks:
    # exercises the fori_loop steady-state wavefront and batch blocking.
    _run_case("wavefront_fori", k3, T=24, B=10, ninp=24, nhid=48, nlayers=3,
              tol_bf=3e-2, tol_f32=2e-1, batch_block=8)

    print("KERNEL_OK")
</pallas_src>

<mosaic_0001>
module attributes {stable_mosaic.version = 11 : i64} {
  func.func @kernel(%arg0: i32, %arg1: i32, %arg2: memref<1x64x16xbf16, #tpu.memory_space<vmem>>, %arg3: memref<1x2x8x128xf32, #tpu.memory_space<vmem>>, %arg4: memref<16x128xbf16, #tpu.memory_space<vmem>>, %arg5: memref<128x128xbf16, #tpu.memory_space<vmem>>, %arg6: memref<128x128xbf16, #tpu.memory_space<vmem>>, %arg7: memref<128x128xbf16, #tpu.memory_space<vmem>>, %arg8: memref<128x128xbf16, #tpu.memory_space<vmem>>, %arg9: memref<1x128xf32, #tpu.memory_space<vmem>>, %arg10: memref<1x64x128xbf16, #tpu.memory_space<vmem>>, %arg11: memref<1x2x8x128xf32, #tpu.memory_space<vmem>>, %arg12: memref<64x128xf32, #tpu.memory_space<vmem>>, %arg13: memref<64x128xf32, #tpu.memory_space<vmem>>, %arg14: memref<2x8x128xf32, #tpu.memory_space<vmem>>) attributes {dimension_semantics = [#tpu.dimension_semantics<parallel>, #tpu.dimension_semantics<arbitrary>], iteration_bounds = array<i64: 1, 1>, scalar_prefetch = 0 : i64, scratch_operands = 3 : i64, tpu.core_type = #tpu.core_type<tc>, window_params = [{transform_indices = @transform_0, window_bounds = array<i64: 1, 64, 16>}, {transform_indices = @transform_1, window_bounds = array<i64: 1, 2, 8, 128>}, {pipeline_mode = #tpu.pipeline_mode<synchronous>, transform_indices = @transform_2, window_bounds = array<i64: 16, 128>}, {pipeline_mode = #tpu.pipeline_mode<synchronous>, transform_indices = @transform_3, window_bounds = array<i64: 128, 128>}, {pipeline_mode = #tpu.pipeline_mode<synchronous>, transform_indices = @transform_4, window_bounds = array<i64: 128, 128>}, {pipeline_mode = #tpu.pipeline_mode<synchronous>, transform_indices = @transform_5, window_bounds = array<i64: 128, 128>}, {pipeline_mode = #tpu.pipeline_mode<synchronous>, transform_indices = @transform_6, window_bounds = array<i64: 128, 128>}, {pipeline_mode = #tpu.pipeline_mode<synchronous>, transform_indices = @transform_7, window_bounds = array<i64: 1, 128>}, {transform_indices = @transform_8, window_bounds = array<i64: 1, 64, 128>}, {transform_indices = @transform_9, window_bounds = array<i64: 1, 2, 8, 128>}]} {
    %c0_i32 = arith.constant 0 : i32
    %0 = arith.cmpi eq, %arg1, %c0_i32 : i32
    %1 = arith.extui %0 : i1 to i32
    %c0_i32_0 = arith.constant 0 : i32
    %2 = arith.cmpi ne, %1, %c0_i32_0 : i32
    scf.if %2 {
      %c0_127 = arith.constant 0 : index
      %c0_128 = arith.constant 0 : index
      %c0_129 = arith.constant 0 : index
      %c0_130 = arith.constant 0 : index
      %152 = vector.load %arg3[%c0_127, %c0_128, %c0_129, %c0_130] : memref<1x2x8x128xf32, #tpu.memory_space<vmem>>, vector<1x2x8x128xf32>
      %153 = vector.shape_cast %152 : vector<1x2x8x128xf32> to vector<2x8x128xf32>
      %c0_131 = arith.constant 0 : index
      %c0_132 = arith.constant 0 : index
      %c0_133 = arith.constant 0 : index
      %154 = vector.load %arg14[%c0_131, %c0_132, %c0_133] : memref<2x8x128xf32, #tpu.memory_space<vmem>>, vector<2x8x128xf32>
      tpu.vector_store %arg14[%c0_131, %c0_132, %c0_133], %153 {strides = array<i32>} : memref<2x8x128xf32, #tpu.memory_space<vmem>>, vector<2x8x128xf32>,
    } else {
    }
    %c0 = arith.constant 0 : index
    %c0_1 = arith.constant 0 : index
    %c0_2 = arith.constant 0 : index
    %3 = vector.load %arg2[%c0, %c0_1, %c0_2] : memref<1x64x16xbf16, #tpu.memory_space<vmem>>, vector<1x64x16xbf16>
    %4 = vector.shape_cast %3 : vector<1x64x16xbf16> to vector<64x16xbf16>
    %c0_3 = arith.constant 0 : index
    %c0_4 = arith.constant 0 : index
    %5 = vector.load %arg4[%c0_3, %c0_4] : memref<16x128xbf16, #tpu.memory_space<vmem>>, vector<16x128xbf16>
    %cst = arith.constant dense<0.000000e+00> : vector<64x128xf32>
    %6 = tpu.matmul %4, %5, %cst {dimension_numbers = #tpu.dot_dimension_numbers<[1], [0], [0], [1], [0, 0, 1, 1], [], []>} : vector<64x16xbf16>, vector<16x128xbf16>, vector<64x128xf32> -> vector<64x128xf32>
    %c0_5 = arith.constant 0 : index
    %c0_6 = arith.constant 0 : index
    %7 = vector.load %arg12[%c0_5, %c0_6] : memref<64x128xf32, #tpu.memory_space<vmem>>, vector<64x128xf32>
    tpu.vector_store %arg12[%c0_5, %c0_6], %6 {strides = array<i32>} : memref<64x128xf32, #tpu.memory_space<vmem>>, vector<64x128xf32>,
    %c0_7 = arith.constant 0 : index
    %c0_8 = arith.constant 0 : index
    %c0_9 = arith.constant 0 : index
    %8 = vector.load %arg14[%c0_7, %c0_8, %c0_9] : memref<2x8x128xf32, #tpu.memory_space<vmem>>, vector<1x8x128xf32>
    %9 = vector.shape_cast %8 : vector<1x8x128xf32> to vector<8x128xf32>
    %c1 = arith.constant 1 : index
    %c0_10 = arith.constant 0 : index
    %c0_11 = arith.constant 0 : index
    %10 = vector.load %arg14[%c1, %c0_10, %c0_11] : memref<2x8x128xf32, #tpu.memory_space<vmem>>, vector<1x8x128xf32>
    %11 = vector.shape_cast %10 : vector<1x8x128xf32> to vector<8x128xf32>
    %c0_12 = arith.constant 0 : index
    %c0_13 = arith.constant 0 : index
    %12 = vector.load %arg12[%c0_12, %c0_13] : memref<64x128xf32, #tpu.memory_space<vmem>>, vector<8x128xf32>
    %13 = arith.truncf %9 : vector<8x128xf32> to vector<8x128xbf16>
    %c0_14 = arith.constant 0 : index
    %c0_15 = arith.constant 0 : index
    %14 = vector.load %arg6[%c0_14, %c0_15] : memref<128x128xbf16, #tpu.memory_space<vmem>>, vector<128x128xbf16>
    %cst_16 = arith.constant dense<0.000000e+00> : vector<8x128xf32>
    %15 = tpu.matmul %13, %14, %cst_16 {dimension_numbers = #tpu.dot_dimension_numbers<[1], [0], [0], [1], [0, 0, 1, 1], [], []>} : vector<8x128xbf16>, vector<128x128xbf16>, vector<8x128xf32> -> vector<8x128xf32>
    %16 = arith.addf %12, %15 : vector<8x128xf32>
    %17 = math.tanh %16 : vector<8x128xf32>
    %18 = arith.truncf %17 : vector<8x128xf32> to vector<8x128xbf16>
    %c8 = arith.constant 8 : index
    %c0_17 = arith.constant 0 : index
    %19 = vector.load %arg12[%c8, %c0_17] : memref<64x128xf32, #tpu.memory_space<vmem>>, vector<8x128xf32>
    %20 = arith.truncf %17 : vector<8x128xf32> to vector<8x128xbf16>
    %c0_18 = arith.constant 0 : index
    %c0_19 = arith.constant 0 : index
    %21 = vector.load %arg6[%c0_18, %c0_19] : memref<128x128xbf16, #tpu.memory_space<vmem>>, vector<128x128xbf16>
    %cst_20 = arith.constant dense<0.000000e+00> : vector<8x128xf32>
    %22 = tpu.matmul %20, %21, %cst_20 {dimension_numbers = #tpu.dot_dimension_numbers<[1], [0], [0], [1], [0, 0, 1, 1], [], []>} : vector<8x128xbf16>, vector<128x128xbf16>, vector<8x128xf32> -> vector<8x128xf32>
    %23 = arith.addf %19, %22 : vector<8x128xf32>
    %24 = math.tanh %23 : vector<8x128xf32>
    %25 = arith.truncf %24 : vector<8x128xf32> to vector<8x128xbf16>
    %c0_21 = arith.constant 0 : index
    %c0_22 = arith.constant 0 : index
    %26 = vector.load %arg5[%c0_21, %c0_22] : memref<128x128xbf16, #tpu.memory_space<vmem>>, vector<128x128xbf16>
    %cst_23 = arith.constant dense<0.000000e+00> : vector<8x128xf32>
    %27 = tpu.matmul %18, %26, %cst_23 {dimension_numbers = #tpu.dot_dimension_numbers<[1], [0], [0], [1], [0, 0, 1, 1], [], []>} : vector<8x128xbf16>, vector<128x128xbf16>, vector<8x128xf32> -> vector<8x128xf32>
    %28 = arith.truncf %11 : vector<8x128xf32> to vector<8x128xbf16>
    %c0_24 = arith.constant 0 : index
    %c0_25 = arith.constant 0 : index
    %29 = vector.load %arg7[%c0_24, %c0_25] : memref<128x128xbf16, #tpu.memory_space<vmem>>, vector<128x128xbf16>
    %cst_26 = arith.constant dense<0.000000e+00> : vector<8x128xf32>
    %30 = tpu.matmul %28, %29, %cst_26 {dimension_numbers = #tpu.dot_dimension_numbers<[1], [0], [0], [1], [0, 0, 1, 1], [], []>} : vector<8x128xbf16>, vector<128x128xbf16>, vector<8x128xf32> -> vector<8x128xf32>
    %31 = arith.addf %27, %30 : vector<8x128xf32>
    %32 = math.tanh %31 : vector<8x128xf32>
    %c0_27 = arith.constant 0 : index
    %c0_28 = arith.constant 0 : index
    %33 = vector.load %arg13[%c0_27, %c0_28] : memref<64x128xf32, #tpu.memory_space<vmem>>, vector<8x128xf32>
    tpu.vector_store %arg13[%c0_27, %c0_28], %32 {strides = array<i32>} : memref<64x128xf32, #tpu.memory_space<vmem>>, vector<8x128xf32>,
    %c16 = arith.constant 16 : index
    %c0_29 = arith.constant 0 : index
    %34 = vector.load %arg12[%c16, %c0_29] : memref<64x128xf32, #tpu.memory_space<vmem>>, vector<8x128xf32>
    %35 = arith.truncf %24 : vector<8x128xf32> to vector<8x128xbf16>
    %c0_30 = arith.constant 0 : index
    %c0_31 = arith.constant 0 : index
    %36 = vector.load %arg6[%c0_30, %c0_31] : memref<128x128xbf16, #tpu.memory_space<vmem>>, vector<128x128xbf16>
    %cst_32 = arith.constant dense<0.000000e+00> : vector<8x128xf32>
    %37 = tpu.matmul %35, %36, %cst_32 {dimension_numbers = #tpu.dot_dimension_numbers<[1], [0], [0], [1], [0, 0, 1, 1], [], []>} : vector<8x128xbf16>, vector<128x128xbf16>, vector<8x128xf32> -> vector<8x128xf32>
    %38 = arith.addf %34, %37 : vector<8x128xf32>
    %39 = math.tanh %38 : vector<8x128xf32>
    %40 = arith.truncf %39 : vector<8x128xf32> to vector<8x128xbf16>
    %c0_33 = arith.constant 0 : index
    %c0_34 = arith.constant 0 : index
    %41 = vector.load %arg5[%c0_33, %c0_34] : memref<128x128xbf16, #tpu.memory_space<vmem>>, vector<128x128xbf16>
    %cst_35 = arith.constant dense<0.000000e+00> : vector<8x128xf32>
    %42 = tpu.matmul %25, %41, %cst_35 {dimension_numbers = #tpu.dot_dimension_numbers<[1], [0], [0], [1], [0, 0, 1, 1], [], []>} : vector<8x128xbf16>, vector<128x128xbf16>, vector<8x128xf32> -> vector<8x128xf32>
    %43 = arith.truncf %32 : vector<8x128xf32> to vector<8x128xbf16>
    %c0_36 = arith.constant 0 : index
    %c0_37 = arith.constant 0 : index
    %44 = vector.load %arg7[%c0_36, %c0_37] : memref<128x128xbf16, #tpu.memory_space<vmem>>, vector<128x128xbf16>
    %cst_38 = arith.constant dense<0.000000e+00> : vector<8x128xf32>
    %45 = tpu.matmul %43, %44, %cst_38 {dimension_numbers = #tpu.dot_dimension_numbers<[1], [0], [0], [1], [0, 0, 1, 1], [], []>} : vector<8x128xbf16>, vector<128x128xbf16>, vector<8x128xf32> -> vector<8x128xf32>
    %46 = arith.addf %42, %45 : vector<8x128xf32>
    %47 = math.tanh %46 : vector<8x128xf32>
    %c8_39 = arith.constant 8 : index
    %c0_40 = arith.constant 0 : index
    %48 = vector.load %arg13[%c8_39, %c0_40] : memref<64x128xf32, #tpu.memory_space<vmem>>, vector<8x128xf32>
    tpu.vector_store %arg13[%c8_39, %c0_40], %47 {strides = array<i32>} : memref<64x128xf32, #tpu.memory_space<vmem>>, vector<8x128xf32>,
    %c24 = arith.constant 24 : index
    %c0_41 = arith.constant 0 : index
    %49 = vector.load %arg12[%c24, %c0_41] : memref<64x128xf32, #tpu.memory_space<vmem>>, vector<8x128xf32>
    %50 = arith.truncf %39 : vector<8x128xf32> to vector<8x128xbf16>
    %c0_42 = arith.constant 0 : index
    %c0_43 = arith.constant 0 : index
    %51 = vector.load %arg6[%c0_42, %c0_43] : memref<128x128xbf16, #tpu.memory_space<vmem>>, vector<128x128xbf16>
    %cst_44 = arith.constant dense<0.000000e+00> : vector<8x128xf32>
    %52 = tpu.matmul %50, %51, %cst_44 {dimension_numbers = #tpu.dot_dimension_numbers<[1], [0], [0], [1], [0, 0, 1, 1], [], []>} : vector<8x128xbf16>, vector<128x128xbf16>, vector<8x128xf32> -> vector<8x128xf32>
    %53 = arith.addf %49, %52 : vector<8x128xf32>
    %54 = math.tanh %53 : vector<8x128xf32>
    %55 = arith.truncf %54 : vector<8x128xf32> to vector<8x128xbf16>
    %c0_45 = arith.constant 0 : index
    %c0_46 = arith.constant 0 : index
    %56 = vector.load %arg5[%c0_45, %c0_46] : memref<128x128xbf16, #tpu.memory_space<vmem>>, vector<128x128xbf16>
    %cst_47 = arith.constant dense<0.000000e+00> : vector<8x128xf32>
    %57 = tpu.matmul %40, %56, %cst_47 {dimension_numbers = #tpu.dot_dimension_numbers<[1], [0], [0], [1], [0, 0, 1, 1], [], []>} : vector<8x128xbf16>, vector<128x128xbf16>, vector<8x128xf32> -> vector<8x128xf32>
    %58 = arith.truncf %47 : vector<8x128xf32> to vector<8x128xbf16>
    %c0_48 = arith.constant 0 : index
    %c0_49 = arith.constant 0 : index
    %59 = vector.load %arg7[%c0_48, %c0_49] : memref<128x128xbf16, #tpu.memory_space<vmem>>, vector<128x128xbf16>
    %cst_50 = arith.constant dense<0.000000e+00> : vector<8x128xf32>
    %60 = tpu.matmul %58, %59, %cst_50 {dimension_numbers = #tpu.dot_dimension_numbers<[1], [0], [0], [1], [0, 0, 1, 1], [], []>} : vector<8x128xbf16>, vector<128x128xbf16>, vector<8x128xf32> -> vector<8x128xf32>
    %61 = arith.addf %57, %60 : vector<8x128xf32>
    %62 = math.tanh %61 : vector<8x128xf32>
    %c16_51 = arith.constant 16 : index
    %c0_52 = arith.constant 0 : index
    %63 = vector.load %arg13[%c16_51, %c0_52] : memref<64x128xf32, #tpu.memory_space<vmem>>, vector<8x128xf32>
    tpu.vector_store %arg13[%c16_51, %c0_52], %62 {strides = array<i32>} : memref<64x128xf32, #tpu.memory_space<vmem>>, vector<8x128xf32>,
    %c32 = arith.constant 32 : index
    %c0_53 = arith.constant 0 : index
    %64 = vector.load %arg12[%c32, %c0_53] : memref<64x128xf32, #tpu.memory_space<vmem>>, vector<8x128xf32>
    %65 = arith.truncf %54 : vector<8x128xf32> to vector<8x128xbf16>
    %c0_54 = arith.constant 0 : index
    %c0_55 = arith.constant 0 : index
    %66 = vector.load %arg6[%c0_54, %c0_55] : memref<128x128xbf16, #tpu.memory_space<vmem>>, vector<128x128xbf16>
    %cst_56 = arith.constant dense<0.000000e+00> : vector<8x128xf32>
    %67 = tpu.matmul %65, %66, %cst_56 {dimension_numbers = #tpu.dot_dimension_numbers<[1], [0], [0], [1], [0, 0, 1, 1], [], []>} : vector<8x128xbf16>, vector<128x128xbf16>, vector<8x128xf32> -> vector<8x128xf32>
    %68 = arith.addf %64, %67 : vector<8x128xf32>
    %69 = math.tanh %68 : vector<8x128xf32>
    %70 = arith.truncf %69 : vector<8x128xf32> to vector<8x128xbf16>
    %c0_57 = arith.constant 0 : index
    %c0_58 = arith.constant 0 : index
    %71 = vector.load %arg5[%c0_57, %c0_58] : memref<128x128xbf16, #tpu.memory_space<vmem>>, vector<128x128xbf16>
    %cst_59 = arith.constant dense<0.000000e+00> : vector<8x128xf32>
    %72 = tpu.matmul %55, %71, %cst_59 {dimension_numbers = #tpu.dot_dimension_numbers<[1], [0], [0], [1], [0, 0, 1, 1], [], []>} : vector<8x128xbf16>, vector<128x128xbf16>, vector<8x128xf32> -> vector<8x128xf32>
    %73 = arith.truncf %62 : vector<8x128xf32> to vector<8x128xbf16>
    %c0_60 = arith.constant 0 : index
    %c0_61 = arith.constant 0 : index
    %74 = vector.load %arg7[%c0_60, %c0_61] : memref<128x128xbf16, #tpu.memory_space<vmem>>, vector<128x128xbf16>
    %cst_62 = arith.constant dense<0.000000e+00> : vector<8x128xf32>
    %75 = tpu.matmul %73, %74, %cst_62 {dimension_numbers = #tpu.dot_dimension_numbers<[1], [0], [0], [1], [0, 0, 1, 1], [], []>} : vector<8x128xbf16>, vector<128x128xbf16>, vector<8x128xf32> -> vector<8x128xf32>
    %76 = arith.addf %72, %75 : vector<8x128xf32>
    %77 = math.tanh %76 : vector<8x128xf32>
    %c24_63 = arith.constant 24 : index
    %c0_64 = arith.constant 0 : index
    %78 = vector.load %arg13[%c24_63, %c0_64] : memref<64x128xf32, #tpu.memory_space<vmem>>, vector<8x128xf32>
    tpu.vector_store %arg13[%c24_63, %c0_64], %77 {strides = array<i32>} : memref<64x128xf32, #tpu.memory_space<vmem>>, vector<8x128xf32>,
    %c40 = arith.constant 40 : index
    %c0_65 = arith.constant 0 : index
    %79 = vector.load %arg12[%c40, %c0_65] : memref<64x128xf32, #tpu.memory_space<vmem>>, vector<8x128xf32>
    %80 = arith.truncf %69 : vector<8x128xf32> to vector<8x128xbf16>
    %c0_66 = arith.constant 0 : index
    %c0_67 = arith.constant 0 : index
    %81 = vector.load %arg6[%c0_66, %c0_67] : memref<128x128xbf16, #tpu.memory_space<vmem>>, vector<128x128xbf16>
    %cst_68 = arith.constant dense<0.000000e+00> : vector<8x128xf32>
    %82 = tpu.matmul %80, %81, %cst_68 {dimension_numbers = #tpu.dot_dimension_numbers<[1], [0], [0], [1], [0, 0, 1, 1], [], []>} : vector<8x128xbf16>, vector<128x128xbf16>, vector<8x128xf32> -> vector<8x128xf32>
    %83 = arith.addf %79, %82 : vector<8x128xf32>
    %84 = math.tanh %83 : vector<8x128xf32>
    %85 = arith.truncf %84 : vector<8x128xf32> to vector<8x128xbf16>
    %c0_69 = arith.constant 0 : index
    %c0_70 = arith.constant 0 : index
    %86 = vector.load %arg5[%c0_69, %c0_70] : memref<128x128xbf16, #tpu.memory_space<vmem>>, vector<128x128xbf16>
    %cst_71 = arith.constant dense<0.000000e+00> : vector<8x128xf32>
    %87 = tpu.matmul %70, %86, %cst_71 {dimension_numbers = #tpu.dot_dimension_numbers<[1], [0], [0], [1], [0, 0, 1, 1], [], []>} : vector<8x128xbf16>, vector<128x128xbf16>, vector<8x128xf32> -> vector<8x128xf32>
    %88 = arith.truncf %77 : vector<8x128xf32> to vector<8x128xbf16>
    %c0_72 = arith.constant 0 : index
    %c0_73 = arith.constant 0 : index
    %89 = vector.load %arg7[%c0_72, %c0_73] : memref<128x128xbf16, #tpu.memory_space<vmem>>, vector<128x128xbf16>
    %cst_74 = arith.constant dense<0.000000e+00> : vector<8x128xf32>
    %90 = tpu.matmul %88, %89, %cst_74 {dimension_numbers = #tpu.dot_dimension_numbers<[1], [0], [0], [1], [0, 0, 1, 1], [], []>} : vector<8x128xbf16>, vector<128x128xbf16>, vector<8x128xf32> -> vector<8x128xf32>
    %91 = arith.addf %87, %90 : vector<8x128xf32>
    %92 = math.tanh %91 : vector<8x128xf32>
    %c32_75 = arith.constant 32 : index
    %c0_76 = arith.constant 0 : index
    %93 = vector.load %arg13[%c32_75, %c0_76] : memref<64x128xf32, #tpu.memory_space<vmem>>, vector<8x128xf32>
    tpu.vector_store %arg13[%c32_75, %c0_76], %92 {strides = array<i32>} : memref<64x128xf32, #tpu.memory_space<vmem>>, vector<8x128xf32>,
    %c48 = arith.constant 48 : index
    %c0_77 = arith.constant 0 : index
    %94 = vector.load %arg12[%c48, %c0_77] : memref<64x128xf32, #tpu.memory_space<vmem>>, vector<8x128xf32>
    %95 = arith.truncf %84 : vector<8x128xf32> to vector<8x128xbf16>
    %c0_78 = arith.constant 0 : index
    %c0_79 = arith.constant 0 : index
    %96 = vector.load %arg6[%c0_78, %c0_79] : memref<128x128xbf16, #tpu.memory_space<vmem>>, vector<128x128xbf16>
    %cst_80 = arith.constant dense<0.000000e+00> : vector<8x128xf32>
    %97 = tpu.matmul %95, %96, %cst_80 {dimension_numbers = #tpu.dot_dimension_numbers<[1], [0], [0], [1], [0, 0, 1, 1], [], []>} : vector<8x128xbf16>, vector<128x128xbf16>, vector<8x128xf32> -> vector<8x128xf32>
    %98 = arith.addf %94, %97 : vector<8x128xf32>
    %99 = math.tanh %98 : vector<8x128xf32>
    %100 = arith.truncf %99 : vector<8x128xf32> to vector<8x128xbf16>
    %c0_81 = arith.constant 0 : index
    %c0_82 = arith.constant 0 : index
    %101 = vector.load %arg5[%c0_81, %c0_82] : memref<128x128xbf16, #tpu.memory_space<vmem>>, vector<128x128xbf16>
    %cst_83 = arith.constant dense<0.000000e+00> : vector<8x128xf32>
    %102 = tpu.matmul %85, %101, %cst_83 {dimension_numbers = #tpu.dot_dimension_numbers<[1], [0], [0], [1], [0, 0, 1, 1], [], []>} : vector<8x128xbf16>, vector<128x128xbf16>, vector<8x128xf32> -> vector<8x128xf32>
    %103 = arith.truncf %92 : vector<8x128xf32> to vector<8x128xbf16>
    %c0_84 = arith.constant 0 : index
    %c0_85 = arith.constant 0 : index
    %104 = vector.load %arg7[%c0_84, %c0_85] : memref<128x128xbf16, #tpu.memory_space<vmem>>, vector<128x128xbf16>
    %cst_86 = arith.constant dense<0.000000e+00> : vector<8x128xf32>
    %105 = tpu.matmul %103, %104, %cst_86 {dimension_numbers = #tpu.dot_dimension_numbers<[1], [0], [0], [1], [0, 0, 1, 1], [], []>} : vector<8x128xbf16>, vector<128x128xbf16>, vector<8x128xf32> -> vector<8x128xf32>
    %106 = arith.addf %102, %105 : vector<8x128xf32>
    %107 = math.tanh %106 : vector<8x128xf32>
    %c40_87 = arith.constant 40 : index
    %c0_88 = arith.constant 0 : index
    %108 = vector.load %arg13[%c40_87, %c0_88] : memref<64x128xf32, #tpu.memory_space<vmem>>, vector<8x128xf32>
    tpu.vector_store %arg13[%c40_87, %c0_88], %107 {strides = array<i32>} : memref<64x128xf32, #tpu.memory_space<vmem>>, vector<8x128xf32>,
    %c56 = arith.constant 56 : index
    %c0_89 = arith.constant 0 : index
    %109 = vector.load %arg12[%c56, %c0_89] : memref<64x128xf32, #tpu.memory_space<vmem>>, vector<8x128xf32>
    %110 = arith.truncf %99 : vector<8x128xf32> to vector<8x128xbf16>
    %c0_90 = arith.constant 0 : index
    %c0_91 = arith.constant 0 : index
    %111 = vector.load %arg6[%c0_90, %c0_91] : memref<128x128xbf16, #tpu.memory_space<vmem>>, vector<128x128xbf16>
    %cst_92 = arith.constant dense<0.000000e+00> : vector<8x128xf32>
    %112 = tpu.matmul %110, %111, %cst_92 {dimension_numbers = #tpu.dot_dimension_numbers<[1], [0], [0], [1], [0, 0, 1, 1], [], []>} : vector<8x128xbf16>, vector<128x128xbf16>, vector<8x128xf32> -> vector<8x128xf32>
    %113 = arith.addf %109, %112 : vector<8x128xf32>
    %114 = math.tanh %113 : vector<8x128xf32>
    %115 = arith.truncf %114 : vector<8x128xf32> to vector<8x128xbf16>
    %c0_93 = arith.constant 0 : index
    %c0_94 = arith.constant 0 : index
    %116 = vector.load %arg5[%c0_93, %c0_94] : memref<128x128xbf16, #tpu.memory_space<vmem>>, vector<128x128xbf16>
    %cst_95 = arith.constant dense<0.000000e+00> : vector<8x128xf32>
    %117 = tpu.matmul %100, %116, %cst_95 {dimension_numbers = #tpu.dot_dimension_numbers<[1], [0], [0], [1], [0, 0, 1, 1], [], []>} : vector<8x128xbf16>, vector<128x128xbf16>, vector<8x128xf32> -> vector<8x128xf32>
    %118 = arith.truncf %107 : vector<8x128xf32> to vector<8x128xbf16>
    %c0_96 = arith.constant 0 : index
    %c0_97 = arith.constant 0 : index
    %119 = vector.load %arg7[%c0_96, %c0_97] : memref<128x128xbf16, #tpu.memory_space<vmem>>, vector<128x128xbf16>
    %cst_98 = arith.constant dense<0.000000e+00> : vector<8x128xf32>
    %120 = tpu.matmul %118, %119, %cst_98 {dimension_numbers = #tpu.dot_dimension_numbers<[1], [0], [0], [1], [0, 0, 1, 1], [], []>} : vector<8x128xbf16>, vector<128x128xbf16>, vector<8x128xf32> -> vector<8x128xf32>
    %121 = arith.addf %117, %120 : vector<8x128xf32>
    %122 = math.tanh %121 : vector<8x128xf32>
    %c48_99 = arith.constant 48 : index
    %c0_100 = arith.constant 0 : index
    %123 = vector.load %arg13[%c48_99, %c0_100] : memref<64x128xf32, #tpu.memory_space<vmem>>, vector<8x128xf32>
    tpu.vector_store %arg13[%c48_99, %c0_100], %122 {strides = array<i32>} : memref<64x128xf32, #tpu.memory_space<vmem>>, vector<8x128xf32>,
    %c0_101 = arith.constant 0 : index
    %c0_102 = arith.constant 0 : index
    %124 = vector.load %arg5[%c0_101, %c0_102] : memref<128x128xbf16, #tpu.memory_space<vmem>>, vector<128x128xbf16>
    %cst_103 = arith.constant dense<0.000000e+00> : vector<8x128xf32>
    %125 = tpu.matmul %115, %124, %cst_103 {dimension_numbers = #tpu.dot_dimension_numbers<[1], [0], [0], [1], [0, 0, 1, 1], [], []>} : vector<8x128xbf16>, vector<128x128xbf16>, vector<8x128xf32> -> vector<8x128xf32>
    %126 = arith.truncf %122 : vector<8x128xf32> to vector<8x128xbf16>
    %c0_104 = arith.constant 0 : index
    %c0_105 = arith.constant 0 : index
    %127 = vector.load %arg7[%c0_104, %c0_105] : memref<128x128xbf16, #tpu.memory_space<vmem>>, vector<128x128xbf16>
    %cst_106 = arith.constant dense<0.000000e+00> : vector<8x128xf32>
    %128 = tpu.matmul %126, %127, %cst_106 {dimension_numbers = #tpu.dot_dimension_numbers<[1], [0], [0], [1], [0, 0, 1, 1], [], []>} : vector<8x128xbf16>, vector<128x128xbf16>, vector<8x128xf32> -> vector<8x128xf32>
    %129 = arith.addf %125, %128 : vector<8x128xf32>
    %130 = math.tanh %129 : vector<8x128xf32>
    %c56_107 = arith.constant 56 : index
    %c0_108 = arith.constant 0 : index
    %131 = vector.load %arg13[%c56_107, %c0_108] : memref<64x128xf32, #tpu.memory_space<vmem>>, vector<8x128xf32>
    tpu.vector_store %arg13[%c56_107, %c0_108], %130 {strides = array<i32>} : memref<64x128xf32, #tpu.memory_space<vmem>>, vector<8x128xf32>,
    %c0_109 = arith.constant 0 : index
    %c0_110 = arith.constant 0 : index
    %c0_111 = arith.constant 0 : index
    %132 = vector.load %arg14[%c0_109, %c0_110, %c0_111] : memref<2x8x128xf32, #tpu.memory_space<vmem>>, vector<1x8x128xf32>
    %133 = vector.shape_cast %132 : vector<1x8x128xf32> to vector<8x128xf32>
    %134 = vector.shape_cast %114 : vector<8x128xf32> to vector<1x8x128xf32>
    tpu.vector_store %arg14[%c0_109, %c0_110, %c0_111], %134 {strides = array<i32>} : memref<2x8x128xf32, #tpu.memory_space<vmem>>, vector<1x8x128xf32>,
    %c1_112 = arith.constant 1 : index
    %c0_113 = arith.constant 0 : index
    %c0_114 = arith.constant 0 : index
    %135 = vector.load %arg14[%c1_112, %c0_113, %c0_114] : memref<2x8x128xf32, #tpu.memory_space<vmem>>, vector<1x8x128xf32>
    %136 = vector.shape_cast %135 : vector<1x8x128xf32> to vector<8x128xf32>
    %137 = vector.shape_cast %130 : vector<8x128xf32> to vector<1x8x128xf32>
    tpu.vector_store %arg14[%c1_112, %c0_113, %c0_114], %137 {strides = array<i32>} : memref<2x8x128xf32, #tpu.memory_space<vmem>>, vector<1x8x128xf32>,
    %c0_115 = arith.constant 0 : index
    %c0_116 = arith.constant 0 : index
    %138 = vector.load %arg13[%c0_115, %c0_116] : memref<64x128xf32, #tpu.memory_space<vmem>>, vector<64x128xf32>
    %139 = arith.truncf %138 : vector<64x128xf32> to vector<64x128xbf16>
    %c0_117 = arith.constant 0 : index
    %c0_118 = arith.constant 0 : index
    %140 = vector.load %arg8[%c0_117, %c0_118] : memref<128x128xbf16, #tpu.memory_space<vmem>>, vector<128x128xbf16>
    %cst_119 = arith.constant dense<0.000000e+00> : vector<64x128xf32>
    %141 = tpu.matmul %139, %140, %cst_119 {dimension_numbers = #tpu.dot_dimension_numbers<[1], [0], [0], [1], [0, 0, 1, 1], [], []>} : vector<64x128xbf16>, vector<128x128xbf16>, vector<64x128xf32> -> vector<64x128xf32>
    %c0_120 = arith.constant 0 : index
    %c0_121 = arith.constant 0 : index
    %142 = vector.load %arg9[%c0_120, %c0_121] : memref<1x128xf32, #tpu.memory_space<vmem>>, vector<1x128xf32>
    %143 = vector.broadcast %142 : vector<1x128xf32> to vector<64x128xf32>
    %144 = arith.addf %141, %143 : vector<64x128xf32>
    %145 = arith.truncf %144 : vector<64x128xf32> to vector<64x128xbf16>
    %c0_122 = arith.constant 0 : index
    %c0_123 = arith.constant 0 : index
    %c0_124 = arith.constant 0 : index
    %146 = vector.load %arg10[%c0_122, %c0_123, %c0_124] : memref<1x64x128xbf16, #tpu.memory_space<vmem>>, vector<1x64x128xbf16>
    %147 = vector.shape_cast %146 : vector<1x64x128xbf16> to vector<64x128xbf16>
    %148 = vector.shape_cast %145 : vector<64x128xbf16> to vector<1x64x128xbf16>
    tpu.vector_store %arg10[%c0_122, %c0_123, %c0_124], %148 {strides = array<i32>} : memref<1x64x128xbf16, #tpu.memory_space<vmem>>, vector<1x64x128xbf16>,
    %c0_i32_125 = arith.constant 0 : i32
    %149 = arith.cmpi eq, %arg1, %c0_i32_125 : i32
    %150 = arith.extui %149 : i1 to i32
    %c0_i32_126 = arith.constant 0 : i32
    %151 = arith.cmpi ne, %150, %c0_i32_126 : i32
    scf.if %151 {
      %c0_127 = arith.constant 0 : index
      %c0_128 = arith.constant 0 : index
      %c0_129 = arith.constant 0 : index
      %152 = vector.load %arg14[%c0_127, %c0_128, %c0_129] : memref<2x8x128xf32, #tpu.memory_space<vmem>>, vector<2x8x128xf32>
      %c0_130 = arith.constant 0 : index
      %c0_131 = arith.constant 0 : index
      %c0_132 = arith.constant 0 : index
      %c0_133 = arith.constant 0 : index
      %153 = vector.load %arg11[%c0_130, %c0_131, %c0_132, %c0_133] : memref<1x2x8x128xf32, #tpu.memory_space<vmem>>, vector<1x2x8x128xf32>
      %154 = vector.shape_cast %153 : vector<1x2x8x128xf32> to vector<2x8x128xf32>
      %155 = vector.shape_cast %152 : vector<2x8x128xf32> to vector<1x2x8x128xf32>
      tpu.vector_store %arg11[%c0_130, %c0_131, %c0_132, %c0_133], %155 {strides = array<i32>} : memref<1x2x8x128xf32, #tpu.memory_space<vmem>>, vector<1x2x8x128xf32>,
    } else {
    }
    return
  }
  func.func @transform_0(%arg0: i32, %arg1: i32) -> (i32, i32, i32) {
    %c0_i32 = arith.constant 0 : i32
    %c0_i32_0 = arith.constant 0 : i32
    return %arg0, %arg1, %c0_i32 : i32, i32, i32
  }
  func.func @transform_1(%arg0: i32, %arg1: i32) -> (i32, i32, i32, i32) {
    %c0_i32 = arith.constant 0 : i32
    %c0_i32_0 = arith.constant 0 : i32
    %c0_i32_1 = arith.constant 0 : i32
    %c0_i32_2 = arith.constant 0 : i32
    return %arg0, %c0_i32, %c0_i32_0, %c0_i32_1 : i32, i32, i32, i32
  }
  func.func @transform_2(%arg0: i32, %arg1: i32) -> (i32, i32) {
    %c0_i32 = arith.constant 0 : i32
    %c0_i32_0 = arith.constant 0 : i32
    %c0_i32_1 = arith.constant 0 : i32
    return %c0_i32, %c0_i32_0 : i32, i32
  }
  func.func @transform_3(%arg0: i32, %arg1: i32) -> (i32, i32) {
    %c0_i32 = arith.constant 0 : i32
    %c0_i32_0 = arith.constant 0 : i32
    %c0_i32_1 = arith.constant 0 : i32
    return %c0_i32, %c0_i32_0 : i32, i32
  }
  func.func @transform_4(%arg0: i32, %arg1: i32) -> (i32, i32) {
    %c0_i32 = arith.constant 0 : i32
    %c0_i32_0 = arith.constant 0 : i32
    %c0_i32_1 = arith.constant 0 : i32
    return %c0_i32, %c0_i32_0 : i32, i32
  }
  func.func @transform_5(%arg0: i32, %arg1: i32) -> (i32, i32) {
    %c0_i32 = arith.constant 0 : i32
    %c0_i32_0 = arith.constant 0 : i32
    %c0_i32_1 = arith.constant 0 : i32
    return %c0_i32, %c0_i32_0 : i32, i32
  }
  func.func @transform_6(%arg0: i32, %arg1: i32) -> (i32, i32) {
    %c0_i32 = arith.constant 0 : i32
    %c0_i32_0 = arith.constant 0 : i32
    %c0_i32_1 = arith.constant 0 : i32
    return %c0_i32, %c0_i32_0 : i32, i32
  }
  func.func @transform_7(%arg0: i32, %arg1: i32) -> (i32, i32) {
    %c0_i32 = arith.constant 0 : i32
    %c0_i32_0 = arith.constant 0 : i32
    %c0_i32_1 = arith.constant 0 : i32
    return %c0_i32, %c0_i32_0 : i32, i32
  }
  func.func @transform_8(%arg0: i32, %arg1: i32) -> (i32, i32, i32) {
    %c0_i32 = arith.constant 0 : i32
    %c0_i32_0 = arith.constant 0 : i32
    return %arg0, %arg1, %c0_i32 : i32, i32, i32
  }
  func.func @transform_9(%arg0: i32, %arg1: i32) -> (i32, i32, i32, i32) {
    %c0_i32 = arith.constant 0 : i32
    %c0_i32_0 = arith.constant 0 : i32
    %c0_i32_1 = arith.constant 0 : i32
    %c0_i32_2 = arith.constant 0 : i32
    return %arg0, %c0_i32, %c0_i32_0, %c0_i32_1 : i32, i32, i32, i32
  }
}

module attributes {stable_mosaic.version = 11 : i64} {
  func.func @kernel(%arg0: i32, %arg1: i32, %arg2: memref<1x64x128xbf16, #tpu.memory_space<vmem>>, %arg3: memref<1x2x8x128xf32, #tpu.memory_space<vmem>>, %arg4: memref<128x128xbf16, #tpu.memory_space<vmem>>, %arg5: memref<128x128xbf16, #tpu.memory_space<vmem>>, %arg6: memref<128x128xbf16, #tpu.memory_space<vmem>>, %arg7: memref<128x128xbf16, #tpu.memory_space<vmem>>, %arg8: memref<128x128xbf16, #tpu.memory_space<vmem>>, %arg9: memref<1x128xf32, #tpu.memory_space<vmem>>, %arg10: memref<1x64x128xbf16, #tpu.memory_space<vmem>>, %arg11: memref<1x2x8x128xf32, #tpu.memory_space<vmem>>, %arg12: memref<64x128xf32, #tpu.memory_space<vmem>>, %arg13: memref<64x128xf32, #tpu.memory_space<vmem>>, %arg14: memref<2x8x128xf32, #tpu.memory_space<vmem>>) attributes {dimension_semantics = [#tpu.dimension_semantics<parallel>, #tpu.dimension_semantics<arbitrary>], iteration_bounds = array<i64: 1, 1>, scalar_prefetch = 0 : i64, scratch_operands = 3 : i64, tpu.core_type = #tpu.core_type<tc>, window_params = [{transform_indices = @transform_0, window_bounds = array<i64: 1, 64, 128>}, {transform_indices = @transform_1, window_bounds = array<i64: 1, 2, 8, 128>}, {pipeline_mode = #tpu.pipeline_mode<synchronous>, transform_indices = @transform_2, window_bounds = array<i64: 128, 128>}, {pipeline_mode = #tpu.pipeline_mode<synchronous>, transform_indices = @transform_3, window_bounds = array<i64: 128, 128>}, {pipeline_mode = #tpu.pipeline_mode<synchronous>, transform_indices = @transform_4, window_bounds = array<i64: 128, 128>}, {pipeline_mode = #tpu.pipeline_mode<synchronous>, transform_indices = @transform_5, window_bounds = array<i64: 128, 128>}, {pipeline_mode = #tpu.pipeline_mode<synchronous>, transform_indices = @transform_6, window_bounds = array<i64: 128, 128>}, {pipeline_mode = #tpu.pipeline_mode<synchronous>, transform_indices = @transform_7, window_bounds = array<i64: 1, 128>}, {transform_indices = @transform_8, window_bounds = array<i64: 1, 64, 128>}, {transform_indices = @transform_9, window_bounds = array<i64: 1, 2, 8, 128>}]} {
    %c0_i32 = arith.constant 0 : i32
    %0 = arith.cmpi eq, %arg1, %c0_i32 : i32
    %1 = arith.extui %0 : i1 to i32
    %c0_i32_0 = arith.constant 0 : i32
    %2 = arith.cmpi ne, %1, %c0_i32_0 : i32
    scf.if %2 {
      %c0_127 = arith.constant 0 : index
      %c0_128 = arith.constant 0 : index
      %c0_129 = arith.constant 0 : index
      %c0_130 = arith.constant 0 : index
      %152 = vector.load %arg3[%c0_127, %c0_128, %c0_129, %c0_130] : memref<1x2x8x128xf32, #tpu.memory_space<vmem>>, vector<1x2x8x128xf32>
      %153 = vector.shape_cast %152 : vector<1x2x8x128xf32> to vector<2x8x128xf32>
      %c0_131 = arith.constant 0 : index
      %c0_132 = arith.constant 0 : index
      %c0_133 = arith.constant 0 : index
      %154 = vector.load %arg14[%c0_131, %c0_132, %c0_133] : memref<2x8x128xf32, #tpu.memory_space<vmem>>, vector<2x8x128xf32>
      tpu.vector_store %arg14[%c0_131, %c0_132, %c0_133], %153 {strides = array<i32>} : memref<2x8x128xf32, #tpu.memory_space<vmem>>, vector<2x8x128xf32>,
    } else {
    }
    %c0 = arith.constant 0 : index
    %c0_1 = arith.constant 0 : index
    %c0_2 = arith.constant 0 : index
    %3 = vector.load %arg2[%c0, %c0_1, %c0_2] : memref<1x64x128xbf16, #tpu.memory_space<vmem>>, vector<1x64x128xbf16>
    %4 = vector.shape_cast %3 : vector<1x64x128xbf16> to vector<64x128xbf16>
    %c0_3 = arith.constant 0 : index
    %c0_4 = arith.constant 0 : index
    %5 = vector.load %arg4[%c0_3, %c0_4] : memref<128x128xbf16, #tpu.memory_space<vmem>>, vector<128x128xbf16>
    %cst = arith.constant dense<0.000000e+00> : vector<64x128xf32>
    %6 = tpu.matmul %4, %5, %cst {dimension_numbers = #tpu.dot_dimension_numbers<[1], [0], [0], [1], [0, 0, 1, 1], [], []>} : vector<64x128xbf16>, vector<128x128xbf16>, vector<64x128xf32> -> vector<64x128xf32>
    %c0_5 = arith.constant 0 : index
    %c0_6 = arith.constant 0 : index
    %7 = vector.load %arg12[%c0_5, %c0_6] : memref<64x128xf32, #tpu.memory_space<vmem>>, vector<64x128xf32>
    tpu.vector_store %arg12[%c0_5, %c0_6], %6 {strides = array<i32>} : memref<64x128xf32, #tpu.memory_space<vmem>>, vector<64x128xf32>,
    %c0_7 = arith.constant 0 : index
    %c0_8 = arith.constant 0 : index
    %c0_9 = arith.constant 0 : index
    %8 = vector.load %arg14[%c0_7, %c0_8, %c0_9] : memref<2x8x128xf32, #tpu.memory_space<vmem>>, vector<1x8x128xf32>
    %9 = vector.shape_cast %8 : vector<1x8x128xf32> to vector<8x128xf32>
    %c1 = arith.constant 1 : index
    %c0_10 = arith.constant 0 : index
    %c0_11 = arith.constant 0 : index
    %10 = vector.load %arg14[%c1, %c0_10, %c0_11] : memref<2x8x128xf32, #tpu.memory_space<vmem>>, vector<1x8x128xf32>
    %11 = vector.shape_cast %10 : vector<1x8x128xf32> to vector<8x128xf32>
    %c0_12 = arith.constant 0 : index
    %c0_13 = arith.constant 0 : index
    %12 = vector.load %arg12[%c0_12, %c0_13] : memref<64x128xf32, #tpu.memory_space<vmem>>, vector<8x128xf32>
    %13 = arith.truncf %9 : vector<8x128xf32> to vector<8x128xbf16>
    %c0_14 = arith.constant 0 : index
    %c0_15 = arith.constant 0 : index
    %14 = vector.load %arg6[%c0_14, %c0_15] : memref<128x128xbf16, #tpu.memory_space<vmem>>, vector<128x128xbf16>
    %cst_16 = arith.constant dense<0.000000e+00> : vector<8x128xf32>
    %15 = tpu.matmul %13, %14, %cst_16 {dimension_numbers = #tpu.dot_dimension_numbers<[1], [0], [0], [1], [0, 0, 1, 1], [], []>} : vector<8x128xbf16>, vector<128x128xbf16>, vector<8x128xf32> -> vector<8x128xf32>
    %16 = arith.addf %12, %15 : vector<8x128xf32>
    %17 = math.tanh %16 : vector<8x128xf32>
    %18 = arith.truncf %17 : vector<8x128xf32> to vector<8x128xbf16>
    %c8 = arith.constant 8 : index
    %c0_17 = arith.constant 0 : index
    %19 = vector.load %arg12[%c8, %c0_17] : memref<64x128xf32, #tpu.memory_space<vmem>>, vector<8x128xf32>
    %20 = arith.truncf %17 : vector<8x128xf32> to vector<8x128xbf16>
    %c0_18 = arith.constant 0 : index
    %c0_19 = arith.constant 0 : index
    %21 = vector.load %arg6[%c0_18, %c0_19] : memref<128x128xbf16, #tpu.memory_space<vmem>>, vector<128x128xbf16>
    %cst_20 = arith.constant dense<0.000000e+00> : vector<8x128xf32>
    %22 = tpu.matmul %20, %21, %cst_20 {dimension_numbers = #tpu.dot_dimension_numbers<[1], [0], [0], [1], [0, 0, 1, 1], [], []>} : vector<8x128xbf16>, vector<128x128xbf16>, vector<8x128xf32> -> vector<8x128xf32>
    %23 = arith.addf %19, %22 : vector<8x128xf32>
    %24 = math.tanh %23 : vector<8x128xf32>
    %25 = arith.truncf %24 : vector<8x128xf32> to vector<8x128xbf16>
    %c0_21 = arith.constant 0 : index
    %c0_22 = arith.constant 0 : index
    %26 = vector.load %arg5[%c0_21, %c0_22] : memref<128x128xbf16, #tpu.memory_space<vmem>>, vector<128x128xbf16>
    %cst_23 = arith.constant dense<0.000000e+00> : vector<8x128xf32>
    %27 = tpu.matmul %18, %26, %cst_23 {dimension_numbers = #tpu.dot_dimension_numbers<[1], [0], [0], [1], [0, 0, 1, 1], [], []>} : vector<8x128xbf16>, vector<128x128xbf16>, vector<8x128xf32> -> vector<8x128xf32>
    %28 = arith.truncf %11 : vector<8x128xf32> to vector<8x128xbf16>
    %c0_24 = arith.constant 0 : index
    %c0_25 = arith.constant 0 : index
    %29 = vector.load %arg7[%c0_24, %c0_25] : memref<128x128xbf16, #tpu.memory_space<vmem>>, vector<128x128xbf16>
    %cst_26 = arith.constant dense<0.000000e+00> : vector<8x128xf32>
    %30 = tpu.matmul %28, %29, %cst_26 {dimension_numbers = #tpu.dot_dimension_numbers<[1], [0], [0], [1], [0, 0, 1, 1], [], []>} : vector<8x128xbf16>, vector<128x128xbf16>, vector<8x128xf32> -> vector<8x128xf32>
    %31 = arith.addf %27, %30 : vector<8x128xf32>
    %32 = math.tanh %31 : vector<8x128xf32>
    %c0_27 = arith.constant 0 : index
    %c0_28 = arith.constant 0 : index
    %33 = vector.load %arg13[%c0_27, %c0_28] : memref<64x128xf32, #tpu.memory_space<vmem>>, vector<8x128xf32>
    tpu.vector_store %arg13[%c0_27, %c0_28], %32 {strides = array<i32>} : memref<64x128xf32, #tpu.memory_space<vmem>>, vector<8x128xf32>,
    %c16 = arith.constant 16 : index
    %c0_29 = arith.constant 0 : index
    %34 = vector.load %arg12[%c16, %c0_29] : memref<64x128xf32, #tpu.memory_space<vmem>>, vector<8x128xf32>
    %35 = arith.truncf %24 : vector<8x128xf32> to vector<8x128xbf16>
    %c0_30 = arith.constant 0 : index
    %c0_31 = arith.constant 0 : index
    %36 = vector.load %arg6[%c0_30, %c0_31] : memref<128x128xbf16, #tpu.memory_space<vmem>>, vector<128x128xbf16>
    %cst_32 = arith.constant dense<0.000000e+00> : vector<8x128xf32>
    %37 = tpu.matmul %35, %36, %cst_32 {dimension_numbers = #tpu.dot_dimension_numbers<[1], [0], [0], [1], [0, 0, 1, 1], [], []>} : vector<8x128xbf16>, vector<128x128xbf16>, vector<8x128xf32> -> vector<8x128xf32>
    %38 = arith.addf %34, %37 : vector<8x128xf32>
    %39 = math.tanh %38 : vector<8x128xf32>
    %40 = arith.truncf %39 : vector<8x128xf32> to vector<8x128xbf16>
    %c0_33 = arith.constant 0 : index
    %c0_34 = arith.constant 0 : index
    %41 = vector.load %arg5[%c0_33, %c0_34] : memref<128x128xbf16, #tpu.memory_space<vmem>>, vector<128x128xbf16>
    %cst_35 = arith.constant dense<0.000000e+00> : vector<8x128xf32>
    %42 = tpu.matmul %25, %41, %cst_35 {dimension_numbers = #tpu.dot_dimension_numbers<[1], [0], [0], [1], [0, 0, 1, 1], [], []>} : vector<8x128xbf16>, vector<128x128xbf16>, vector<8x128xf32> -> vector<8x128xf32>
    %43 = arith.truncf %32 : vector<8x128xf32> to vector<8x128xbf16>
    %c0_36 = arith.constant 0 : index
    %c0_37 = arith.constant 0 : index
    %44 = vector.load %arg7[%c0_36, %c0_37] : memref<128x128xbf16, #tpu.memory_space<vmem>>, vector<128x128xbf16>
    %cst_38 = arith.constant dense<0.000000e+00> : vector<8x128xf32>
    %45 = tpu.matmul %43, %44, %cst_38 {dimension_numbers = #tpu.dot_dimension_numbers<[1], [0], [0], [1], [0, 0, 1, 1], [], []>} : vector<8x128xbf16>, vector<128x128xbf16>, vector<8x128xf32> -> vector<8x128xf32>
    %46 = arith.addf %42, %45 : vector<8x128xf32>
    %47 = math.tanh %46 : vector<8x128xf32>
    %c8_39 = arith.constant 8 : index
    %c0_40 = arith.constant 0 : index
    %48 = vector.load %arg13[%c8_39, %c0_40] : memref<64x128xf32, #tpu.memory_space<vmem>>, vector<8x128xf32>
    tpu.vector_store %arg13[%c8_39, %c0_40], %47 {strides = array<i32>} : memref<64x128xf32, #tpu.memory_space<vmem>>, vector<8x128xf32>,
    %c24 = arith.constant 24 : index
    %c0_41 = arith.constant 0 : index
    %49 = vector.load %arg12[%c24, %c0_41] : memref<64x128xf32, #tpu.memory_space<vmem>>, vector<8x128xf32>
    %50 = arith.truncf %39 : vector<8x128xf32> to vector<8x128xbf16>
    %c0_42 = arith.constant 0 : index
    %c0_43 = arith.constant 0 : index
    %51 = vector.load %arg6[%c0_42, %c0_43] : memref<128x128xbf16, #tpu.memory_space<vmem>>, vector<128x128xbf16>
    %cst_44 = arith.constant dense<0.000000e+00> : vector<8x128xf32>
    %52 = tpu.matmul %50, %51, %cst_44 {dimension_numbers = #tpu.dot_dimension_numbers<[1], [0], [0], [1], [0, 0, 1, 1], [], []>} : vector<8x128xbf16>, vector<128x128xbf16>, vector<8x128xf32> -> vector<8x128xf32>
    %53 = arith.addf %49, %52 : vector<8x128xf32>
    %54 = math.tanh %53 : vector<8x128xf32>
    %55 = arith.truncf %54 : vector<8x128xf32> to vector<8x128xbf16>
    %c0_45 = arith.constant 0 : index
    %c0_46 = arith.constant 0 : index
    %56 = vector.load %arg5[%c0_45, %c0_46] : memref<128x128xbf16, #tpu.memory_space<vmem>>, vector<128x128xbf16>
    %cst_47 = arith.constant dense<0.000000e+00> : vector<8x128xf32>
    %57 = tpu.matmul %40, %56, %cst_47 {dimension_numbers = #tpu.dot_dimension_numbers<[1], [0], [0], [1], [0, 0, 1, 1], [], []>} : vector<8x128xbf16>, vector<128x128xbf16>, vector<8x128xf32> -> vector<8x128xf32>
    %58 = arith.truncf %47 : vector<8x128xf32> to vector<8x128xbf16>
    %c0_48 = arith.constant 0 : index
    %c0_49 = arith.constant 0 : index
    %59 = vector.load %arg7[%c0_48, %c0_49] : memref<128x128xbf16, #tpu.memory_space<vmem>>, vector<128x128xbf16>
    %cst_50 = arith.constant dense<0.000000e+00> : vector<8x128xf32>
    %60 = tpu.matmul %58, %59, %cst_50 {dimension_numbers = #tpu.dot_dimension_numbers<[1], [0], [0], [1], [0, 0, 1, 1], [], []>} : vector<8x128xbf16>, vector<128x128xbf16>, vector<8x128xf32> -> vector<8x128xf32>
    %61 = arith.addf %57, %60 : vector<8x128xf32>
    %62 = math.tanh %61 : vector<8x128xf32>
    %c16_51 = arith.constant 16 : index
    %c0_52 = arith.constant 0 : index
    %63 = vector.load %arg13[%c16_51, %c0_52] : memref<64x128xf32, #tpu.memory_space<vmem>>, vector<8x128xf32>
    tpu.vector_store %arg13[%c16_51, %c0_52], %62 {strides = array<i32>} : memref<64x128xf32, #tpu.memory_space<vmem>>, vector<8x128xf32>,
    %c32 = arith.constant 32 : index
    %c0_53 = arith.constant 0 : index
    %64 = vector.load %arg12[%c32, %c0_53] : memref<64x128xf32, #tpu.memory_space<vmem>>, vector<8x128xf32>
    %65 = arith.truncf %54 : vector<8x128xf32> to vector<8x128xbf16>
    %c0_54 = arith.constant 0 : index
    %c0_55 = arith.constant 0 : index
    %66 = vector.load %arg6[%c0_54, %c0_55] : memref<128x128xbf16, #tpu.memory_space<vmem>>, vector<128x128xbf16>
    %cst_56 = arith.constant dense<0.000000e+00> : vector<8x128xf32>
    %67 = tpu.matmul %65, %66, %cst_56 {dimension_numbers = #tpu.dot_dimension_numbers<[1], [0], [0], [1], [0, 0, 1, 1], [], []>} : vector<8x128xbf16>, vector<128x128xbf16>, vector<8x128xf32> -> vector<8x128xf32>
    %68 = arith.addf %64, %67 : vector<8x128xf32>
    %69 = math.tanh %68 : vector<8x128xf32>
    %70 = arith.truncf %69 : vector<8x128xf32> to vector<8x128xbf16>
    %c0_57 = arith.constant 0 : index
    %c0_58 = arith.constant 0 : index
    %71 = vector.load %arg5[%c0_57, %c0_58] : memref<128x128xbf16, #tpu.memory_space<vmem>>, vector<128x128xbf16>
    %cst_59 = arith.constant dense<0.000000e+00> : vector<8x128xf32>
    %72 = tpu.matmul %55, %71, %cst_59 {dimension_numbers = #tpu.dot_dimension_numbers<[1], [0], [0], [1], [0, 0, 1, 1], [], []>} : vector<8x128xbf16>, vector<128x128xbf16>, vector<8x128xf32> -> vector<8x128xf32>
    %73 = arith.truncf %62 : vector<8x128xf32> to vector<8x128xbf16>
    %c0_60 = arith.constant 0 : index
    %c0_61 = arith.constant 0 : index
    %74 = vector.load %arg7[%c0_60, %c0_61] : memref<128x128xbf16, #tpu.memory_space<vmem>>, vector<128x128xbf16>
    %cst_62 = arith.constant dense<0.000000e+00> : vector<8x128xf32>
    %75 = tpu.matmul %73, %74, %cst_62 {dimension_numbers = #tpu.dot_dimension_numbers<[1], [0], [0], [1], [0, 0, 1, 1], [], []>} : vector<8x128xbf16>, vector<128x128xbf16>, vector<8x128xf32> -> vector<8x128xf32>
    %76 = arith.addf %72, %75 : vector<8x128xf32>
    %77 = math.tanh %76 : vector<8x128xf32>
    %c24_63 = arith.constant 24 : index
    %c0_64 = arith.constant 0 : index
    %78 = vector.load %arg13[%c24_63, %c0_64] : memref<64x128xf32, #tpu.memory_space<vmem>>, vector<8x128xf32>
    tpu.vector_store %arg13[%c24_63, %c0_64], %77 {strides = array<i32>} : memref<64x128xf32, #tpu.memory_space<vmem>>, vector<8x128xf32>,
    %c40 = arith.constant 40 : index
    %c0_65 = arith.constant 0 : index
    %79 = vector.load %arg12[%c40, %c0_65] : memref<64x128xf32, #tpu.memory_space<vmem>>, vector<8x128xf32>
    %80 = arith.truncf %69 : vector<8x128xf32> to vector<8x128xbf16>
    %c0_66 = arith.constant 0 : index
    %c0_67 = arith.constant 0 : index
    %81 = vector.load %arg6[%c0_66, %c0_67] : memref<128x128xbf16, #tpu.memory_space<vmem>>, vector<128x128xbf16>
    %cst_68 = arith.constant dense<0.000000e+00> : vector<8x128xf32>
    %82 = tpu.matmul %80, %81, %cst_68 {dimension_numbers = #tpu.dot_dimension_numbers<[1], [0], [0], [1], [0, 0, 1, 1], [], []>} : vector<8x128xbf16>, vector<128x128xbf16>, vector<8x128xf32> -> vector<8x128xf32>
    %83 = arith.addf %79, %82 : vector<8x128xf32>
    %84 = math.tanh %83 : vector<8x128xf32>
    %85 = arith.truncf %84 : vector<8x128xf32> to vector<8x128xbf16>
    %c0_69 = arith.constant 0 : index
    %c0_70 = arith.constant 0 : index
    %86 = vector.load %arg5[%c0_69, %c0_70] : memref<128x128xbf16, #tpu.memory_space<vmem>>, vector<128x128xbf16>
    %cst_71 = arith.constant dense<0.000000e+00> : vector<8x128xf32>
    %87 = tpu.matmul %70, %86, %cst_71 {dimension_numbers = #tpu.dot_dimension_numbers<[1], [0], [0], [1], [0, 0, 1, 1], [], []>} : vector<8x128xbf16>, vector<128x128xbf16>, vector<8x128xf32> -> vector<8x128xf32>
    %88 = arith.truncf %77 : vector<8x128xf32> to vector<8x128xbf16>
    %c0_72 = arith.constant 0 : index
    %c0_73 = arith.constant 0 : index
    %89 = vector.load %arg7[%c0_72, %c0_73] : memref<128x128xbf16, #tpu.memory_space<vmem>>, vector<128x128xbf16>
    %cst_74 = arith.constant dense<0.000000e+00> : vector<8x128xf32>
    %90 = tpu.matmul %88, %89, %cst_74 {dimension_numbers = #tpu.dot_dimension_numbers<[1], [0], [0], [1], [0, 0, 1, 1], [], []>} : vector<8x128xbf16>, vector<128x128xbf16>, vector<8x128xf32> -> vector<8x128xf32>
    %91 = arith.addf %87, %90 : vector<8x128xf32>
    %92 = math.tanh %91 : vector<8x128xf32>
    %c32_75 = arith.constant 32 : index
    %c0_76 = arith.constant 0 : index
    %93 = vector.load %arg13[%c32_75, %c0_76] : memref<64x128xf32, #tpu.memory_space<vmem>>, vector<8x128xf32>
    tpu.vector_store %arg13[%c32_75, %c0_76], %92 {strides = array<i32>} : memref<64x128xf32, #tpu.memory_space<vmem>>, vector<8x128xf32>,
    %c48 = arith.constant 48 : index
    %c0_77 = arith.constant 0 : index
    %94 = vector.load %arg12[%c48, %c0_77] : memref<64x128xf32, #tpu.memory_space<vmem>>, vector<8x128xf32>
    %95 = arith.truncf %84 : vector<8x128xf32> to vector<8x128xbf16>
    %c0_78 = arith.constant 0 : index
    %c0_79 = arith.constant 0 : index
    %96 = vector.load %arg6[%c0_78, %c0_79] : memref<128x128xbf16, #tpu.memory_space<vmem>>, vector<128x128xbf16>
    %cst_80 = arith.constant dense<0.000000e+00> : vector<8x128xf32>
    %97 = tpu.matmul %95, %96, %cst_80 {dimension_numbers = #tpu.dot_dimension_numbers<[1], [0], [0], [1], [0, 0, 1, 1], [], []>} : vector<8x128xbf16>, vector<128x128xbf16>, vector<8x128xf32> -> vector<8x128xf32>
    %98 = arith.addf %94, %97 : vector<8x128xf32>
    %99 = math.tanh %98 : vector<8x128xf32>
    %100 = arith.truncf %99 : vector<8x128xf32> to vector<8x128xbf16>
    %c0_81 = arith.constant 0 : index
    %c0_82 = arith.constant 0 : index
    %101 = vector.load %arg5[%c0_81, %c0_82] : memref<128x128xbf16, #tpu.memory_space<vmem>>, vector<128x128xbf16>
    %cst_83 = arith.constant dense<0.000000e+00> : vector<8x128xf32>
    %102 = tpu.matmul %85, %101, %cst_83 {dimension_numbers = #tpu.dot_dimension_numbers<[1], [0], [0], [1], [0, 0, 1, 1], [], []>} : vector<8x128xbf16>, vector<128x128xbf16>, vector<8x128xf32> -> vector<8x128xf32>
    %103 = arith.truncf %92 : vector<8x128xf32> to vector<8x128xbf16>
    %c0_84 = arith.constant 0 : index
    %c0_85 = arith.constant 0 : index
    %104 = vector.load %arg7[%c0_84, %c0_85] : memref<128x128xbf16, #tpu.memory_space<vmem>>, vector<128x128xbf16>
    %cst_86 = arith.constant dense<0.000000e+00> : vector<8x128xf32>
    %105 = tpu.matmul %103, %104, %cst_86 {dimension_numbers = #tpu.dot_dimension_numbers<[1], [0], [0], [1], [0, 0, 1, 1], [], []>} : vector<8x128xbf16>, vector<128x128xbf16>, vector<8x128xf32> -> vector<8x128xf32>
    %106 = arith.addf %102, %105 : vector<8x128xf32>
    %107 = math.tanh %106 : vector<8x128xf32>
    %c40_87 = arith.constant 40 : index
    %c0_88 = arith.constant 0 : index
    %108 = vector.load %arg13[%c40_87, %c0_88] : memref<64x128xf32, #tpu.memory_space<vmem>>, vector<8x128xf32>
    tpu.vector_store %arg13[%c40_87, %c0_88], %107 {strides = array<i32>} : memref<64x128xf32, #tpu.memory_space<vmem>>, vector<8x128xf32>,
    %c56 = arith.constant 56 : index
    %c0_89 = arith.constant 0 : index
    %109 = vector.load %arg12[%c56, %c0_89] : memref<64x128xf32, #tpu.memory_space<vmem>>, vector<8x128xf32>
    %110 = arith.truncf %99 : vector<8x128xf32> to vector<8x128xbf16>
    %c0_90 = arith.constant 0 : index
    %c0_91 = arith.constant 0 : index
    %111 = vector.load %arg6[%c0_90, %c0_91] : memref<128x128xbf16, #tpu.memory_space<vmem>>, vector<128x128xbf16>
    %cst_92 = arith.constant dense<0.000000e+00> : vector<8x128xf32>
    %112 = tpu.matmul %110, %111, %cst_92 {dimension_numbers = #tpu.dot_dimension_numbers<[1], [0], [0], [1], [0, 0, 1, 1], [], []>} : vector<8x128xbf16>, vector<128x128xbf16>, vector<8x128xf32> -> vector<8x128xf32>
    %113 = arith.addf %109, %112 : vector<8x128xf32>
    %114 = math.tanh %113 : vector<8x128xf32>
    %115 = arith.truncf %114 : vector<8x128xf32> to vector<8x128xbf16>
    %c0_93 = arith.constant 0 : index
    %c0_94 = arith.constant 0 : index
    %116 = vector.load %arg5[%c0_93, %c0_94] : memref<128x128xbf16, #tpu.memory_space<vmem>>, vector<128x128xbf16>
    %cst_95 = arith.constant dense<0.000000e+00> : vector<8x128xf32>
    %117 = tpu.matmul %100, %116, %cst_95 {dimension_numbers = #tpu.dot_dimension_numbers<[1], [0], [0], [1], [0, 0, 1, 1], [], []>} : vector<8x128xbf16>, vector<128x128xbf16>, vector<8x128xf32> -> vector<8x128xf32>
    %118 = arith.truncf %107 : vector<8x128xf32> to vector<8x128xbf16>
    %c0_96 = arith.constant 0 : index
    %c0_97 = arith.constant 0 : index
    %119 = vector.load %arg7[%c0_96, %c0_97] : memref<128x128xbf16, #tpu.memory_space<vmem>>, vector<128x128xbf16>
    %cst_98 = arith.constant dense<0.000000e+00> : vector<8x128xf32>
    %120 = tpu.matmul %118, %119, %cst_98 {dimension_numbers = #tpu.dot_dimension_numbers<[1], [0], [0], [1], [0, 0, 1, 1], [], []>} : vector<8x128xbf16>, vector<128x128xbf16>, vector<8x128xf32> -> vector<8x128xf32>
    %121 = arith.addf %117, %120 : vector<8x128xf32>
    %122 = math.tanh %121 : vector<8x128xf32>
    %c48_99 = arith.constant 48 : index
    %c0_100 = arith.constant 0 : index
    %123 = vector.load %arg13[%c48_99, %c0_100] : memref<64x128xf32, #tpu.memory_space<vmem>>, vector<8x128xf32>
    tpu.vector_store %arg13[%c48_99, %c0_100], %122 {strides = array<i32>} : memref<64x128xf32, #tpu.memory_space<vmem>>, vector<8x128xf32>,
    %c0_101 = arith.constant 0 : index
    %c0_102 = arith.constant 0 : index
    %124 = vector.load %arg5[%c0_101, %c0_102] : memref<128x128xbf16, #tpu.memory_space<vmem>>, vector<128x128xbf16>
    %cst_103 = arith.constant dense<0.000000e+00> : vector<8x128xf32>
    %125 = tpu.matmul %115, %124, %cst_103 {dimension_numbers = #tpu.dot_dimension_numbers<[1], [0], [0], [1], [0, 0, 1, 1], [], []>} : vector<8x128xbf16>, vector<128x128xbf16>, vector<8x128xf32> -> vector<8x128xf32>
    %126 = arith.truncf %122 : vector<8x128xf32> to vector<8x128xbf16>
    %c0_104 = arith.constant 0 : index
    %c0_105 = arith.constant 0 : index
    %127 = vector.load %arg7[%c0_104, %c0_105] : memref<128x128xbf16, #tpu.memory_space<vmem>>, vector<128x128xbf16>
    %cst_106 = arith.constant dense<0.000000e+00> : vector<8x128xf32>
    %128 = tpu.matmul %126, %127, %cst_106 {dimension_numbers = #tpu.dot_dimension_numbers<[1], [0], [0], [1], [0, 0, 1, 1], [], []>} : vector<8x128xbf16>, vector<128x128xbf16>, vector<8x128xf32> -> vector<8x128xf32>
    %129 = arith.addf %125, %128 : vector<8x128xf32>
    %130 = math.tanh %129 : vector<8x128xf32>
    %c56_107 = arith.constant 56 : index
    %c0_108 = arith.constant 0 : index
    %131 = vector.load %arg13[%c56_107, %c0_108] : memref<64x128xf32, #tpu.memory_space<vmem>>, vector<8x128xf32>
    tpu.vector_store %arg13[%c56_107, %c0_108], %130 {strides = array<i32>} : memref<64x128xf32, #tpu.memory_space<vmem>>, vector<8x128xf32>,
    %c0_109 = arith.constant 0 : index
    %c0_110 = arith.constant 0 : index
    %c0_111 = arith.constant 0 : index
    %132 = vector.load %arg14[%c0_109, %c0_110, %c0_111] : memref<2x8x128xf32, #tpu.memory_space<vmem>>, vector<1x8x128xf32>
    %133 = vector.shape_cast %132 : vector<1x8x128xf32> to vector<8x128xf32>
    %134 = vector.shape_cast %114 : vector<8x128xf32> to vector<1x8x128xf32>
    tpu.vector_store %arg14[%c0_109, %c0_110, %c0_111], %134 {strides = array<i32>} : memref<2x8x128xf32, #tpu.memory_space<vmem>>, vector<1x8x128xf32>,
    %c1_112 = arith.constant 1 : index
    %c0_113 = arith.constant 0 : index
    %c0_114 = arith.constant 0 : index
    %135 = vector.load %arg14[%c1_112, %c0_113, %c0_114] : memref<2x8x128xf32, #tpu.memory_space<vmem>>, vector<1x8x128xf32>
    %136 = vector.shape_cast %135 : vector<1x8x128xf32> to vector<8x128xf32>
    %137 = vector.shape_cast %130 : vector<8x128xf32> to vector<1x8x128xf32>
    tpu.vector_store %arg14[%c1_112, %c0_113, %c0_114], %137 {strides = array<i32>} : memref<2x8x128xf32, #tpu.memory_space<vmem>>, vector<1x8x128xf32>,
    %c0_115 = arith.constant 0 : index
    %c0_116 = arith.constant 0 : index
    %138 = vector.load %arg13[%c0_115, %c0_116] : memref<64x128xf32, #tpu.memory_space<vmem>>, vector<64x128xf32>
    %139 = arith.truncf %138 : vector<64x128xf32> to vector<64x128xbf16>
    %c0_117 = arith.constant 0 : index
    %c0_118 = arith.constant 0 : index
    %140 = vector.load %arg8[%c0_117, %c0_118] : memref<128x128xbf16, #tpu.memory_space<vmem>>, vector<128x128xbf16>
    %cst_119 = arith.constant dense<0.000000e+00> : vector<64x128xf32>
    %141 = tpu.matmul %139, %140, %cst_119 {dimension_numbers = #tpu.dot_dimension_numbers<[1], [0], [0], [1], [0, 0, 1, 1], [], []>} : vector<64x128xbf16>, vector<128x128xbf16>, vector<64x128xf32> -> vector<64x128xf32>
    %c0_120 = arith.constant 0 : index
    %c0_121 = arith.constant 0 : index
    %142 = vector.load %arg9[%c0_120, %c0_121] : memref<1x128xf32, #tpu.memory_space<vmem>>, vector<1x128xf32>
    %143 = vector.broadcast %142 : vector<1x128xf32> to vector<64x128xf32>
    %144 = arith.addf %141, %143 : vector<64x128xf32>
    %145 = arith.truncf %144 : vector<64x128xf32> to vector<64x128xbf16>
    %c0_122 = arith.constant 0 : index
    %c0_123 = arith.constant 0 : index
    %c0_124 = arith.constant 0 : index
    %146 = vector.load %arg10[%c0_122, %c0_123, %c0_124] : memref<1x64x128xbf16, #tpu.memory_space<vmem>>, vector<1x64x128xbf16>
    %147 = vector.shape_cast %146 : vector<1x64x128xbf16> to vector<64x128xbf16>
    %148 = vector.shape_cast %145 : vector<64x128xbf16> to vector<1x64x128xbf16>
    tpu.vector_store %arg10[%c0_122, %c0_123, %c0_124], %148 {strides = array<i32>} : memref<1x64x128xbf16, #tpu.memory_space<vmem>>, vector<1x64x128xbf16>,
    %c0_i32_125 = arith.constant 0 : i32
    %149 = arith.cmpi eq, %arg1, %c0_i32_125 : i32
    %150 = arith.extui %149 : i1 to i32
    %c0_i32_126 = arith.constant 0 : i32
    %151 = arith.cmpi ne, %150, %c0_i32_126 : i32
    scf.if %151 {
      %c0_127 = arith.constant 0 : index
      %c0_128 = arith.constant 0 : index
      %c0_129 = arith.constant 0 : index
      %152 = vector.load %arg14[%c0_127, %c0_128, %c0_129] : memref<2x8x128xf32, #tpu.memory_space<vmem>>, vector<2x8x128xf32>
      %c0_130 = arith.constant 0 : index
      %c0_131 = arith.constant 0 : index
      %c0_132 = arith.constant 0 : index
      %c0_133 = arith.constant 0 : index
      %153 = vector.load %arg11[%c0_130, %c0_131, %c0_132, %c0_133] : memref<1x2x8x128xf32, #tpu.memory_space<vmem>>, vector<1x2x8x128xf32>
      %154 = vector.shape_cast %153 : vector<1x2x8x128xf32> to vector<2x8x128xf32>
      %155 = vector.shape_cast %152 : vector<2x8x128xf32> to vector<1x2x8x128xf32>
      tpu.vector_store %arg11[%c0_130, %c0_131, %c0_132, %c0_133], %155 {strides = array<i32>} : memref<1x2x8x128xf32, #tpu.memory_space<vmem>>, vector<1x2x8x128xf32>,
    } else {
    }
    return
  }
  func.func @transform_0(%arg0: i32, %arg1: i32) -> (i32, i32, i32) {
    %c0_i32 = arith.constant 0 : i32
    %c0_i32_0 = arith.constant 0 : i32
    return %arg0, %arg1, %c0_i32 : i32, i32, i32
  }
  func.func @transform_1(%arg0: i32, %arg1: i32) -> (i32, i32, i32, i32) {
    %c0_i32 = arith.constant 0 : i32
    %c0_i32_0 = arith.constant 0 : i32
    %c0_i32_1 = arith.constant 0 : i32
    %c0_i32_2 = arith.constant 0 : i32
    return %arg0, %c0_i32, %c0_i32_0, %c0_i32_1 : i32, i32, i32, i32
  }
  func.func @transform_2(%arg0: i32, %arg1: i32) -> (i32, i32) {
    %c0_i32 = arith.constant 0 : i32
    %c0_i32_0 = arith.constant 0 : i32
    %c0_i32_1 = arith.constant 0 : i32
    return %c0_i32, %c0_i32_0 : i32, i32
  }
  func.func @transform_3(%arg0: i32, %arg1: i32) -> (i32, i32) {
    %c0_i32 = arith.constant 0 : i32
    %c0_i32_0 = arith.constant 0 : i32
    %c0_i32_1 = arith.constant 0 : i32
    return %c0_i32, %c0_i32_0 : i32, i32
  }
  func.func @transform_4(%arg0: i32, %arg1: i32) -> (i32, i32) {
    %c0_i32 = arith.constant 0 : i32
    %c0_i32_0 = arith.constant 0 : i32
    %c0_i32_1 = arith.constant 0 : i32
    return %c0_i32, %c0_i32_0 : i32, i32
  }
  func.func @transform_5(%arg0: i32, %arg1: i32) -> (i32, i32) {
    %c0_i32 = arith.constant 0 : i32
    %c0_i32_0 = arith.constant 0 : i32
    %c0_i32_1 = arith.constant 0 : i32
    return %c0_i32, %c0_i32_0 : i32, i32
  }
  func.func @transform_6(%arg0: i32, %arg1: i32) -> (i32, i32) {
    %c0_i32 = arith.constant 0 : i32
    %c0_i32_0 = arith.constant 0 : i32
    %c0_i32_1 = arith.constant 0 : i32
    return %c0_i32, %c0_i32_0 : i32, i32
  }
  func.func @transform_7(%arg0: i32, %arg1: i32) -> (i32, i32) {
    %c0_i32 = arith.constant 0 : i32
    %c0_i32_0 = arith.constant 0 : i32
    %c0_i32_1 = arith.constant 0 : i32
    return %c0_i32, %c0_i32_0 : i32, i32
  }
  func.func @transform_8(%arg0: i32, %arg1: i32) -> (i32, i32, i32) {
    %c0_i32 = arith.constant 0 : i32
    %c0_i32_0 = arith.constant 0 : i32
    return %arg0, %arg1, %c0_i32 : i32, i32, i32
  }
  func.func @transform_9(%arg0: i32, %arg1: i32) -> (i32, i32, i32, i32) {
    %c0_i32 = arith.constant 0 : i32
    %c0_i32_0 = arith.constant 0 : i32
    %c0_i32_1 = arith.constant 0 : i32
    %c0_i32_2 = arith.constant 0 : i32
    return %arg0, %c0_i32, %c0_i32_0, %c0_i32_1 : i32, i32, i32, i32
  }
}

</mosaic_0001>

<bundles_post_ra>
// kernel: tpu_custom_call.1
= control target key start
LH: loop header
LB: loop body
LE: loop exit
PB: predicated region body
PF: predicated region fallthrough
CT: control target
= control target key end

     0   :  { %15 = vsyncpa [#allocation6], 0  ;;  %s4713_s0 = inlined_call_operand.vmem [shape: bf16[1,64,16], index: 0, kind: input, shape index: {}]   ;;  %s4714_s1 = inlined_call_operand.vmem [shape: f32[1,2,8,128], index: 1, kind: input, shape index: {}]   ;;  %s4715_s2 = inlined_call_operand.vmem [shape: bf16[16,128], index: 2, kind: input, shape index: {}]   ;;  %s4716_s3 = inlined_call_operand.hbm [shape: bf16[128,128], index: 3, kind: input, shape index: {}]   ;;  %s4717_s4 = inlined_call_operand.hbm [shape: bf16[128,128], index: 4, kind: input, shape index: {}]   ;;  %s4718_s5 = inlined_call_operand.hbm [shape: bf16[128,128], index: 5, kind: input, shape index: {}]   ;;  %s4719_s6 = inlined_call_operand.hbm [shape: bf16[128,128], index: 6, kind: input, shape index: {}]   ;;  %s4720_s7 = inlined_call_operand.vmem [shape: f32[1,128], index: 7, kind: input, shape index: {}]   ;;  %s4721_s8 = inlined_call_operand.hbm [shape: bf16[1,64,128], index: 8, kind: output, shape index: {0}]   ;;  %s4722_s9 = inlined_call_operand.hbm [shape: f32[1,2,8,128], index: 9, kind: output, shape index: {1}]  }
   0x1   :  { %16 = vsyncpa [#allocation9], 0 }
   0x2   :  { %17 = vsyncpa [#allocation12], 0 }
   0x3   :  { %18 = vsyncpa [#allocation7], 0 }
   0x4   :  { %19 = vsyncpa [#allocation15], 0  ;;  %s4302_s30 = smov [#allocation8]   ;;  %s4303_s11 = smov [#allocation5]  }
   0x5   :  { %s43_s10 = sshll.u32 %s4302_s30, 4  ;;  %s31_s12 = sshll.u32 %s4303_s11, 4  ;;  %s44_s10 = int_to_ptr.vmem [resolvable:$true] %s43_s10  ;;  %s32_s12 = int_to_ptr.vmem [resolvable:$true] %s31_s12 }
   0x6   :  { %s4180_s13 = scalar_lea.vmem %s44_s10, 1024  ;;  %p4185_p1 = scmp.lt.s32.totalorder %s44_s10, %s44_s10 }
   0x7   :  { %p4181_p0 = scmp.ne.s32.totalorder %s44_s10, %s4180_s13  ;;  %p4186_p2 = scmp.lt.s32.totalorder %s4180_s13, %s4180_s13 }
   0x9   :  { %p4187_p3 = por %p4186_p2, %p4185_p1 }
   0xb   :  { %p4188_p4 = pnand %p4187_p3, %p4181_p0 }
   0xd   :  { %4191 = shalt.err (!%p4188_p4)
}
   0xe   :  { %s4304_s14 = smov 64   ;;  %s4305_s15 = smov 4  }
   0xf   :  { %49 = dma.hbm_to_vmem [thread:$0]  %s4717_s4, 1024, %s44_s10, [#allocation9], %s4304_s14, %s4304_s14, %s4305_s15  }
  0x10   :  { %s4200_s18 = scalar_lea.vmem %s32_s12, 1024  ;;  %p4205_p6 = scmp.lt.s32.totalorder %s32_s12, %s32_s12 }
  0x11   :  { %p4201_p5 = scmp.ne.s32.totalorder %s32_s12, %s4200_s18  ;;  %p4206_p7 = scmp.lt.s32.totalorder %s4200_s18, %s4200_s18 }
  0x13   :  { %p4207_p8 = por %p4206_p7, %p4205_p6 }
  0x15   :  { %p4208_p9 = pnand %p4207_p8, %p4201_p5 }
  0x17   :  { %4211 = shalt.err (!%p4208_p9)
}
  0x18   :  { %37 = dma.hbm_to_vmem [thread:$0]  %s4716_s3, 1024, %s32_s12, [#allocation6], %s4304_s14, %s4304_s14, %s4305_s15  }
  0x19   :  { %s4306_s21 = smov [#allocation10]   ;;  %s4307_s23 = smov [#allocation11]  }
  0x1a   :  { %s55_s22 = sshll.u32 %s4306_s21, 4  ;;  %s67_s24 = sshll.u32 %s4307_s23, 4  ;;  %s56_s22 = int_to_ptr.vmem [resolvable:$true] %s55_s22  ;;  %s68_s24 = int_to_ptr.vmem [resolvable:$true] %s67_s24 }
  0x1b   :  { %s4220_s4 = scalar_lea.vmem %s56_s22, 1024  ;;  %p4225_p11 = scmp.lt.s32.totalorder %s56_s22, %s56_s22 }
  0x1c   :  { %p4221_p10 = scmp.ne.s32.totalorder %s56_s22, %s4220_s4  ;;  %p4226_p12 = scmp.lt.s32.totalorder %s4220_s4, %s4220_s4 }
  0x1e   :  { %p4227_p13 = por %p4226_p12, %p4225_p11 }
  0x20   :  { %p4228_p0 = pnand %p4227_p13, %p4221_p10 }
  0x22   :  { %4231 = shalt.err (!%p4228_p0)
}
  0x23   :  { %61 = dma.hbm_to_vmem [thread:$0]  %s4718_s5, 1024, %s56_s22, [#allocation9], %s4304_s14, %s4304_s14, %s4305_s15  }
  0x24   :  { %s4240_s3 = scalar_lea.vmem %s68_s24, 1024  ;;  %p4245_p2 = scmp.lt.s32.totalorder %s68_s24, %s68_s24 }
  0x25   :  { %p4241_p1 = scmp.ne.s32.totalorder %s68_s24, %s4240_s3  ;;  %p4246_p3 = scmp.lt.s32.totalorder %s4240_s3, %s4240_s3 }
  0x27   :  { %p4247_p4 = por %p4246_p3, %p4245_p2 }
  0x29   :  { %p4248_p5 = pnand %p4247_p4, %p4241_p1 }
  0x2b   :  { %4251 = shalt.err (!%p4248_p5)
}
  0x2c   :  { %73 = dma.hbm_to_vmem [thread:$0]  %s4719_s6, 1024, %s68_s24, [#allocation12], %s4304_s14, %s4304_s14, %s4305_s15  }
  0x2d   :  { %4292 = dma.done.wait [#allocation6], 1024  }
  0x2e   :  { %4293 = vsyncadd [#allocation6], 4294966272 }
  0x2f   :  { %4294 = dma.done.wait [#allocation9], 2048  }
  0x30   :  { %4295 = vsyncadd [#allocation9], 4294965248 }
  0x31   :  { %4296 = dma.done.wait [#allocation12], 1024  }
  0x32   :  { %4297 = vsyncadd [#allocation12], 4294966272  ;;  %v4308_v0 = vmov 0.0   ;;  %vm4309_vm0 = vmmov 0   ;;  %v3943_v1 = vld [vmem:[#allocation8 + $0x38] sm:$0xff]   ;;  %v3944_v2 = vld [vmem:[#allocation8 + $0x30] sm:$0xff]  }
  0x33   :  { %3427 = vmatprep.subr.bf16.mxu0 %v4308_v0  ;;  %3443 = vmatprep.mubr.msk.bf16.mxu0 %vm4309_vm0, %v4308_v0  ;;  %v3948_v3 = vld [vmem:[%s4715_s2] sm:$0xff]   ;;  %v3945_v4 = vld [vmem:[#allocation8 + $0x28] sm:$0xff]   ;;  %vm133_vm1 = vcmask 130048   ;;  %v3947_v8 = vld [vmem:[#allocation8 + $0x18] sm:$0xff]   ;;  %s4310_s21 = smov [#allocation14]  }
  0x34   :  { %3428 = vmatpush3.bf16.msra.mxu0 %v3943_v1  ;;  %3417 = vmatprep.subr.bf16.mxu1 %v3948_v3  ;;  %v3950_v5 = vld [vmem:[%s4713_s0] sm:$0xff]   ;;  %v3951_v6 = vld [vmem:[%s4713_s0 + $0x8] sm:$0xff]   ;;  %v3949_v9 = vld [vmem:[#allocation8 + $0x10] sm:$0xff]   ;;  %s2925_s22 = sshll.u32 %s4310_s21, 4  ;;  %s2926_s22 = int_to_ptr.vmem [resolvable:$true] %s2925_s22 }
  0x35   :  { %3429 = vmatprep.subr.bf16.mxu0 %v4308_v0  ;;  %3418 = vmatpush3.bf16.msra.mxu1 %v3948_v3  ;;  %v3946_v7 = vld [vmem:[#allocation8 + $0x20] sm:$0xff]   ;;  %v3952_v10 = vld [vmem:[#allocation8 + $0x8] sm:$0xff]   ;;  %v3954_v14 = vld [vmem:[#allocation10 + $0x38] sm:$0xff]   ;;  %s4252_s23 = scalar_lea.vmem %s2926_s22, 256  ;;  %p4257_p7 = scmp.lt.s32.totalorder %s2926_s22, %s2926_s22 }
  0x36   :  { %3419 = vmatprep.mubr.msk.bf16.mxu1 %vm133_vm1, %v3950_v5  ;;  %3467 = vmatprep.subr.bf16.mxu1 %v4308_v0  ;;  %v3953_v11 = vld [vmem:[#allocation8] sm:$0xff]   ;;  %v3955_v15 = vld [vmem:[#allocation10 + $0x30] sm:$0xff]   ;;  %v3957_v16 = vld [vmem:[#allocation10 + $0x28] sm:$0xff]   ;;  %p4253_p6 = scmp.ne.s32.totalorder %s2926_s22, %s4252_s23  ;;  %p4258_p8 = scmp.lt.s32.totalorder %s4252_s23, %s4252_s23 }
  0x37   :  { %v93_v12 = vld [vmem:[%s4714_s1] sm:$0xff]  ;;  %v3961_v18 = vld [vmem:[#allocation10 + $0x18] sm:$0xff]   ;;  %v3963_v19 = vld [vmem:[#allocation10 + $0x10] sm:$0xff]  }
  0x38   :  { %3430 = vmatpush3.bf16.msra.mxu0 %v3944_v2  ;;  %3420 = vmatmul.mubr.msk.bf16.vlgmr.msra.gmra.mxu1 %vm133_vm1, %v3951_v6  ;;  %v223_v13 = vpack.c.bf16 %v93_v12, %v93_v12  ;;  %v3959_v17 = vld [vmem:[#allocation10 + $0x20] sm:$0xff]   ;;  %v3964_v20 = vld [vmem:[%s4713_s0 + $0x10] sm:$0xff]   ;;  %v3966_v21 = vld [vmem:[%s4713_s0 + $0x18] sm:$0xff]   ;;  %p4259_p9 = por %p4258_p8, %p4257_p7 }
  0x39   :  { %3431 = vmatprep.subr.bf16.mxu0 %v4308_v0  ;;  %3468 = vmatpush3.bf16.msra.mxu1 %v3954_v14  ;;  %v3967_v22 = vld [vmem:[#allocation10 + $0x8] sm:$0xff]   ;;  %v3969_v23 = vld [vmem:[#allocation10] sm:$0xff]   ;;  %v3972_v26 = vld [vmem:[#allocation8 + $0x38] sm:$0xff]  }
  0x3a   :  { %3469 = vmatprep.subr.bf16.mxu1 %v4308_v0  ;;  %3423 = vmatprep.mubr.msk.bf16.mxu1 %vm133_vm1, %v3964_v20  ;;  %v94_v24 = vld [vmem:[%s4714_s1 + $0x8] sm:$0xff]  ;;  %v3973_v27 = vld [vmem:[#allocation8 + $0x30] sm:$0xff]   ;;  %v3975_v29 = vld [vmem:[#allocation8 + $0x20] sm:$0xff]   ;;  %p4260_p10 = pnand %p4259_p9, %p4253_p6 }
  0x3b   :  { %v391_v25 = vpack.c.bf16 %v94_v24, %v94_v24  ;;  %v3974_v28 = vld [vmem:[#allocation8 + $0x28] sm:$0xff]   ;;  %v3956_v38 = vld [vmem:[#allocation5 + $0x38] sm:$0xff]   ;;  %v3958_v40 = vld [vmem:[#allocation5 + $0x30] sm:$0xff]  }
  0x3c   :  { %3432 = vmatpush3.bf16.msra.mxu0 %v3945_v4  ;;  %v3960_v41 = vld [vmem:[#allocation5 + $0x28] sm:$0xff]   ;;  %v3962_v42 = vld [vmem:[#allocation5 + $0x20] sm:$0xff]   ;;  %v3965_v43 = vld [vmem:[#allocation5 + $0x18] sm:$0xff]  }
  0x3d   :  { %3433 = vmatprep.subr.bf16.mxu0 %v4308_v0  ;;  %3470 = vmatpush3.bf16.msra.mxu1 %v3955_v15  ;;  %v3968_v44 = vld [vmem:[#allocation5 + $0x10] sm:$0xff]   ;;  %v3970_v45 = vld [vmem:[#allocation5 + $0x8] sm:$0xff]   ;;  %v3971_v46 = vld [vmem:[#allocation5] sm:$0xff]  }
  0x3e   :  { %3471 = vmatprep.subr.bf16.mxu1 %v4308_v0  ;;  %v3976_v47 = vld [vmem:[#allocation8 + $0x18] sm:$0xff]   ;;  %v3977_v48 = vld [vmem:[#allocation8 + $0x10] sm:$0xff]   ;;  %v3978_v49 = vld [vmem:[#allocation8 + $0x8] sm:$0xff]  }
  0x3f   :  { %v3979_v51 = vld [vmem:[#allocation8] sm:$0xff]   ;;  %v3980_v54 = vld [vmem:[#allocation10 + $0x38] sm:$0xff]   ;;  %v3982_v56 = vld [vmem:[#allocation10 + $0x30] sm:$0xff]  }
  0x40   :  { %3434 = vmatpush3.bf16.msra.mxu0 %v3946_v7  ;;  %3424 = vmatmul.mubr.msk.bf16.gmra.mxu1 %vm133_vm1, %v3966_v21  ;;  %v3984_v59 = vld [vmem:[#allocation10 + $0x28] sm:$0xff]   ;;  %v3986_v63 = vld [vmem:[#allocation10 + $0x20] sm:$0xff]   ;;  %v3990_v3 = vld [vmem:[#allocation10 + $0x10] sm:$0xff]  }
  0x41   :  { %3435 = vmatprep.subr.bf16.mxu0 %v4308_v0  ;;  %3472 = vmatpush3.bf16.msra.mxu1 %v3957_v16  ;;  %v3994_v5 = vld [vmem:[#allocation10] sm:$0xff]   ;;  %v3981_v12 = vld [vmem:[#allocation5 + $0x38] sm:$0xff]   ;;  %v3983_v14 = vld [vmem:[#allocation5 + $0x30] sm:$0xff]  }
  0x42   :  { %3473 = vmatprep.subr.bf16.mxu1 %v4308_v0  ;;  %3483 = vmatprep.mubr.msk.bf16.mxu1 %vm4309_vm0, %v4308_v0  ;;  %v3985_v15 = vld [vmem:[#allocation5 + $0x28] sm:$0xff]   ;;  %v3987_v16 = vld [vmem:[#allocation5 + $0x20] sm:$0xff]  }
  0x43   :  { %v3993_v24 = vld [vmem:[#allocation5 + $0x8] sm:$0xff]  }
  0x44   :  { %3436 = vmatpush3.bf16.msra.mxu0 %v3947_v8 }
  0x45   :  { %3437 = vmatprep.subr.bf16.mxu0 %v4308_v0  ;;  %3474 = vmatpush3.bf16.msra.mxu1 %v3959_v17 }
  0x46   :  { %3475 = vmatprep.subr.bf16.mxu1 %v4308_v0 }
  0x48   :  { %3438 = vmatpush3.bf16.msra.mxu0 %v3949_v9 }
  0x49   :  { %3439 = vmatprep.subr.bf16.mxu0 %v4308_v0  ;;  %3476 = vmatpush3.bf16.msra.mxu1 %v3961_v18  ;;  %v3989_v18 = vld [vmem:[#allocation5 + $0x18] sm:$0xff]  }
  0x4a   :  { %3477 = vmatprep.subr.bf16.mxu1 %v4308_v0 }
  0x4c   :  { %3440 = vmatpush3.bf16.msra.mxu0 %v3952_v10 }
  0x4d   :  { %3441 = vmatprep.subr.bf16.mxu0 %v4308_v0  ;;  %3478 = vmatpush3.bf16.msra.mxu1 %v3963_v19 }
  0x4e   :  { %3479 = vmatprep.subr.bf16.mxu1 %v4308_v0 }
  0x50   :  { %3442 = vmatpush3.bf16.msra.mxu0 %v3953_v11 }
  0x51   :  { %3447 = vmatprep.subr.bf16.mxu0 %v4308_v0  ;;  %3480 = vmatpush3.bf16.msra.mxu1 %v3967_v22  ;;  %v3991_v22 = vld [vmem:[#allocation5 + $0x10] sm:$0xff]  }
  0x52   :  { %3481 = vmatprep.subr.bf16.mxu1 %v4308_v0 }
  0x53   :  { %3444 = vmatmul.mubr.bf16.vlgmr.msra.gmra.mxu0 %v223_v13 }
  0x54   :  { %3448 = vmatpush3.bf16.msra.mxu0 %v3943_v1  ;;  %3463 = vmatprep.mubr.msk.bf16.mxu0 %vm4309_vm0, %v4308_v0 }
  0x55   :  { %3449 = vmatprep.subr.bf16.mxu0 %v4308_v0  ;;  %3482 = vmatpush3.bf16.msra.mxu1 %v3969_v23 }
  0x56   :  { %3507 = vmatprep.subr.bf16.mxu1 %v4308_v0 }
  0x58   :  { %3450 = vmatpush3.bf16.msra.mxu0 %v3944_v2  ;;  %3484 = vmatmul.mubr.bf16.vlgmr.msra.gmra.mxu1 %v391_v25  ;;  %v3988_v2 = vld [vmem:[#allocation10 + $0x18] sm:$0xff]   ;;  %v3995_v25 = vld [vmem:[#allocation5] sm:$0xff]  }
  0x59   :  { %3451 = vmatprep.subr.bf16.mxu0 %v4308_v0  ;;  %3523 = vmatprep.mubr.msk.bf16.mxu1 %vm4309_vm0, %v4308_v0 }
  0x5a   :  { %3508 = vmatpush3.bf16.msra.mxu1 %v3972_v26 }
  0x5b   :  { %3509 = vmatprep.subr.bf16.mxu1 %v4308_v0 }
  0x5c   :  { %3452 = vmatpush3.bf16.msra.mxu0 %v3945_v4  ;;  %v3992_v4 = vld [vmem:[#allocation10 + $0x8] sm:$0xff]  }
  0x5d   :  { %3453 = vmatprep.subr.bf16.mxu0 %v4308_v0 }
  0x5e   :  { %3510 = vmatpush3.bf16.msra.mxu1 %v3973_v27  ;;  %v3996_v27 = vld [vmem:[#allocation8 + $0x38] sm:$0xff]  }
  0x5f   :  { %3511 = vmatprep.subr.bf16.mxu1 %v4308_v0 }
  0x60   :  { %3454 = vmatpush3.bf16.msra.mxu0 %v3946_v7 }
  0x61   :  { %3455 = vmatprep.subr.bf16.mxu0 %v4308_v0 }
  0x62   :  { %3512 = vmatpush3.bf16.msra.mxu1 %v3974_v28 }
  0x63   :  { %3513 = vmatprep.subr.bf16.mxu1 %v4308_v0 }
  0x64   :  { %3456 = vmatpush3.bf16.msra.mxu0 %v3947_v8 }
  0x65   :  { %3457 = vmatprep.subr.bf16.mxu0 %v4308_v0 }
  0x66   :  { %3514 = vmatpush3.bf16.msra.mxu1 %v3975_v29  ;;  %v3997_v29 = vld [vmem:[#allocation8 + $0x30] sm:$0xff]  }
  0x67   :  { %3515 = vmatprep.subr.bf16.mxu1 %v4308_v0 }
  0x68   :  { %3458 = vmatpush3.bf16.msra.mxu0 %v3949_v9 }
  0x69   :  { %3459 = vmatprep.subr.bf16.mxu0 %v4308_v0 }
  0x6a   :  { %3516 = vmatpush3.bf16.msra.mxu1 %v3976_v47 }
  0x6b   :  { %3517 = vmatprep.subr.bf16.mxu1 %v4308_v0 }
  0x6c   :  { %3460 = vmatpush3.bf16.msra.mxu0 %v3952_v10 }
  0x6d   :  { %3461 = vmatprep.subr.bf16.mxu0 %v4308_v0 }
  0x6e   :  { %3518 = vmatpush3.bf16.msra.mxu1 %v3977_v48 }
  0x6f   :  { %3519 = vmatprep.subr.bf16.mxu1 %v4308_v0 }
  0x70   :  { %3462 = vmatpush3.bf16.msra.mxu0 %v3953_v11 }
  0x71   :  { %3487 = vmatprep.subr.bf16.mxu0 %v4308_v0 }
  0x72   :  { %3520 = vmatpush3.bf16.msra.mxu1 %v3978_v49 }
  0x73   :  { %3521 = vmatprep.subr.bf16.mxu1 %v4308_v0 }
  0x76   :  { %3522 = vmatpush3.bf16.msra.mxu1 %v3979_v51 }
  0x77   :  { %3547 = vmatprep.subr.bf16.mxu1 %v4308_v0 }
  0xf8   :  { %v4451_v30 = vpop.f32.mrf.mxu1 }
  0xfa   :  { %v180_v31 = vpop.f32.mrf.mxu1 }
  0xfc   :  { %v4467_v50 = vpop.f32.mrf.mxu1 }
  0xfe   :  { %v183_v52 = vpop.f32.mrf.mxu1 }
 0x100   :  { %v4471_v53 = vpop.f32.mrf.mxu1 }
 0x102   :  { %v4473_v55 = vpop.f32.mrf.mxu1 }
 0x104   :  { %v4476_v57 = vpop.f32.mrf.mxu1 }
 0x106   :  { %v4478_v58 = vpop.f32.mrf.mxu1 }
 0x113   :  { %v322_v32 = vpop.f32.mrf.mxu0 }
 0x114   :  { %v328_v33 = vadd.f32 %v322_v32, %v180_v31  ;;  %v3998_v31 = vld [vmem:[#allocation8 + $0x28] sm:$0xff]   ;;  %v3999_v32 = vld [vmem:[#allocation8 + $0x20] sm:$0xff]  }
 0x115   :  { %v3445_v34 = vpop.f32.mrf.mxu0 }
 0x116   :  { %4140 = vtanh.f32 %v328_v33  ;;  %v4000_v33 = vld [vmem:[#allocation8 + $0x18] sm:$0xff]   ;;  %v4001_v34 = vld [vmem:[#allocation8 + $0x10] sm:$0xff]  }
 0x117   :  { %v325_v35 = vpop.f32.mrf.mxu0 }
 0x118   :  { %v490_v60 = vpop.f32.mrf.mxu1  ;;  %v4002_v35 = vld [vmem:[#allocation8 + $0x8] sm:$0xff]  }
 0x119   :  { %v3446_v36 = vpop.f32.mrf.mxu0 }
 0x11a   :  { %v3485_v61 = vpop.f32.mrf.mxu1  ;;  %v4003_v36 = vld [vmem:[#allocation8] sm:$0xff]  }
 0x11c   :  { %v493_v62 = vpop.f32.mrf.mxu1 }
 0x11d   :  { %v4013_v62 = vld [vmem:[#allocation5 + $0x18] sm:$0xff]  }
 0x11e   :  { %v3486_v1 = vpop.f32.mrf.mxu1 }
 0x123   :  { %v4141_v37 = vpop.eup %4140 }
 0x124   :  { %v330_v39 = vpack.c.bf16 %v4141_v37, %v4141_v37  ;;  %v4004_v37 = vld [vmem:[#allocation10 + $0x38] sm:$0xff]  }
 0x126   :  { %3464 = vmatmul.mubr.bf16.vlgmr.msra.gmra.mxu0 %v330_v39 }
 0x127   :  { %3488 = vmatpush3.bf16.msra.mxu0 %v3956_v38  ;;  %3503 = vmatprep.mubr.msk.bf16.mxu0 %vm4309_vm0, %v4308_v0  ;;  %v4006_v38 = vld [vmem:[#allocation10 + $0x30] sm:$0xff]  }
 0x128   :  { %3489 = vmatprep.subr.bf16.mxu0 %v4308_v0 }
 0x12b   :  { %3490 = vmatpush3.bf16.msra.mxu0 %v3958_v40  ;;  %v4010_v40 = vld [vmem:[#allocation10 + $0x20] sm:$0xff]  }
 0x12c   :  { %3491 = vmatprep.subr.bf16.mxu0 %v4308_v0 }
 0x12f   :  { %3492 = vmatpush3.bf16.msra.mxu0 %v3960_v41  ;;  %v4012_v41 = vld [vmem:[#allocation10 + $0x18] sm:$0xff]  }
 0x130   :  { %3493 = vmatprep.subr.bf16.mxu0 %v4308_v0 }
 0x133   :  { %3494 = vmatpush3.bf16.msra.mxu0 %v3962_v42  ;;  %v4014_v42 = vld [vmem:[#allocation10 + $0x10] sm:$0xff]  }
 0x134   :  { %3495 = vmatprep.subr.bf16.mxu0 %v4308_v0 }
 0x137   :  { %3496 = vmatpush3.bf16.msra.mxu0 %v3965_v43  ;;  %v4016_v43 = vld [vmem:[#allocation10 + $0x8] sm:$0xff]  }
 0x138   :  { %3497 = vmatprep.subr.bf16.mxu0 %v4308_v0 }
 0x13b   :  { %3498 = vmatpush3.bf16.msra.mxu0 %v3968_v44  ;;  %v4018_v44 = vld [vmem:[#allocation10] sm:$0xff]  }
 0x13c   :  { %3499 = vmatprep.subr.bf16.mxu0 %v4308_v0 }
 0x13f   :  { %3500 = vmatpush3.bf16.msra.mxu0 %v3970_v45 }
 0x140   :  { %3501 = vmatprep.subr.bf16.mxu0 %v4308_v0 }
 0x143   :  { %3502 = vmatpush3.bf16.msra.mxu0 %v3971_v46 }
 0x144   :  { %3527 = vmatprep.subr.bf16.mxu0 %v4308_v0 }
 0x146   :  { %3504 = vmatmul.mubr.bf16.vlgmr.msra.gmra.mxu0 %v330_v39  ;;  %v4008_v39 = vld [vmem:[#allocation10 + $0x28] sm:$0xff]  }
 0x147   :  { %3543 = vmatprep.mubr.msk.bf16.mxu0 %vm4309_vm0, %v4308_v0  ;;  %3528 = vmatpush3.bf16.msra.mxu0 %v3980_v54 }
 0x148   :  { %3529 = vmatprep.subr.bf16.mxu0 %v4308_v0 }
 0x14b   :  { %3530 = vmatpush3.bf16.msra.mxu0 %v3982_v56  ;;  %v4007_v56 = vld [vmem:[#allocation5 + $0x30] sm:$0xff]  }
 0x14c   :  { %3531 = vmatprep.subr.bf16.mxu0 %v4308_v0 }
 0x14f   :  { %3532 = vmatpush3.bf16.msra.mxu0 %v3984_v59  ;;  %v4009_v59 = vld [vmem:[#allocation5 + $0x28] sm:$0xff]  }
 0x150   :  { %3533 = vmatprep.subr.bf16.mxu0 %v4308_v0 }
 0x153   :  { %3534 = vmatpush3.bf16.msra.mxu0 %v3986_v63 }
 0x154   :  { %3535 = vmatprep.subr.bf16.mxu0 %v4308_v0 }
 0x157   :  { %3536 = vmatpush3.bf16.msra.mxu0 %v3988_v2 }
 0x158   :  { %3537 = vmatprep.subr.bf16.mxu0 %v4308_v0 }
 0x15b   :  { %3538 = vmatpush3.bf16.msra.mxu0 %v3990_v3 }
 0x15c   :  { %3539 = vmatprep.subr.bf16.mxu0 %v4308_v0 }
 0x15f   :  { %3540 = vmatpush3.bf16.msra.mxu0 %v3992_v4 }
 0x160   :  { %3541 = vmatprep.subr.bf16.mxu0 %v4308_v0 }
 0x163   :  { %3542 = vmatpush3.bf16.msra.mxu0 %v3994_v5  ;;  %v4015_v5 = vld [vmem:[#allocation5 + $0x10] sm:$0xff]  }
 0x164   :  { %3567 = vmatprep.subr.bf16.mxu0 %v4308_v0 }
 0x1e6   :  { %v366_v6 = vpop.f32.mrf.mxu0 }
 0x1e7   :  { %v372_v7 = vadd.f32 %v366_v6, %v183_v52  ;;  %v4005_v52 = vld [vmem:[#allocation5 + $0x38] sm:$0xff]  }
 0x1e8   :  { %v3465_v8 = vpop.f32.mrf.mxu0 }
 0x1e9   :  { %4142 = vtanh.f32 %v372_v7  ;;  %v4017_v8 = vld [vmem:[#allocation5 + $0x8] sm:$0xff]  }
 0x1ea   :  { %v369_v9 = vpop.f32.mrf.mxu0 }
 0x1eb   :  { %v4019_v9 = vld [vmem:[#allocation5] sm:$0xff]  }
 0x1ec   :  { %v3466_v10 = vpop.f32.mrf.mxu0 }
 0x1f6   :  { %v4143_v11 = vpop.eup %4142 }
 0x1f7   :  { %v374_v13 = vpack.c.bf16 %v4143_v11, %v4143_v11  ;;  %v4020_v11 = vld [vmem:[#allocation8 + $0x38] sm:$0xff]  }
 0x1f9   :  { %3524 = vmatmul.mubr.bf16.vlgmr.msra.gmra.mxu1 %v374_v13 }
 0x1fa   :  { %3548 = vmatpush3.bf16.msra.mxu1 %v3981_v12  ;;  %3563 = vmatprep.mubr.msk.bf16.mxu1 %vm4309_vm0, %v4308_v0 }
 0x1fb   :  { %3549 = vmatprep.subr.bf16.mxu1 %v4308_v0 }
 0x1fe   :  { %3550 = vmatpush3.bf16.msra.mxu1 %v3983_v14  ;;  %v4022_v14 = vld [vmem:[#allocation8 + $0x28] sm:$0xff]  }
 0x1ff   :  { %3551 = vmatprep.subr.bf16.mxu1 %v4308_v0 }
 0x202   :  { %3552 = vmatpush3.bf16.msra.mxu1 %v3985_v15  ;;  %v4023_v15 = vld [vmem:[#allocation8 + $0x20] sm:$0xff]  }
 0x203   :  { %3553 = vmatprep.subr.bf16.mxu1 %v4308_v0 }
 0x206   :  { %v578_v17 = vpop.f32.mrf.mxu0  ;;  %3554 = vmatpush3.bf16.msra.mxu1 %v3987_v16  ;;  %v4024_v16 = vld [vmem:[#allocation8 + $0x18] sm:$0xff]  }
 0x207   :  { %v579_v19 = vadd.f32 %v578_v17, %v490_v60  ;;  %3555 = vmatprep.subr.bf16.mxu1 %v4308_v0  ;;  %v4025_v17 = vld [vmem:[#allocation8 + $0x10] sm:$0xff]  }
 0x208   :  { %v3505_v20 = vpop.f32.mrf.mxu0 }
 0x209   :  { %4144 = vtanh.f32 %v579_v19  ;;  %v4027_v19 = vld [vmem:[#allocation8] sm:$0xff]   ;;  %v4028_v20 = vld [vmem:[#allocation10 + $0x38] sm:$0xff]  }
 0x20a   :  { %v581_v21 = vpop.f32.mrf.mxu0  ;;  %3556 = vmatpush3.bf16.msra.mxu1 %v3989_v18  ;;  %v4026_v18 = vld [vmem:[#allocation8 + $0x8] sm:$0xff]  }
 0x20b   :  { %3557 = vmatprep.subr.bf16.mxu1 %v4308_v0  ;;  %v4030_v21 = vld [vmem:[#allocation10 + $0x30] sm:$0xff]  }
 0x20c   :  { %v3506_v23 = vpop.f32.mrf.mxu0 }
 0x20d   :  { %v4034_v23 = vld [vmem:[#allocation10 + $0x20] sm:$0xff]  }
 0x20e   :  { %3558 = vmatpush3.bf16.msra.mxu1 %v3991_v22  ;;  %v4032_v22 = vld [vmem:[#allocation10 + $0x28] sm:$0xff]  }
 0x20f   :  { %3559 = vmatprep.subr.bf16.mxu1 %v4308_v0 }
 0x212   :  { %3560 = vmatpush3.bf16.msra.mxu1 %v3993_v24  ;;  %v4036_v24 = vld [vmem:[#allocation10 + $0x18] sm:$0xff]  }
 0x213   :  { %3561 = vmatprep.subr.bf16.mxu1 %v4308_v0 }
 0x216   :  { %v4496_v26 = vpop.eup %4144  ;;  %3562 = vmatpush3.bf16.msra.mxu1 %v3995_v25  ;;  %v4038_v25 = vld [vmem:[#allocation10 + $0x10] sm:$0xff]  }
 0x217   :  { %v710_v28 = vpack.c.bf16 %v4496_v26, %v4496_v26  ;;  %3587 = vmatprep.subr.bf16.mxu1 %v4308_v0 }
 0x219   :  { %3544 = vmatmul.mubr.bf16.vlgmr.msra.gmra.mxu0 %v710_v28  ;;  %3564 = vmatmul.mubr.bf16.vlgmr.msra.gmra.mxu1 %v374_v13  ;;  %v4021_v13 = vld [vmem:[#allocation8 + $0x30] sm:$0xff]   ;;  %v4042_v28 = vld [vmem:[#allocation10] sm:$0xff]  }
 0x21a   :  { %3568 = vmatpush3.bf16.msra.mxu0 %v3996_v27  ;;  %3583 = vmatprep.mubr.msk.bf16.mxu0 %vm4309_vm0, %v4308_v0  ;;  %v4040_v27 = vld [vmem:[#allocation10 + $0x8] sm:$0xff]  }
 0x21b   :  { %3569 = vmatprep.subr.bf16.mxu0 %v4308_v0  ;;  %3603 = vmatprep.mubr.msk.bf16.mxu1 %vm4309_vm0, %v4308_v0 }
 0x21c   :  { %3588 = vmatpush3.bf16.msra.mxu1 %v4004_v37 }
 0x21d   :  { %3589 = vmatprep.subr.bf16.mxu1 %v4308_v0 }
 0x21e   :  { %3570 = vmatpush3.bf16.msra.mxu0 %v3997_v29 }
 0x21f   :  { %3571 = vmatprep.subr.bf16.mxu0 %v4308_v0 }
 0x220   :  { %3590 = vmatpush3.bf16.msra.mxu1 %v4006_v38  ;;  %v4031_v38 = vld [vmem:[#allocation5 + $0x30] sm:$0xff]  }
 0x221   :  { %3591 = vmatprep.subr.bf16.mxu1 %v4308_v0 }
 0x222   :  { %3572 = vmatpush3.bf16.msra.mxu0 %v3998_v31 }
 0x223   :  { %3573 = vmatprep.subr.bf16.mxu0 %v4308_v0 }
 0x224   :  { %3592 = vmatpush3.bf16.msra.mxu1 %v4008_v39  ;;  %v4033_v39 = vld [vmem:[#allocation5 + $0x28] sm:$0xff]  }
 0x225   :  { %3593 = vmatprep.subr.bf16.mxu1 %v4308_v0 }
 0x226   :  { %3574 = vmatpush3.bf16.msra.mxu0 %v3999_v32 }
 0x227   :  { %3575 = vmatprep.subr.bf16.mxu0 %v4308_v0 }
 0x228   :  { %3594 = vmatpush3.bf16.msra.mxu1 %v4010_v40 }
 0x229   :  { %3595 = vmatprep.subr.bf16.mxu1 %v4308_v0 }
 0x22a   :  { %3576 = vmatpush3.bf16.msra.mxu0 %v4000_v33 }
 0x22b   :  { %3577 = vmatprep.subr.bf16.mxu0 %v4308_v0 }
 0x22c   :  { %3596 = vmatpush3.bf16.msra.mxu1 %v4012_v41 }
 0x22d   :  { %3597 = vmatprep.subr.bf16.mxu1 %v4308_v0 }
 0x22e   :  { %3578 = vmatpush3.bf16.msra.mxu0 %v4001_v34 }
 0x22f   :  { %3579 = vmatprep.subr.bf16.mxu0 %v4308_v0 }
 0x230   :  { %3598 = vmatpush3.bf16.msra.mxu1 %v4014_v42  ;;  %v4037_v42 = vld [vmem:[#allocation5 + $0x18] sm:$0xff]  }
 0x231   :  { %3599 = vmatprep.subr.bf16.mxu1 %v4308_v0 }
 0x232   :  { %3580 = vmatpush3.bf16.msra.mxu0 %v4002_v35 }
 0x233   :  { %3581 = vmatprep.subr.bf16.mxu0 %v4308_v0 }
 0x234   :  { %3600 = vmatpush3.bf16.msra.mxu1 %v4016_v43 }
 0x235   :  { %3601 = vmatprep.subr.bf16.mxu1 %v4308_v0 }
 0x236   :  { %3582 = vmatpush3.bf16.msra.mxu0 %v4003_v36  ;;  %v4029_v36 = vld [vmem:[#allocation5 + $0x38] sm:$0xff]  }
 0x237   :  { %3607 = vmatprep.subr.bf16.mxu0 %v4308_v0 }
 0x238   :  { %3602 = vmatpush3.bf16.msra.mxu1 %v4018_v44 }
 0x239   :  { %3627 = vmatprep.subr.bf16.mxu1 %v4308_v0 }
 0x2b9   :  { %v685_v45 = vpop.f32.mrf.mxu1 }
 0x2ba   :  { %v691_v46 = vadd.f32 %v4451_v30, %v685_v45  ;;  %v4011_v30 = vld [vmem:[#allocation5 + $0x20] sm:$0xff]  }
 0x2bb   :  { %v3525_v47 = vpop.f32.mrf.mxu1 }
 0x2bc   :  { %4146 = vtanh.f32 %v691_v46 }
 0x2bd   :  { %v688_v48 = vpop.f32.mrf.mxu1 }
 0x2be   :  { %v4039_v48 = vld [vmem:[#allocation5 + $0x10] sm:$0xff]  }
 0x2bf   :  { %v3526_v49 = vpop.f32.mrf.mxu1 }
 0x2c9   :  { %v4147_v51 = vpop.eup %4146 }
 0x2ca   :  { %v693_v54 = vpack.c.bf16 %v4147_v51, %v4147_v51 }
 0x2cc   :  { %3584 = vmatmul.mubr.bf16.vlgmr.msra.gmra.mxu0 %v693_v54 }
 0x2cd   :  { %3608 = vmatpush3.bf16.msra.mxu0 %v4005_v52  ;;  %3623 = vmatprep.mubr.msk.bf16.mxu0 %vm4309_vm0, %v4308_v0  ;;  %v4041_v52 = vld [vmem:[#allocation5 + $0x8] sm:$0xff]  }
 0x2ce   :  { %3609 = vmatprep.subr.bf16.mxu0 %v4308_v0 }
 0x2d1   :  { %3610 = vmatpush3.bf16.msra.mxu0 %v4007_v56 }
 0x2d2   :  { %3611 = vmatprep.subr.bf16.mxu0 %v4308_v0 }
 0x2d5   :  { %3612 = vmatpush3.bf16.msra.mxu0 %v4009_v59  ;;  %v4044_v59 = vld [vmem:[#allocation8 + $0x38] sm:$0xff]  }
 0x2d6   :  { %3613 = vmatprep.subr.bf16.mxu0 %v4308_v0 }
 0x2d9   :  { %v809_v60 = vpop.f32.mrf.mxu0  ;;  %v897_v61 = vpop.f32.mrf.mxu1  ;;  %3614 = vmatpush3.bf16.msra.mxu0 %v4011_v30 }
 0x2da   :  { %v898_v63 = vadd.f32 %v897_v61, %v809_v60  ;;  %3615 = vmatprep.subr.bf16.mxu0 %v4308_v0  ;;  %v4045_v60 = vld [vmem:[#allocation8 + $0x30] sm:$0xff]   ;;  %v4046_v61 = vld [vmem:[#allocation8 + $0x28] sm:$0xff]  }
 0x2db   :  { %v3545_v1 = vpop.f32.mrf.mxu0  ;;  %v3565_v2 = vpop.f32.mrf.mxu1 }
 0x2dc   :  { %4148 = vtanh.f32 %v898_v63  ;;  %v4048_v63 = vld [vmem:[#allocation8 + $0x18] sm:$0xff]   ;;  %v4049_v1 = vld [vmem:[#allocation8 + $0x10] sm:$0xff]   ;;  %v4050_v2 = vld [vmem:[#allocation8 + $0x8] sm:$0xff]  }
 0x2dd   :  { %v812_v3 = vpop.f32.mrf.mxu0  ;;  %v900_v4 = vpop.f32.mrf.mxu1  ;;  %3616 = vmatpush3.bf16.msra.mxu0 %v4013_v62  ;;  %v4047_v62 = vld [vmem:[#allocation8 + $0x20] sm:$0xff]  }
 0x2de   :  { %3617 = vmatprep.subr.bf16.mxu0 %v4308_v0  ;;  %v4051_v3 = vld [vmem:[#allocation8] sm:$0xff]   ;;  %v4052_v4 = vld [vmem:[#allocation10 + $0x38] sm:$0xff]  }
 0x2df   :  { %v3546_v6 = vpop.f32.mrf.mxu0  ;;  %v3566_v7 = vpop.f32.mrf.mxu1 }
 0x2e0   :  { %v4056_v6 = vld [vmem:[#allocation10 + $0x28] sm:$0xff]   ;;  %v4058_v7 = vld [vmem:[#allocation10 + $0x20] sm:$0xff]  }
 0x2e1   :  { %3618 = vmatpush3.bf16.msra.mxu0 %v4015_v5  ;;  %v4054_v5 = vld [vmem:[#allocation10 + $0x30] sm:$0xff]  }
 0x2e2   :  { %3619 = vmatprep.subr.bf16.mxu0 %v4308_v0 }
 0x2e5   :  { %3620 = vmatpush3.bf16.msra.mxu0 %v4017_v8  ;;  %v4060_v8 = vld [vmem:[#allocation10 + $0x18] sm:$0xff]  }
 0x2e6   :  { %3621 = vmatprep.subr.bf16.mxu0 %v4308_v0 }
 0x2e9   :  { %v4531_v10 = vpop.eup %4148  ;;  %3622 = vmatpush3.bf16.msra.mxu0 %v4019_v9  ;;  %v4062_v9 = vld [vmem:[#allocation10 + $0x10] sm:$0xff]  }
 0x2ea   :  { %v1029_v12 = vpack.c.bf16 %v4531_v10, %v4531_v10  ;;  %3647 = vmatprep.subr.bf16.mxu0 %v4308_v0 }
 0x2ec   :  { %3604 = vmatmul.mubr.bf16.vlgmr.msra.gmra.mxu1 %v1029_v12  ;;  %3624 = vmatmul.mubr.bf16.vlgmr.msra.gmra.mxu0 %v693_v54  ;;  %v4043_v54 = vld [vmem:[#allocation5] sm:$0xff]  }
 0x2ed   :  { %3628 = vmatpush3.bf16.msra.mxu1 %v4020_v11  ;;  %3643 = vmatprep.mubr.msk.bf16.mxu1 %vm4309_vm0, %v4308_v0  ;;  %v4064_v11 = vld [vmem:[#allocation10 + $0x8] sm:$0xff]   ;;  %v4066_v12 = vld [vmem:[#allocation10] sm:$0xff]  }
 0x2ee   :  { %3629 = vmatprep.subr.bf16.mxu1 %v4308_v0  ;;  %3663 = vmatprep.mubr.msk.bf16.mxu0 %vm4309_vm0, %v4308_v0 }
 0x2ef   :  { %3648 = vmatpush3.bf16.msra.mxu0 %v4028_v20 }
 0x2f0   :  { %3649 = vmatprep.subr.bf16.mxu0 %v4308_v0 }
 0x2f1   :  { %3630 = vmatpush3.bf16.msra.mxu1 %v4021_v13 }
 0x2f2   :  { %3631 = vmatprep.subr.bf16.mxu1 %v4308_v0 }
 0x2f3   :  { %3650 = vmatpush3.bf16.msra.mxu0 %v4030_v21  ;;  %v4055_v21 = vld [vmem:[#allocation5 + $0x30] sm:$0xff]  }
 0x2f4   :  { %3651 = vmatprep.subr.bf16.mxu0 %v4308_v0 }
 0x2f5   :  { %3632 = vmatpush3.bf16.msra.mxu1 %v4022_v14 }
 0x2f6   :  { %3633 = vmatprep.subr.bf16.mxu1 %v4308_v0 }
 0x2f7   :  { %3652 = vmatpush3.bf16.msra.mxu0 %v4032_v22  ;;  %v4057_v22 = vld [vmem:[#allocation5 + $0x28] sm:$0xff]  }
 0x2f8   :  { %3653 = vmatprep.subr.bf16.mxu0 %v4308_v0 }
 0x2f9   :  { %3634 = vmatpush3.bf16.msra.mxu1 %v4023_v15 }
 0x2fa   :  { %3635 = vmatprep.subr.bf16.mxu1 %v4308_v0 }
 0x2fb   :  { %3654 = vmatpush3.bf16.msra.mxu0 %v4034_v23 }
 0x2fc   :  { %3655 = vmatprep.subr.bf16.mxu0 %v4308_v0 }
 0x2fd   :  { %3636 = vmatpush3.bf16.msra.mxu1 %v4024_v16 }
 0x2fe   :  { %3637 = vmatprep.subr.bf16.mxu1 %v4308_v0 }
 0x2ff   :  { %3656 = vmatpush3.bf16.msra.mxu0 %v4036_v24 }
 0x300   :  { %3657 = vmatprep.subr.bf16.mxu0 %v4308_v0 }
 0x301   :  { %3638 = vmatpush3.bf16.msra.mxu1 %v4025_v17 }
 0x302   :  { %3639 = vmatprep.subr.bf16.mxu1 %v4308_v0 }
 0x303   :  { %3658 = vmatpush3.bf16.msra.mxu0 %v4038_v25  ;;  %v4061_v25 = vld [vmem:[#allocation5 + $0x18] sm:$0xff]  }
 0x304   :  { %3659 = vmatprep.subr.bf16.mxu0 %v4308_v0 }
 0x305   :  { %3640 = vmatpush3.bf16.msra.mxu1 %v4026_v18 }
 0x306   :  { %3641 = vmatprep.subr.bf16.mxu1 %v4308_v0 }
 0x307   :  { %3660 = vmatpush3.bf16.msra.mxu0 %v4040_v27 }
 0x308   :  { %3661 = vmatprep.subr.bf16.mxu0 %v4308_v0 }
 0x309   :  { %3642 = vmatpush3.bf16.msra.mxu1 %v4027_v19  ;;  %v4053_v19 = vld [vmem:[#allocation5 + $0x38] sm:$0xff]  }
 0x30a   :  { %3667 = vmatprep.subr.bf16.mxu1 %v4308_v0 }
 0x30b   :  { %3662 = vmatpush3.bf16.msra.mxu0 %v4042_v28 }
 0x30c   :  { %3687 = vmatprep.subr.bf16.mxu0 %v4308_v0 }
 0x38c   :  { %v1004_v29 = vpop.f32.mrf.mxu0 }
 0x38d   :  { %v1010_v31 = vadd.f32 %v4467_v50, %v1004_v29  ;;  %v4035_v50 = vld [vmem:[#allocation5 + $0x20] sm:$0xff]  }
 0x38e   :  { %v3585_v32 = vpop.f32.mrf.mxu0 }
 0x38f   :  { %4150 = vtanh.f32 %v1010_v31 }
 0x390   :  { %v1007_v33 = vpop.f32.mrf.mxu0 }
 0x391   :  { %v4063_v33 = vld [vmem:[#allocation5 + $0x10] sm:$0xff]  }
 0x392   :  { %v3586_v34 = vpop.f32.mrf.mxu0 }
 0x39c   :  { %v4151_v35 = vpop.eup %4150 }
 0x39d   :  { %v1012_v37 = vpack.c.bf16 %v4151_v35, %v4151_v35 }
 0x39f   :  { %3644 = vmatmul.mubr.bf16.vlgmr.msra.gmra.mxu1 %v1012_v37 }
 0x3a0   :  { %3668 = vmatpush3.bf16.msra.mxu1 %v4029_v36  ;;  %3683 = vmatprep.mubr.msk.bf16.mxu1 %vm4309_vm0, %v4308_v0  ;;  %v4065_v36 = vld [vmem:[#allocation5 + $0x8] sm:$0xff]  }
 0x3a1   :  { %3669 = vmatprep.subr.bf16.mxu1 %v4308_v0 }
 0x3a4   :  { %3670 = vmatpush3.bf16.msra.mxu1 %v4031_v38 }
 0x3a5   :  { %3671 = vmatprep.subr.bf16.mxu1 %v4308_v0 }
 0x3a8   :  { %3672 = vmatpush3.bf16.msra.mxu1 %v4033_v39  ;;  %v4068_v39 = vld [vmem:[#allocation8 + $0x38] sm:$0xff]  }
 0x3a9   :  { %3673 = vmatprep.subr.bf16.mxu1 %v4308_v0 }
 0x3ac   :  { %v1128_v40 = vpop.f32.mrf.mxu1  ;;  %v1216_v41 = vpop.f32.mrf.mxu0  ;;  %3674 = vmatpush3.bf16.msra.mxu1 %v4035_v50 }
 0x3ad   :  { %v1217_v43 = vadd.f32 %v1216_v41, %v1128_v40  ;;  %3675 = vmatprep.subr.bf16.mxu1 %v4308_v0  ;;  %v4069_v40 = vld [vmem:[#allocation8 + $0x30] sm:$0xff]   ;;  %v4070_v41 = vld [vmem:[#allocation8 + $0x28] sm:$0xff]  }
 0x3ae   :  { %v3605_v44 = vpop.f32.mrf.mxu1  ;;  %v3625_v45 = vpop.f32.mrf.mxu0 }
 0x3af   :  { %4152 = vtanh.f32 %v1217_v43  ;;  %v4072_v43 = vld [vmem:[#allocation8 + $0x18] sm:$0xff]   ;;  %v4073_v44 = vld [vmem:[#allocation8 + $0x10] sm:$0xff]   ;;  %v4074_v45 = vld [vmem:[#allocation8 + $0x8] sm:$0xff]  }
 0x3b0   :  { %v1131_v46 = vpop.f32.mrf.mxu1  ;;  %v1219_v47 = vpop.f32.mrf.mxu0  ;;  %3676 = vmatpush3.bf16.msra.mxu1 %v4037_v42  ;;  %v4071_v42 = vld [vmem:[#allocation8 + $0x20] sm:$0xff]  }
 0x3b1   :  { %3677 = vmatprep.subr.bf16.mxu1 %v4308_v0  ;;  %v4075_v46 = vld [vmem:[#allocation8] sm:$0xff]   ;;  %v4076_v47 = vld [vmem:[#allocation10 + $0x38] sm:$0xff]  }
 0x3b2   :  { %v3606_v49 = vpop.f32.mrf.mxu1  ;;  %v3626_v51 = vpop.f32.mrf.mxu0 }
 0x3b3   :  { %v4080_v49 = vld [vmem:[#allocation10 + $0x28] sm:$0xff]   ;;  %v4082_v51 = vld [vmem:[#allocation10 + $0x20] sm:$0xff]  }
 0x3b4   :  { %3678 = vmatpush3.bf16.msra.mxu1 %v4039_v48  ;;  %v4078_v48 = vld [vmem:[#allocation10 + $0x30] sm:$0xff]  }
 0x3b5   :  { %3679 = vmatprep.subr.bf16.mxu1 %v4308_v0 }
 0x3b8   :  { %3680 = vmatpush3.bf16.msra.mxu1 %v4041_v52  ;;  %v4084_v52 = vld [vmem:[#allocation10 + $0x18] sm:$0xff]  }
 0x3b9   :  { %3681 = vmatprep.subr.bf16.mxu1 %v4308_v0 }
 0x3bc   :  { %v4566_v56 = vpop.eup %4152  ;;  %3682 = vmatpush3.bf16.msra.mxu1 %v4043_v54  ;;  %v4086_v54 = vld [vmem:[#allocation10 + $0x10] sm:$0xff]  }
 0x3bd   :  { %v1348_v30 = vpack.c.bf16 %v4566_v56, %v4566_v56  ;;  %3707 = vmatprep.subr.bf16.mxu1 %v4308_v0 }
 0x3bf   :  { %3664 = vmatmul.mubr.bf16.vlgmr.msra.gmra.mxu0 %v1348_v30  ;;  %3684 = vmatmul.mubr.bf16.vlgmr.msra.gmra.mxu1 %v1012_v37  ;;  %v4067_v37 = vld [vmem:[#allocation5] sm:$0xff]  }
 0x3c0   :  { %3688 = vmatpush3.bf16.msra.mxu0 %v4044_v59  ;;  %3703 = vmatprep.mubr.msk.bf16.mxu0 %vm4309_vm0, %v4308_v0  ;;  %v4088_v59 = vld [vmem:[#allocation10 + $0x8] sm:$0xff]   ;;  %v4090_v30 = vld [vmem:[#allocation10] sm:$0xff]  }
 0x3c1   :  { %3689 = vmatprep.subr.bf16.mxu0 %v4308_v0  ;;  %3723 = vmatprep.mubr.msk.bf16.mxu1 %vm4309_vm0, %v4308_v0 }
 0x3c2   :  { %3708 = vmatpush3.bf16.msra.mxu1 %v4052_v4 }
 0x3c3   :  { %3709 = vmatprep.subr.bf16.mxu1 %v4308_v0 }
 0x3c4   :  { %3690 = vmatpush3.bf16.msra.mxu0 %v4045_v60 }
 0x3c5   :  { %3691 = vmatprep.subr.bf16.mxu0 %v4308_v0 }
 0x3c6   :  { %3710 = vmatpush3.bf16.msra.mxu1 %v4054_v5  ;;  %v4079_v5 = vld [vmem:[#allocation5 + $0x30] sm:$0xff]  }
 0x3c7   :  { %3711 = vmatprep.subr.bf16.mxu1 %v4308_v0 }
 0x3c8   :  { %3692 = vmatpush3.bf16.msra.mxu0 %v4046_v61 }
 0x3c9   :  { %3693 = vmatprep.subr.bf16.mxu0 %v4308_v0 }
 0x3ca   :  { %3712 = vmatpush3.bf16.msra.mxu1 %v4056_v6  ;;  %v4081_v6 = vld [vmem:[#allocation5 + $0x28] sm:$0xff]  }
 0x3cb   :  { %3713 = vmatprep.subr.bf16.mxu1 %v4308_v0 }
 0x3cc   :  { %3694 = vmatpush3.bf16.msra.mxu0 %v4047_v62 }
 0x3cd   :  { %3695 = vmatprep.subr.bf16.mxu0 %v4308_v0 }
 0x3ce   :  { %3714 = vmatpush3.bf16.msra.mxu1 %v4058_v7 }
 0x3cf   :  { %3715 = vmatprep.subr.bf16.mxu1 %v4308_v0 }
 0x3d0   :  { %3696 = vmatpush3.bf16.msra.mxu0 %v4048_v63 }
 0x3d1   :  { %3697 = vmatprep.subr.bf16.mxu0 %v4308_v0 }
 0x3d2   :  { %3716 = vmatpush3.bf16.msra.mxu1 %v4060_v8 }
 0x3d3   :  { %3717 = vmatprep.subr.bf16.mxu1 %v4308_v0 }
 0x3d4   :  { %3698 = vmatpush3.bf16.msra.mxu0 %v4049_v1 }
 0x3d5   :  { %3699 = vmatprep.subr.bf16.mxu0 %v4308_v0 }
 0x3d6   :  { %3718 = vmatpush3.bf16.msra.mxu1 %v4062_v9  ;;  %v4085_v9 = vld [vmem:[#allocation5 + $0x18] sm:$0xff]  }
 0x3d7   :  { %3719 = vmatprep.subr.bf16.mxu1 %v4308_v0 }
 0x3d8   :  { %3700 = vmatpush3.bf16.msra.mxu0 %v4050_v2 }
 0x3d9   :  { %3701 = vmatprep.subr.bf16.mxu0 %v4308_v0 }
 0x3da   :  { %3720 = vmatpush3.bf16.msra.mxu1 %v4064_v11 }
 0x3db   :  { %3721 = vmatprep.subr.bf16.mxu1 %v4308_v0 }
 0x3dc   :  { %3702 = vmatpush3.bf16.msra.mxu0 %v4051_v3  ;;  %v4077_v3 = vld [vmem:[#allocation5 + $0x38] sm:$0xff]  }
 0x3dd   :  { %3727 = vmatprep.subr.bf16.mxu0 %v4308_v0 }
 0x3de   :  { %3722 = vmatpush3.bf16.msra.mxu1 %v4066_v12 }
 0x3df   :  { %3747 = vmatprep.subr.bf16.mxu1 %v4308_v0 }
 0x45f   :  { %v1323_v13 = vpop.f32.mrf.mxu1 }
 0x460   :  { %v1329_v14 = vadd.f32 %v1323_v13, %v4473_v55  ;;  %v4059_v55 = vld [vmem:[#allocation5 + $0x20] sm:$0xff]  }
 0x461   :  { %v3645_v15 = vpop.f32.mrf.mxu1 }
 0x462   :  { %4154 = vtanh.f32 %v1329_v14 }
 0x463   :  { %v1326_v16 = vpop.f32.mrf.mxu1 }
 0x464   :  { %v4087_v16 = vld [vmem:[#allocation5 + $0x10] sm:$0xff]  }
 0x465   :  { %v3646_v17 = vpop.f32.mrf.mxu1 }
 0x46f   :  { %v4155_v18 = vpop.eup %4154 }
 0x470   :  { %v1331_v20 = vpack.c.bf16 %v4155_v18, %v4155_v18 }
 0x472   :  { %3704 = vmatmul.mubr.bf16.vlgmr.msra.gmra.mxu0 %v1331_v20 }
 0x473   :  { %3728 = vmatpush3.bf16.msra.mxu0 %v4053_v19  ;;  %3743 = vmatprep.mubr.msk.bf16.mxu0 %vm4309_vm0, %v4308_v0  ;;  %v4089_v19 = vld [vmem:[#allocation5 + $0x8] sm:$0xff]  }
 0x474   :  { %3729 = vmatprep.subr.bf16.mxu0 %v4308_v0 }
 0x477   :  { %3730 = vmatpush3.bf16.msra.mxu0 %v4055_v21 }
 0x478   :  { %3731 = vmatprep.subr.bf16.mxu0 %v4308_v0 }
 0x47b   :  { %3732 = vmatpush3.bf16.msra.mxu0 %v4057_v22  ;;  %v4092_v22 = vld [vmem:[#allocation8 + $0x38] sm:$0xff]  }
 0x47c   :  { %3733 = vmatprep.subr.bf16.mxu0 %v4308_v0 }
 0x47f   :  { %v1447_v23 = vpop.f32.mrf.mxu0  ;;  %v1535_v24 = vpop.f32.mrf.mxu1  ;;  %3734 = vmatpush3.bf16.msra.mxu0 %v4059_v55 }
 0x480   :  { %v1536_v27 = vadd.f32 %v1535_v24, %v1447_v23  ;;  %3735 = vmatprep.subr.bf16.mxu0 %v4308_v0  ;;  %v4093_v23 = vld [vmem:[#allocation8 + $0x30] sm:$0xff]   ;;  %v4094_v24 = vld [vmem:[#allocation8 + $0x28] sm:$0xff]  }
 0x481   :  { %v3665_v28 = vpop.f32.mrf.mxu0  ;;  %v3685_v29 = vpop.f32.mrf.mxu1 }
 0x482   :  { %4156 = vtanh.f32 %v1536_v27  ;;  %v4096_v27 = vld [vmem:[#allocation8 + $0x18] sm:$0xff]   ;;  %v4097_v28 = vld [vmem:[#allocation8 + $0x10] sm:$0xff]   ;;  %v4098_v29 = vld [vmem:[#allocation8 + $0x8] sm:$0xff]  }
 0x483   :  { %v1450_v31 = vpop.f32.mrf.mxu0  ;;  %v1538_v32 = vpop.f32.mrf.mxu1  ;;  %3736 = vmatpush3.bf16.msra.mxu0 %v4061_v25  ;;  %v4095_v25 = vld [vmem:[#allocation8 + $0x20] sm:$0xff]  }
 0x484   :  { %3737 = vmatprep.subr.bf16.mxu0 %v4308_v0  ;;  %v4099_v31 = vld [vmem:[#allocation8] sm:$0xff]   ;;  %v4100_v32 = vld [vmem:[#allocation10 + $0x38] sm:$0xff]  }
 0x485   :  { %v3666_v34 = vpop.f32.mrf.mxu0  ;;  %v3686_v35 = vpop.f32.mrf.mxu1 }
 0x486   :  { %v4104_v34 = vld [vmem:[#allocation10 + $0x28] sm:$0xff]   ;;  %v4106_v35 = vld [vmem:[#allocation10 + $0x20] sm:$0xff]  }
 0x487   :  { %3738 = vmatpush3.bf16.msra.mxu0 %v4063_v33  ;;  %v4102_v33 = vld [vmem:[#allocation10 + $0x30] sm:$0xff]  }
 0x488   :  { %3739 = vmatprep.subr.bf16.mxu0 %v4308_v0 }
 0x48b   :  { %3740 = vmatpush3.bf16.msra.mxu0 %v4065_v36  ;;  %v4108_v36 = vld [vmem:[#allocation10 + $0x18] sm:$0xff]  }
 0x48c   :  { %3741 = vmatprep.subr.bf16.mxu0 %v4308_v0 }
 0x48f   :  { %v4601_v38 = vpop.eup %4156  ;;  %3742 = vmatpush3.bf16.msra.mxu0 %v4067_v37  ;;  %v4110_v37 = vld [vmem:[#allocation10 + $0x10] sm:$0xff]  }
 0x490   :  { %v1667_v50 = vpack.c.bf16 %v4601_v38, %v4601_v38  ;;  %3767 = vmatprep.subr.bf16.mxu0 %v4308_v0 }
 0x492   :  { %3724 = vmatmul.mubr.bf16.vlgmr.msra.gmra.mxu1 %v1667_v50  ;;  %3744 = vmatmul.mubr.bf16.vlgmr.msra.gmra.mxu0 %v1331_v20  ;;  %v4091_v20 = vld [vmem:[#allocation5] sm:$0xff]  }
 0x493   :  { %3748 = vmatpush3.bf16.msra.mxu1 %v4068_v39  ;;  %3763 = vmatprep.mubr.msk.bf16.mxu1 %vm4309_vm0, %v4308_v0  ;;  %v4112_v39 = vld [vmem:[#allocation10 + $0x8] sm:$0xff]   ;;  %v4114_v50 = vld [vmem:[#allocation10] sm:$0xff]  }
 0x494   :  { %3749 = vmatprep.subr.bf16.mxu1 %v4308_v0  ;;  %3783 = vmatprep.mubr.msk.bf16.mxu0 %vm4309_vm0, %v4308_v0 }
 0x495   :  { %3768 = vmatpush3.bf16.msra.mxu0 %v4076_v47 }
 0x496   :  { %3769 = vmatprep.subr.bf16.mxu0 %v4308_v0 }
 0x497   :  { %3750 = vmatpush3.bf16.msra.mxu1 %v4069_v40 }
 0x498   :  { %3751 = vmatprep.subr.bf16.mxu1 %v4308_v0 }
 0x499   :  { %3770 = vmatpush3.bf16.msra.mxu0 %v4078_v48  ;;  %v4103_v48 = vld [vmem:[#allocation5 + $0x30] sm:$0xff]  }
 0x49a   :  { %3771 = vmatprep.subr.bf16.mxu0 %v4308_v0 }
 0x49b   :  { %3752 = vmatpush3.bf16.msra.mxu1 %v4070_v41 }
 0x49c   :  { %3753 = vmatprep.subr.bf16.mxu1 %v4308_v0 }
 0x49d   :  { %3772 = vmatpush3.bf16.msra.mxu0 %v4080_v49  ;;  %v4105_v49 = vld [vmem:[#allocation5 + $0x28] sm:$0xff]  }
 0x49e   :  { %3773 = vmatprep.subr.bf16.mxu0 %v4308_v0 }
 0x49f   :  { %3754 = vmatpush3.bf16.msra.mxu1 %v4071_v42 }
 0x4a0   :  { %3755 = vmatprep.subr.bf16.mxu1 %v4308_v0 }
 0x4a1   :  { %3774 = vmatpush3.bf16.msra.mxu0 %v4082_v51 }
 0x4a2   :  { %3775 = vmatprep.subr.bf16.mxu0 %v4308_v0 }
 0x4a3   :  { %3756 = vmatpush3.bf16.msra.mxu1 %v4072_v43 }
 0x4a4   :  { %3757 = vmatprep.subr.bf16.mxu1 %v4308_v0 }
 0x4a5   :  { %3776 = vmatpush3.bf16.msra.mxu0 %v4084_v52 }
 0x4a6   :  { %3777 = vmatprep.subr.bf16.mxu0 %v4308_v0 }
 0x4a7   :  { %3758 = vmatpush3.bf16.msra.mxu1 %v4073_v44 }
 0x4a8   :  { %3759 = vmatprep.subr.bf16.mxu1 %v4308_v0 }
 0x4a9   :  { %3778 = vmatpush3.bf16.msra.mxu0 %v4086_v54  ;;  %v4109_v54 = vld [vmem:[#allocation5 + $0x18] sm:$0xff]  }
 0x4aa   :  { %3779 = vmatprep.subr.bf16.mxu0 %v4308_v0 }
 0x4ab   :  { %3760 = vmatpush3.bf16.msra.mxu1 %v4074_v45 }
 0x4ac   :  { %3761 = vmatprep.subr.bf16.mxu1 %v4308_v0 }
 0x4ad   :  { %3780 = vmatpush3.bf16.msra.mxu0 %v4088_v59 }
 0x4ae   :  { %3781 = vmatprep.subr.bf16.mxu0 %v4308_v0 }
 0x4af   :  { %3762 = vmatpush3.bf16.msra.mxu1 %v4075_v46  ;;  %v4101_v46 = vld [vmem:[#allocation5 + $0x38] sm:$0xff]  }
 0x4b0   :  { %3787 = vmatprep.subr.bf16.mxu1 %v4308_v0 }
 0x4b1   :  { %3782 = vmatpush3.bf16.msra.mxu0 %v4090_v30 }
 0x4b2   :  { %3807 = vmatprep.subr.bf16.mxu0 %v4308_v0 }
 0x532   :  { %v1642_v60 = vpop.f32.mrf.mxu0 }
 0x533   :  { %v1648_v61 = vadd.f32 %v1642_v60, %v4478_v58  ;;  %v4083_v58 = vld [vmem:[#allocation5 + $0x20] sm:$0xff]  }
 0x534   :  { %v3705_v62 = vpop.f32.mrf.mxu0 }
 0x535   :  { %4158 = vtanh.f32 %v1648_v61 }
 0x536   :  { %v1645_v63 = vpop.f32.mrf.mxu0 }
 0x537   :  { %v4111_v63 = vld [vmem:[#allocation5 + $0x10] sm:$0xff]  }
 0x538   :  { %v3706_v1 = vpop.f32.mrf.mxu0 }
 0x542   :  { %v4159_v2 = vpop.eup %4158 }
 0x543   :  { %v1650_v4 = vpack.c.bf16 %v4159_v2, %v4159_v2 }
 0x545   :  { %3764 = vmatmul.mubr.bf16.vlgmr.msra.gmra.mxu1 %v1650_v4 }
 0x546   :  { %3788 = vmatpush3.bf16.msra.mxu1 %v4077_v3  ;;  %3803 = vmatprep.mubr.msk.bf16.mxu1 %vm4309_vm0, %v4308_v0  ;;  %v4113_v3 = vld [vmem:[#allocation5 + $0x8] sm:$0xff]  }
 0x547   :  { %3789 = vmatprep.subr.bf16.mxu1 %v4308_v0 }
 0x54a   :  { %3790 = vmatpush3.bf16.msra.mxu1 %v4079_v5 }
 0x54b   :  { %3791 = vmatprep.subr.bf16.mxu1 %v4308_v0 }
 0x54e   :  { %3792 = vmatpush3.bf16.msra.mxu1 %v4081_v6  ;;  %v4116_v6 = vld [vmem:[#allocation5 + $0x38] sm:$0xff]  }
 0x54f   :  { %3793 = vmatprep.subr.bf16.mxu1 %v4308_v0 }
 0x552   :  { %v1766_v7 = vpop.f32.mrf.mxu1  ;;  %v1854_v8 = vpop.f32.mrf.mxu0  ;;  %3794 = vmatpush3.bf16.msra.mxu1 %v4083_v58 }
 0x553   :  { %v1855_v11 = vadd.f32 %v1854_v8, %v1766_v7  ;;  %3795 = vmatprep.subr.bf16.mxu1 %v4308_v0  ;;  %v4117_v7 = vld [vmem:[#allocation5 + $0x30] sm:$0xff]   ;;  %v4118_v8 = vld [vmem:[#allocation5 + $0x28] sm:$0xff]  }
 0x554   :  { %v3725_v12 = vpop.f32.mrf.mxu1  ;;  %v3745_v13 = vpop.f32.mrf.mxu0 }
 0x555   :  { %4160 = vtanh.f32 %v1855_v11  ;;  %v4120_v11 = vld [vmem:[#allocation5 + $0x18] sm:$0xff]   ;;  %v4121_v12 = vld [vmem:[#allocation5 + $0x10] sm:$0xff]   ;;  %v4122_v13 = vld [vmem:[#allocation5 + $0x8] sm:$0xff]  }
 0x556   :  { %v1769_v14 = vpop.f32.mrf.mxu1  ;;  %v1857_v15 = vpop.f32.mrf.mxu0  ;;  %3796 = vmatpush3.bf16.msra.mxu1 %v4085_v9  ;;  %v4119_v9 = vld [vmem:[#allocation5 + $0x20] sm:$0xff]  }
 0x557   :  { %3797 = vmatprep.subr.bf16.mxu1 %v4308_v0  ;;  %v4123_v14 = vld [vmem:[#allocation5] sm:$0xff]   ;;  %v4124_v15 = vld [vmem:[#allocation10 + $0x38] sm:$0xff]  }
 0x558   :  { %v3726_v17 = vpop.f32.mrf.mxu1  ;;  %v3746_v18 = vpop.f32.mrf.mxu0 }
 0x559   :  { %v4126_v17 = vld [vmem:[#allocation10 + $0x28] sm:$0xff]   ;;  %v4127_v18 = vld [vmem:[#allocation10 + $0x20] sm:$0xff]  }
 0x55a   :  { %3798 = vmatpush3.bf16.msra.mxu1 %v4087_v16  ;;  %v4125_v16 = vld [vmem:[#allocation10 + $0x30] sm:$0xff]  }
 0x55b   :  { %3799 = vmatprep.subr.bf16.mxu1 %v4308_v0 }
 0x55e   :  { %3800 = vmatpush3.bf16.msra.mxu1 %v4089_v19  ;;  %v4128_v19 = vld [vmem:[#allocation10 + $0x18] sm:$0xff]  }
 0x55f   :  { %3801 = vmatprep.subr.bf16.mxu1 %v4308_v0 }
 0x562   :  { %v4636_v21 = vpop.eup %4160  ;;  %3802 = vmatpush3.bf16.msra.mxu1 %v4091_v20  ;;  %v4129_v20 = vld [vmem:[#allocation10 + $0x10] sm:$0xff]  }
 0x563   :  { %v1986_v55 = vpack.c.bf16 %v4636_v21, %v4636_v21  ;;  %3827 = vmatprep.subr.bf16.mxu1 %v4308_v0 }
 0x565   :  { %3784 = vmatmul.mubr.bf16.vlgmr.msra.gmra.mxu0 %v1986_v55  ;;  %3804 = vmatmul.mubr.bf16.vlgmr.msra.gmra.mxu1 %v1650_v4  ;;  %v4115_v4 = vld [vmem:[#allocation5] sm:$0xff]  }
 0x566   :  { %3808 = vmatpush3.bf16.msra.mxu0 %v4092_v22  ;;  %3823 = vmatprep.mubr.msk.bf16.mxu0 %vm4309_vm0, %v4308_v0  ;;  %v4130_v22 = vld [vmem:[#allocation10 + $0x8] sm:$0xff]   ;;  %v4131_v55 = vld [vmem:[#allocation10] sm:$0xff]  }
 0x567   :  { %3809 = vmatprep.subr.bf16.mxu0 %v4308_v0  ;;  %3843 = vmatprep.mubr.msk.bf16.mxu1 %vm4309_vm0, %v4308_v0 }
 0x568   :  { %3828 = vmatpush3.bf16.msra.mxu1 %v4100_v32 }
 0x569   :  { %3829 = vmatprep.subr.bf16.mxu1 %v4308_v0 }
 0x56a   :  { %3810 = vmatpush3.bf16.msra.mxu0 %v4093_v23  ;;  %v4132_v23 = vld [vmem:[#allocation11 + $0x38] sm:$0xff]  }
 0x56b   :  { %3811 = vmatprep.subr.bf16.mxu0 %v4308_v0 }
 0x56c   :  { %3830 = vmatpush3.bf16.msra.mxu1 %v4102_v33 }
 0x56d   :  { %3831 = vmatprep.subr.bf16.mxu1 %v4308_v0 }
 0x56e   :  { %3812 = vmatpush3.bf16.msra.mxu0 %v4094_v24 }
 0x56f   :  { %3813 = vmatprep.subr.bf16.mxu0 %v4308_v0 }
 0x570   :  { %3832 = vmatpush3.bf16.msra.mxu1 %v4104_v34 }
 0x571   :  { %3833 = vmatprep.subr.bf16.mxu1 %v4308_v0 }
 0x572   :  { %3814 = vmatpush3.bf16.msra.mxu0 %v4095_v25 }
 0x573   :  { %3815 = vmatprep.subr.bf16.mxu0 %v4308_v0 }
 0x574   :  { %3834 = vmatpush3.bf16.msra.mxu1 %v4106_v35 }
 0x575   :  { %3835 = vmatprep.subr.bf16.mxu1 %v4308_v0 }
 0x576   :  { %3816 = vmatpush3.bf16.msra.mxu0 %v4096_v27 }
 0x577   :  { %3817 = vmatprep.subr.bf16.mxu0 %v4308_v0 }
 0x578   :  { %3836 = vmatpush3.bf16.msra.mxu1 %v4108_v36 }
 0x579   :  { %3837 = vmatprep.subr.bf16.mxu1 %v4308_v0 }
 0x57a   :  { %3818 = vmatpush3.bf16.msra.mxu0 %v4097_v28 }
 0x57b   :  { %3819 = vmatprep.subr.bf16.mxu0 %v4308_v0 }
 0x57c   :  { %3838 = vmatpush3.bf16.msra.mxu1 %v4110_v37 }
 0x57d   :  { %3839 = vmatprep.subr.bf16.mxu1 %v4308_v0 }
 0x57e   :  { %3820 = vmatpush3.bf16.msra.mxu0 %v4098_v29 }
 0x57f   :  { %3821 = vmatprep.subr.bf16.mxu0 %v4308_v0 }
 0x580   :  { %3840 = vmatpush3.bf16.msra.mxu1 %v4112_v39 }
 0x581   :  { %3841 = vmatprep.subr.bf16.mxu1 %v4308_v0 }
 0x582   :  { %3822 = vmatpush3.bf16.msra.mxu0 %v4099_v31 }
 0x583   :  { %3847 = vmatprep.subr.bf16.mxu0 %v4308_v0 }
 0x584   :  { %3842 = vmatpush3.bf16.msra.mxu1 %v4114_v50 }
 0x585   :  { %3867 = vmatprep.subr.bf16.mxu1 %v4308_v0 }
 0x605   :  { %v1961_v40 = vpop.f32.mrf.mxu1 }
 0x606   :  { %v1967_v41 = vadd.f32 %v4471_v53, %v1961_v40  ;;  %v4107_v53 = vld [vmem:[#allocation5 + $0x20] sm:$0xff]  }
 0x607   :  { %v3765_v42 = vpop.f32.mrf.mxu1 }
 0x608   :  { %4162 = vtanh.f32 %v1967_v41  ;;  %v4133_v42 = vld [vmem:[#allocation11 + $0x30] sm:$0xff]  }
 0x609   :  { %v1964_v43 = vpop.f32.mrf.mxu1 }
 0x60a   :  { %v2721_v43 = vpack.c.bf16 %v4531_v10, %v4496_v26  ;;  %v4139_v26 = vld [vmem:[#allocation11] sm:$0xff]   ;;  %v2722_v10 = vpack.c.bf16 %v4601_v38, %v4566_v56 }
 0x60b   :  { %v3766_v44 = vpop.f32.mrf.mxu1  ;;  %v3136_v38 = vld [vmem:[%s4720_s7] ss:$0 sm:$0xff] }
 0x60c   :  { %v4134_v44 = vld [vmem:[#allocation11 + $0x28] sm:$0xff]  }
 0x615   :  { %v4163_v45 = vpop.eup %4162 }
 0x616   :  { %v1969_v47 = vpack.c.bf16 %v4163_v45, %v4163_v45  ;;  %v4135_v45 = vld [vmem:[#allocation11 + $0x20] sm:$0xff]  }
 0x618   :  { %3824 = vmatmul.mubr.bf16.vlgmr.msra.gmra.mxu0 %v1969_v47 }
 0x619   :  { %3848 = vmatpush3.bf16.msra.mxu0 %v4101_v46  ;;  %3863 = vmatprep.mubr.msk.bf16.mxu0 %vm4309_vm0, %v4308_v0  ;;  %v4136_v46 = vld [vmem:[#allocation11 + $0x18] sm:$0xff]  }
 0x61a   :  { %3849 = vmatprep.subr.bf16.mxu0 %v4308_v0 }
 0x61d   :  { %3850 = vmatpush3.bf16.msra.mxu0 %v4103_v48  ;;  %v4138_v48 = vld [vmem:[#allocation11 + $0x8] sm:$0xff]  }
 0x61e   :  { %3851 = vmatprep.subr.bf16.mxu0 %v4308_v0 }
 0x621   :  { %3852 = vmatpush3.bf16.msra.mxu0 %v4105_v49 }
 0x622   :  { %3853 = vmatprep.subr.bf16.mxu0 %v4308_v0 }
 0x625   :  { %v2085_v51 = vpop.f32.mrf.mxu0  ;;  %v2173_v52 = vpop.f32.mrf.mxu1  ;;  %3854 = vmatpush3.bf16.msra.mxu0 %v4107_v53 }
 0x626   :  { %v2174_v59 = vadd.f32 %v2173_v52, %v2085_v51  ;;  %3855 = vmatprep.subr.bf16.mxu0 %v4308_v0 }
 0x627   :  { %v3785_v30 = vpop.f32.mrf.mxu0  ;;  %v3805_v60 = vpop.f32.mrf.mxu1 }
 0x628   :  { %4164 = vtanh.f32 %v2174_v59 }
 0x629   :  { %v2088_v61 = vpop.f32.mrf.mxu0  ;;  %v2176_v62 = vpop.f32.mrf.mxu1  ;;  %3856 = vmatpush3.bf16.msra.mxu0 %v4109_v54 }
 0x62a   :  { %3857 = vmatprep.subr.bf16.mxu0 %v4308_v0 }
 0x62b   :  { %v3786_v1 = vpop.f32.mrf.mxu0  ;;  %v3806_v2 = vpop.f32.mrf.mxu1 }
 0x62d   :  { %3858 = vmatpush3.bf16.msra.mxu0 %v4111_v63 }
 0x62e   :  { %3859 = vmatprep.subr.bf16.mxu0 %v4308_v0 }
 0x631   :  { %3860 = vmatpush3.bf16.msra.mxu0 %v4113_v3 }
 0x632   :  { %3861 = vmatprep.subr.bf16.mxu0 %v4308_v0 }
 0x635   :  { %v4671_v5 = vpop.eup %4164  ;;  %3862 = vmatpush3.bf16.msra.mxu0 %v4115_v4 }
 0x636   :  { %v2305_v58 = vpack.c.bf16 %v4671_v5, %v4671_v5  ;;  %3887 = vmatprep.subr.bf16.mxu0 %v4308_v0  ;;  %v2723_v49 = vpack.c.bf16 %v4671_v5, %v4636_v21 }
 0x638   :  { %3844 = vmatmul.mubr.bf16.vlgmr.msra.gmra.mxu1 %v2305_v58  ;;  %3864 = vmatmul.mubr.bf16.vlgmr.msra.gmra.mxu0 %v1969_v47  ;;  %v4137_v47 = vld [vmem:[#allocation11 + $0x10] sm:$0xff]  }
 0x639   :  { %3888 = vmatpush3.bf16.msra.mxu0 %v4116_v6  ;;  %3903 = vmatprep.mubr.msk.bf16.mxu0 %vm4309_vm0, %v4308_v0 }
 0x63a   :  { %3889 = vmatprep.subr.bf16.mxu0 %v4308_v0  ;;  %3883 = vmatprep.mubr.msk.bf16.mxu1 %vm4309_vm0, %v4308_v0 }
 0x63b   :  { %3868 = vmatpush3.bf16.msra.mxu1 %v4124_v15 }
 0x63c   :  { %3869 = vmatprep.subr.bf16.mxu1 %v4308_v0 }
 0x63d   :  { %3890 = vmatpush3.bf16.msra.mxu0 %v4117_v7 }
 0x63e   :  { %3891 = vmatprep.subr.bf16.mxu0 %v4308_v0 }
 0x63f   :  { %3870 = vmatpush3.bf16.msra.mxu1 %v4125_v16 }
 0x640   :  { %3871 = vmatprep.subr.bf16.mxu1 %v4308_v0 }
 0x641   :  { %3892 = vmatpush3.bf16.msra.mxu0 %v4118_v8 }
 0x642   :  { %3893 = vmatprep.subr.bf16.mxu0 %v4308_v0 }
 0x643   :  { %3872 = vmatpush3.bf16.msra.mxu1 %v4126_v17 }
 0x644   :  { %3873 = vmatprep.subr.bf16.mxu1 %v4308_v0 }
 0x645   :  { %3894 = vmatpush3.bf16.msra.mxu0 %v4119_v9 }
 0x646   :  { %3895 = vmatprep.subr.bf16.mxu0 %v4308_v0 }
 0x647   :  { %3874 = vmatpush3.bf16.msra.mxu1 %v4127_v18 }
 0x648   :  { %3875 = vmatprep.subr.bf16.mxu1 %v4308_v0 }
 0x649   :  { %3896 = vmatpush3.bf16.msra.mxu0 %v4120_v11 }
 0x64a   :  { %3897 = vmatprep.subr.bf16.mxu0 %v4308_v0 }
 0x64b   :  { %3876 = vmatpush3.bf16.msra.mxu1 %v4128_v19 }
 0x64c   :  { %3877 = vmatprep.subr.bf16.mxu1 %v4308_v0 }
 0x64d   :  { %3898 = vmatpush3.bf16.msra.mxu0 %v4121_v12 }
 0x64e   :  { %3899 = vmatprep.subr.bf16.mxu0 %v4308_v0 }
 0x64f   :  { %3878 = vmatpush3.bf16.msra.mxu1 %v4129_v20 }
 0x650   :  { %3879 = vmatprep.subr.bf16.mxu1 %v4308_v0 }
 0x651   :  { %3900 = vmatpush3.bf16.msra.mxu0 %v4122_v13 }
 0x652   :  { %3901 = vmatprep.subr.bf16.mxu0 %v4308_v0 }
 0x653   :  { %3880 = vmatpush3.bf16.msra.mxu1 %v4130_v22 }
 0x654   :  { %3881 = vmatprep.subr.bf16.mxu1 %v4308_v0 }
 0x655   :  { %3902 = vmatpush3.bf16.msra.mxu0 %v4123_v14 }
 0x657   :  { %3882 = vmatpush3.bf16.msra.mxu1 %v4131_v55 }
 0x658   :  { %3907 = vmatprep.subr.bf16.mxu1 %v4132_v23 }
 0x6d8   :  { %v2280_v24 = vpop.f32.mrf.mxu0 }
 0x6d9   :  { %v2286_v25 = vadd.f32 %v4476_v57, %v2280_v24 }
 0x6da   :  { %v3825_v27 = vpop.f32.mrf.mxu0 }
 0x6db   :  { %4166 = vtanh.f32 %v2286_v25 }
 0x6dc   :  { %v2283_v28 = vpop.f32.mrf.mxu0 }
 0x6de   :  { %v3826_v29 = vpop.f32.mrf.mxu0 }
 0x6e8   :  { %v4167_v31 = vpop.eup %4166 }
 0x6e9   :  { %2906 = vst [vmem:[#allocation14] sm:$0xff] %v4167_v31  ;;  %v2288_v32 = vpack.c.bf16 %v4167_v31, %v4167_v31 }
 0x6eb   :  { %3904 = vmatmul.mubr.bf16.vlgmr.msra.gmra.mxu0 %v2288_v32 }
 0x6f8   :  { %v2404_v33 = vpop.f32.mrf.mxu1  ;;  %v2492_v34 = vpop.f32.mrf.mxu0 }
 0x6f9   :  { %v2493_v35 = vadd.f32 %v2492_v34, %v2404_v33 }
 0x6fa   :  { %v3845_v36 = vpop.f32.mrf.mxu1  ;;  %v3865_v37 = vpop.f32.mrf.mxu0 }
 0x6fb   :  { %4168 = vtanh.f32 %v2493_v35 }
 0x6fc   :  { %v2407_v0 = vpop.f32.mrf.mxu1  ;;  %v2495_v39 = vpop.f32.mrf.mxu0 }
 0x6fe   :  { %v3846_v50 = vpop.f32.mrf.mxu1  ;;  %v3866_v40 = vpop.f32.mrf.mxu0 }
 0x708   :  { %v4169_v41 = vpop.eup %4168 }
 0x709   :  { %v2516_v57 = vpack.c.bf16 %v4169_v41, %v4169_v41 }
 0x70b   :  { %3884 = vmatmul.mubr.bf16.vlgmr.msra.gmra.mxu1 %v2516_v57 }
 0x70c   :  { %3908 = vmatpush3.bf16.msra.mxu1 %v4132_v23  ;;  %3923 = vmatprep.mubr.bf16.mxu1 %v2721_v43 }
 0x70d   :  { %3909 = vmatprep.subr.bf16.mxu1 %v4133_v42 }
 0x710   :  { %3910 = vmatpush3.bf16.msra.mxu1 %v4133_v42 }
 0x711   :  { %3911 = vmatprep.subr.bf16.mxu1 %v4134_v44 }
 0x714   :  { %3912 = vmatpush3.bf16.msra.mxu1 %v4134_v44 }
 0x715   :  { %3913 = vmatprep.subr.bf16.mxu1 %v4135_v45 }
 0x718   :  { %3914 = vmatpush3.bf16.msra.mxu1 %v4135_v45 }
 0x719   :  { %3915 = vmatprep.subr.bf16.mxu1 %v4136_v46 }
 0x71c   :  { %3916 = vmatpush3.bf16.msra.mxu1 %v4136_v46 }
 0x71d   :  { %3917 = vmatprep.subr.bf16.mxu1 %v4137_v47 }
 0x720   :  { %3918 = vmatpush3.bf16.msra.mxu1 %v4137_v47 }
 0x721   :  { %3919 = vmatprep.subr.bf16.mxu1 %v4138_v48 }
 0x724   :  { %3920 = vmatpush3.bf16.msra.mxu1 %v4138_v48 }
 0x725   :  { %3921 = vmatprep.subr.bf16.mxu1 %v4139_v26 }
 0x728   :  { %3922 = vmatpush3.bf16.msra.mxu1 %v4139_v26 }
 0x72b   :  { %3924 = vmatmul.mubr.bf16.vlgmr.msra.gmra.mxu1 %v2722_v10 }
 0x72c   :  { %3927 = vmatprep.mubr.bf16.mxu1 %v2723_v49 }
 0x7ab   :  { %v2703_v53 = vpop.f32.mrf.mxu0 }
 0x7ad   :  { %v3905_v51 = vpop.f32.mrf.mxu0 }
 0x7af   :  { %v2706_v52 = vpop.f32.mrf.mxu0 }
 0x7b1   :  { %v3906_v54 = vpop.f32.mrf.mxu0 }
 0x7cb   :  { %v2615_v59 = vpop.f32.mrf.mxu1 }
 0x7cc   :  { %v2704_v30 = vadd.f32 %v2703_v53, %v2615_v59 }
 0x7cd   :  { %v3885_v60 = vpop.f32.mrf.mxu1 }
 0x7ce   :  { %4170 = vtanh.f32 %v2704_v30 }
 0x7cf   :  { %v2618_v61 = vpop.f32.mrf.mxu1 }
 0x7d1   :  { %v3886_v62 = vpop.f32.mrf.mxu1 }
 0x7db   :  { %v4171_v63 = vpop.eup %4170 }
 0x7dc   :  { %2907 = vst [vmem:[#allocation14 + $0x8] sm:$0xff] %v4171_v63  ;;  %v2724_v1 = vpack.c.bf16 %v4171_v63, %v4169_v41 }
 0x7de   :  { %3928 = vmatmul.mubr.bf16.gmra.mxu1 %v2724_v1 }
 0x7eb   :  { %v3925_v56 = vpop.f32.mrf.mxu1 }
 0x7ec   :  { %v2839_v3 = vadd.f32 %v3925_v56, %v3136_v38 }
 0x7ed   :  { %v2830_v21 = vpop.f32.mrf.mxu1 }
 0x7ee   :  { %v2831_v6 = vadd.f32 %v3136_v38, %v2830_v21 }
 0x7ef   :  { %v3926_v2 = vpop.f32.mrf.mxu1 }
 0x7f0   :  { %v2842_v4 = vadd.f32 %v3926_v2, %v3136_v38 }
 0x7f1   :  { %v2833_v5 = vpop.f32.mrf.mxu1 }
 0x7f2   :  { %v3169_v58 = vpack.c.bf16 %v2842_v4, %v2839_v3  ;;  %v2834_v7 = vadd.f32 %v3136_v38, %v2833_v5 }
 0x7f4   :  { %3181 = vst [vmem:[#allocation13 + $0x8] sm:$0xff] %v3169_v58   ;;  %v3164_v8 = vpack.c.bf16 %v2834_v7, %v2831_v6 }
 0x7f6   :  { %3165 = vst [vmem:[#allocation13] sm:$0xff] %v3164_v8  }
 0x7f7   :  { %4263 = shalt.err (!%p4260_p10)
}
 0x7f8   :  { %s4311_s7 = smov 128   ;;  %s4312_s24 = smov 8  }
 0x7f9   :  { %2931 = dma.vmem_to_hbm [thread:$0]  %s2926_s22, 256, %s4722_s9, [#allocation15], %s4311_s7, %s4311_s7, %s4312_s24  }
 0x7fa   :  { %s4313_s26 = smov [#allocation13]  }
 0x7fb   :  { %s2913_s3 = sshll.u32 %s4313_s26, 4  ;;  %s2914_s3 = int_to_ptr.vmem [resolvable:$true] %s2913_s3 }
 0x7fc   :  { %s4272_s27 = scalar_lea.vmem %s2914_s3, 512  ;;  %p4277_p12 = scmp.lt.s32.totalorder %s2914_s3, %s2914_s3 }
 0x7fd   :  { %p4273_p11 = scmp.ne.s32.totalorder %s2914_s3, %s4272_s27  ;;  %p4278_p13 = scmp.lt.s32.totalorder %s4272_s27, %s4272_s27 }
 0x7ff   :  { %p4279_p0 = por %p4278_p13, %p4277_p12 }
 0x801   :  { %p4280_p1 = pnand %p4279_p0, %p4273_p11 }
 0x89e   :  { %v3929_v9 = vpop.f32.mrf.mxu1 }
 0x89f   :  { %v2855_v13 = vadd.f32 %v3929_v9, %v3136_v38 }
 0x8a0   :  { %v2846_v11 = vpop.f32.mrf.mxu1 }
 0x8a1   :  { %v2847_v16 = vadd.f32 %v3136_v38, %v2846_v11 }
 0x8a2   :  { %v3930_v12 = vpop.f32.mrf.mxu1 }
 0x8a3   :  { %v2858_v14 = vadd.f32 %v3930_v12, %v3136_v38 }
 0x8a4   :  { %v2849_v15 = vpop.f32.mrf.mxu1 }
 0x8a5   :  { %v3179_v17 = vpack.c.bf16 %v2858_v14, %v2855_v13  ;;  %v2850_v18 = vadd.f32 %v3136_v38, %v2849_v15 }
 0x8a7   :  { %3183 = vst [vmem:[#allocation13 + $0x18] sm:$0xff] %v3179_v17   ;;  %v3174_v19 = vpack.c.bf16 %v2850_v18, %v2847_v16 }
 0x8a9   :  { %3182 = vst [vmem:[#allocation13 + $0x10] sm:$0xff] %v3174_v19  }
 0x8aa   :  { %4283 = shalt.err (!%p4280_p1)
}
 0x8ab   :  { %2919 = dma.vmem_to_hbm [thread:$0]  %s2914_s3, 512, %s4721_s8, [#allocation7], %s4304_s14, %s4304_s14, %s4305_s15  }
 0x8ac   :  { %4298 = dma.done.wait [#allocation7], 512  }
 0x8ad   :  { %4299 = vsyncadd [#allocation7], 4294966784 }
 0x8ae   :  { %4300 = dma.done.wait [#allocation15], 256  }
 0x8af   :  { %4301 = vsyncadd [#allocation15], 4294967040 }
 0x8b0   :  { %2938 = vsyncpa [#allocation6], 1 }
 0x8b1   :  { %2939 = vsyncpa [#allocation9], 1 }
 0x8b2   :  { %2940 = vsyncpa [#allocation12], 1 }
 0x8b3   :  { %2941 = vsyncpa [#allocation7], 1 }
 0x8b4   :  { %2942 = vsyncpa [#allocation15], 1 }

// kernel: tpu_custom_call.1
= control target key start
LH: loop header
LB: loop body
LE: loop exit
PB: predicated region body
PF: predicated region fallthrough
CT: control target
= control target key end

     0   :  { %15 = vsyncpa [#allocation6], 0  ;;  %s4896_s0 = inlined_call_operand.hbm [shape: bf16[1,64,128], index: 0, kind: input, shape index: {}]   ;;  %s4897_s1 = inlined_call_operand.hbm [shape: f32[1,2,8,128], index: 1, kind: input, shape index: {}]   ;;  %s4898_s2 = inlined_call_operand.hbm [shape: bf16[128,128], index: 2, kind: input, shape index: {}]   ;;  %s4899_s3 = inlined_call_operand.hbm [shape: bf16[128,128], index: 3, kind: input, shape index: {}]   ;;  %s4900_s4 = inlined_call_operand.hbm [shape: bf16[128,128], index: 4, kind: input, shape index: {}]   ;;  %s4901_s5 = inlined_call_operand.hbm [shape: bf16[128,128], index: 5, kind: input, shape index: {}]   ;;  %s4902_s6 = inlined_call_operand.hbm [shape: bf16[128,128], index: 6, kind: input, shape index: {}]   ;;  %s4903_s7 = inlined_call_operand.vmem [shape: f32[1,128], index: 7, kind: input, shape index: {}]   ;;  %s4904_s8 = inlined_call_operand.hbm [shape: bf16[1,64,128], index: 8, kind: output, shape index: {0}]   ;;  %s4905_s9 = inlined_call_operand.hbm [shape: f32[1,2,8,128], index: 9, kind: output, shape index: {1}]  }
   0x1   :  { %16 = vsyncpa [#allocation9], 0 }
   0x2   :  { %17 = vsyncpa [#allocation12], 0 }
   0x3   :  { %18 = vsyncpa [#allocation15], 0 }
   0x4   :  { %19 = vsyncpa [#allocation7], 0 }
   0x5   :  { %20 = vsyncpa [#allocation19], 0  ;;  %s4486_s30 = smov [#allocation8]  }
   0x6   :  { %s38_s10 = sshll.u32 %s4486_s30, 4  ;;  %s39_s10 = int_to_ptr.vmem [resolvable:$true] %s38_s10 }
   0x7   :  { %s4302_s11 = scalar_lea.vmem %s39_s10, 256  ;;  %p4307_p1 = scmp.lt.s32.totalorder %s39_s10, %s39_s10 }
   0x8   :  { %p4303_p0 = scmp.ne.s32.totalorder %s39_s10, %s4302_s11  ;;  %p4308_p2 = scmp.lt.s32.totalorder %s4302_s11, %s4302_s11 }
   0xa   :  { %p4309_p3 = por %p4308_p2, %p4307_p1 }
   0xc   :  { %p4310_p4 = pnand %p4309_p3, %p4303_p0 }
   0xe   :  { %4313 = shalt.err (!%p4310_p4)
}
   0xf   :  { %s4487_s12 = smov 128   ;;  %s4488_s13 = smov 8  }
  0x10   :  { %44 = dma.hbm_to_vmem [thread:$0]  %s4897_s1, 256, %s39_s10, [#allocation9], %s4487_s12, %s4487_s12, %s4488_s13  }
  0x11   :  { %s4489_s16 = smov [#allocation11]   ;;  %s4490_s18 = smov [#allocation14]  }
  0x12   :  { %s62_s17 = sshll.u32 %s4489_s16, 4  ;;  %s86_s19 = sshll.u32 %s4490_s18, 4  ;;  %s63_s17 = int_to_ptr.vmem [resolvable:$true] %s62_s17  ;;  %s87_s19 = int_to_ptr.vmem [resolvable:$true] %s86_s19 }
  0x13   :  { %s4322_s20 = scalar_lea.vmem %s63_s17, 1024  ;;  %p4327_p6 = scmp.lt.s32.totalorder %s63_s17, %s63_s17 }
  0x14   :  { %p4323_p5 = scmp.ne.s32.totalorder %s63_s17, %s4322_s20  ;;  %p4328_p7 = scmp.lt.s32.totalorder %s4322_s20, %s4322_s20 }
  0x16   :  { %p4329_p8 = por %p4328_p7, %p4327_p6 }
  0x18   :  { %p4330_p9 = pnand %p4329_p8, %p4323_p5 }
  0x1a   :  { %4333 = shalt.err (!%p4330_p9)
}
  0x1b   :  { %s4491_s21 = smov 64   ;;  %s4492_s22 = smov 4  }
  0x1c   :  { %68 = dma.hbm_to_vmem [thread:$0]  %s4899_s3, 1024, %s63_s17, [#allocation12], %s4491_s21, %s4491_s21, %s4492_s22  }
  0x1d   :  { %s4342_s1 = scalar_lea.vmem %s87_s19, 1024  ;;  %p4347_p11 = scmp.lt.s32.totalorder %s87_s19, %s87_s19 }
  0x1e   :  { %p4343_p10 = scmp.ne.s32.totalorder %s87_s19, %s4342_s1  ;;  %p4348_p12 = scmp.lt.s32.totalorder %s4342_s1, %s4342_s1 }
  0x20   :  { %p4349_p13 = por %p4348_p12, %p4347_p11 }
  0x22   :  { %p4350_p0 = pnand %p4349_p13, %p4343_p10 }
  0x24   :  { %4353 = shalt.err (!%p4350_p0)
}
  0x25   :  { %92 = dma.hbm_to_vmem [thread:$0]  %s4901_s5, 1024, %s87_s19, [#allocation15], %s4491_s21, %s4491_s21, %s4492_s22  }
  0x26   :  { %s4493_s27 = smov [#allocation5]   ;;  %s4494_s29 = smov [#allocation10]  }
  0x27   :  { %s26_s28 = sshll.u32 %s4493_s27, 4  ;;  %s50_s3 = sshll.u32 %s4494_s29, 4  ;;  %s27_s28 = int_to_ptr.vmem [resolvable:$true] %s26_s28  ;;  %s51_s3 = int_to_ptr.vmem [resolvable:$true] %s50_s3 }
  0x28   :  { %s4362_s30 = scalar_lea.vmem %s27_s28, 512  ;;  %p4367_p2 = scmp.lt.s32.totalorder %s27_s28, %s27_s28 }
  0x29   :  { %p4363_p1 = scmp.ne.s32.totalorder %s27_s28, %s4362_s30  ;;  %p4368_p3 = scmp.lt.s32.totalorder %s4362_s30, %s4362_s30 }
  0x2b   :  { %p4369_p4 = por %p4368_p3, %p4367_p2 }
  0x2d   :  { %p4370_p5 = pnand %p4369_p4, %p4363_p1 }
  0x2f   :  { %4373 = shalt.err (!%p4370_p5)
}
  0x30   :  { %32 = dma.hbm_to_vmem [thread:$0]  %s4896_s0, 512, %s27_s28, [#allocation6], %s4491_s21, %s4491_s21, %s4492_s22  }
  0x31   :  { %s4382_s5 = scalar_lea.vmem %s51_s3, 1024  ;;  %p4387_p7 = scmp.lt.s32.totalorder %s51_s3, %s51_s3 }
  0x32   :  { %p4383_p6 = scmp.ne.s32.totalorder %s51_s3, %s4382_s5  ;;  %p4388_p8 = scmp.lt.s32.totalorder %s4382_s5, %s4382_s5 }
  0x34   :  { %p4389_p9 = por %p4388_p8, %p4387_p7 }
  0x36   :  { %p4390_p10 = pnand %p4389_p9, %p4383_p6 }
  0x38   :  { %4393 = shalt.err (!%p4390_p10)
}
  0x39   :  { %56 = dma.hbm_to_vmem [thread:$0]  %s4898_s2, 1024, %s51_s3, [#allocation9], %s4491_s21, %s4491_s21, %s4492_s22  }
  0x3a   :  { %s4495_s16 = smov [#allocation13]   ;;  %s4496_s18 = smov [#allocation16]  }
  0x3b   :  { %s74_s17 = sshll.u32 %s4495_s16, 4  ;;  %s98_s0 = sshll.u32 %s4496_s18, 4  ;;  %s75_s17 = int_to_ptr.vmem [resolvable:$true] %s74_s17  ;;  %s99_s0 = int_to_ptr.vmem [resolvable:$true] %s98_s0 }
  0x3c   :  { %s4402_s19 = scalar_lea.vmem %s75_s17, 1024  ;;  %p4407_p12 = scmp.lt.s32.totalorder %s75_s17, %s75_s17 }
  0x3d   :  { %p4403_p11 = scmp.ne.s32.totalorder %s75_s17, %s4402_s19  ;;  %p4408_p13 = scmp.lt.s32.totalorder %s4402_s19, %s4402_s19 }
  0x3f   :  { %p4409_p0 = por %p4408_p13, %p4407_p12 }
  0x41   :  { %p4410_p1 = pnand %p4409_p0, %p4403_p11 }
  0x43   :  { %4413 = shalt.err (!%p4410_p1)
}
  0x44   :  { %80 = dma.hbm_to_vmem [thread:$0]  %s4900_s4, 1024, %s75_s17, [#allocation12], %s4491_s21, %s4491_s21, %s4492_s22  }
  0x45   :  { %s4422_s2 = scalar_lea.vmem %s99_s0, 1024  ;;  %p4427_p3 = scmp.lt.s32.totalorder %s99_s0, %s99_s0 }
  0x46   :  { %p4423_p2 = scmp.ne.s32.totalorder %s99_s0, %s4422_s2  ;;  %p4428_p4 = scmp.lt.s32.totalorder %s4422_s2, %s4422_s2 }
  0x48   :  { %p4429_p5 = por %p4428_p4, %p4427_p3 }
  0x4a   :  { %p4430_p6 = pnand %p4429_p5, %p4423_p2 }
  0x4c   :  { %4433 = shalt.err (!%p4430_p6)
}
  0x4d   :  { %104 = dma.hbm_to_vmem [thread:$0]  %s4902_s6, 1024, %s99_s0, [#allocation15], %s4491_s21, %s4491_s21, %s4492_s22  }
  0x4e   :  { %4474 = dma.done.wait [#allocation6], 512  }
  0x4f   :  { %4475 = vsyncadd [#allocation6], 4294966784 }
  0x50   :  { %4476 = dma.done.wait [#allocation9], 1280  }
  0x51   :  { %4477 = vsyncadd [#allocation9], 4294966016 }
  0x52   :  { %4478 = dma.done.wait [#allocation12], 2048  }
  0x53   :  { %4479 = vsyncadd [#allocation12], 4294965248 }
  0x54   :  { %4480 = dma.done.wait [#allocation15], 2048  }
  0x55   :  { %4481 = vsyncadd [#allocation15], 4294965248  ;;  %v4497_v0 = vmov 0.0   ;;  %vm4498_vm0 = vmmov 0   ;;  %v4058_v1 = vld [vmem:[#allocation10 + $0x38] sm:$0xff]   ;;  %v4060_v3 = vld [vmem:[#allocation10 + $0x30] sm:$0xff]  }
  0x56   :  { %3539 = vmatprep.subr.bf16.mxu1 %v4497_v0  ;;  %3555 = vmatprep.mubr.msk.bf16.mxu1 %vm4498_vm0, %v4497_v0  ;;  %v4059_v2 = vld [vmem:[#allocation13 + $0x38] sm:$0xff]   ;;  %v4061_v4 = vld [vmem:[#allocation13 + $0x30] sm:$0xff]   ;;  %v4062_v5 = vld [vmem:[#allocation10 + $0x28] sm:$0xff]   ;;  %s4499_s25 = smov [#allocation18]  }
  0x57   :  { %3515 = vmatprep.subr.bf16.mxu0 %v4058_v1  ;;  %3540 = vmatpush3.bf16.msra.mxu1 %v4059_v2  ;;  %v4063_v6 = vld [vmem:[#allocation13 + $0x28] sm:$0xff]   ;;  %v4064_v7 = vld [vmem:[#allocation10 + $0x20] sm:$0xff]   ;;  %v4066_v9 = vld [vmem:[#allocation10 + $0x18] sm:$0xff]   ;;  %s3012_s26 = sshll.u32 %s4499_s25, 4  ;;  %s3013_s26 = int_to_ptr.vmem [resolvable:$true] %s3012_s26 }
  0x58   :  { %3516 = vmatpush3.bf16.msra.mxu0 %v4058_v1  ;;  %3541 = vmatprep.subr.bf16.mxu1 %v4497_v0  ;;  %v4065_v8 = vld [vmem:[#allocation13 + $0x20] sm:$0xff]   ;;  %v4067_v10 = vld [vmem:[#allocation13 + $0x18] sm:$0xff]   ;;  %v4068_v11 = vld [vmem:[#allocation10 + $0x10] sm:$0xff]   ;;  %s4434_s27 = scalar_lea.vmem %s3013_s26, 256  ;;  %p4439_p8 = scmp.lt.s32.totalorder %s3013_s26, %s3013_s26 }
  0x59   :  { %3517 = vmatprep.subr.bf16.mxu0 %v4060_v3  ;;  %v4074_v12 = vld [vmem:[#allocation5] sm:$0xff]   ;;  %v4070_v14 = vld [vmem:[#allocation10 + $0x8] sm:$0xff]   ;;  %v4072_v16 = vld [vmem:[#allocation10] sm:$0xff]   ;;  %p4435_p7 = scmp.ne.s32.totalorder %s3013_s26, %s4434_s27  ;;  %p4440_p9 = scmp.lt.s32.totalorder %s4434_s27, %s4434_s27 }
  0x5a   :  { %v4069_v13 = vld [vmem:[#allocation13 + $0x10] sm:$0xff]   ;;  %3531 = vmatprep.mubr.bf16.mxu0 %v4074_v12  ;;  %v4071_v15 = vld [vmem:[#allocation13 + $0x8] sm:$0xff]   ;;  %v4073_v17 = vld [vmem:[#allocation13] sm:$0xff]  }
  0x5b   :  { %3542 = vmatpush3.bf16.msra.mxu1 %v4061_v4  ;;  %v133_v18 = vld [vmem:[#allocation8] sm:$0xff]  ;;  %v4075_v19 = vld [vmem:[#allocation5 + $0x8] sm:$0xff]   ;;  %v4076_v21 = vld [vmem:[#allocation5 + $0x10] sm:$0xff]   ;;  %p4441_p10 = por %p4440_p9, %p4439_p8 }
  0x5c   :  { %3518 = vmatpush3.bf16.msra.mxu0 %v4060_v3  ;;  %3543 = vmatprep.subr.bf16.mxu1 %v4497_v0  ;;  %v310_v20 = vpack.c.bf16 %v133_v18, %v133_v18  ;;  %v4077_v22 = vld [vmem:[#allocation5 + $0x18] sm:$0xff]   ;;  %v4078_v23 = vld [vmem:[#allocation14 + $0x38] sm:$0xff]   ;;  %v4079_v24 = vld [vmem:[#allocation14 + $0x30] sm:$0xff]  }
  0x5d   :  { %3519 = vmatprep.subr.bf16.mxu0 %v4062_v5  ;;  %v4081_v25 = vld [vmem:[#allocation14 + $0x28] sm:$0xff]   ;;  %v4083_v26 = vld [vmem:[#allocation14 + $0x20] sm:$0xff]   ;;  %v4085_v27 = vld [vmem:[#allocation14 + $0x18] sm:$0xff]   ;;  %p4442_p11 = pnand %p4441_p10, %p4435_p7 }
  0x5e   :  { %v4087_v28 = vld [vmem:[#allocation14 + $0x10] sm:$0xff]   ;;  %v4089_v29 = vld [vmem:[#allocation14 + $0x8] sm:$0xff]   ;;  %v4091_v30 = vld [vmem:[#allocation14] sm:$0xff]  }
  0x5f   :  { %3544 = vmatpush3.bf16.msra.mxu1 %v4063_v6  ;;  %v134_v31 = vld [vmem:[#allocation8 + $0x8] sm:$0xff]  ;;  %v4095_v34 = vld [vmem:[#allocation13 + $0x30] sm:$0xff]   ;;  %v4096_v35 = vld [vmem:[#allocation13 + $0x28] sm:$0xff]  }
  0x60   :  { %3520 = vmatpush3.bf16.msra.mxu0 %v4062_v5  ;;  %3545 = vmatprep.subr.bf16.mxu1 %v4497_v0  ;;  %v478_v32 = vpack.c.bf16 %v134_v31, %v134_v31  ;;  %v4094_v33 = vld [vmem:[#allocation13 + $0x38] sm:$0xff]   ;;  %v4097_v36 = vld [vmem:[#allocation13 + $0x20] sm:$0xff]   ;;  %v4082_v47 = vld [vmem:[#allocation11 + $0x30] sm:$0xff]  }
  0x61   :  { %3521 = vmatprep.subr.bf16.mxu0 %v4064_v7  ;;  %v4080_v45 = vld [vmem:[#allocation11 + $0x38] sm:$0xff]   ;;  %v4084_v48 = vld [vmem:[#allocation11 + $0x28] sm:$0xff]   ;;  %v4086_v49 = vld [vmem:[#allocation11 + $0x20] sm:$0xff]  }
  0x62   :  { %v4088_v50 = vld [vmem:[#allocation11 + $0x18] sm:$0xff]   ;;  %v4090_v51 = vld [vmem:[#allocation11 + $0x10] sm:$0xff]   ;;  %v4092_v52 = vld [vmem:[#allocation11 + $0x8] sm:$0xff]  }
  0x63   :  { %3546 = vmatpush3.bf16.msra.mxu1 %v4065_v8  ;;  %v4093_v53 = vld [vmem:[#allocation11] sm:$0xff]   ;;  %v4098_v54 = vld [vmem:[#allocation13 + $0x18] sm:$0xff]   ;;  %v4099_v55 = vld [vmem:[#allocation13 + $0x10] sm:$0xff]  }
  0x64   :  { %3522 = vmatpush3.bf16.msra.mxu0 %v4064_v7  ;;  %3547 = vmatprep.subr.bf16.mxu1 %v4497_v0  ;;  %v4100_v56 = vld [vmem:[#allocation13 + $0x8] sm:$0xff]   ;;  %v4101_v57 = vld [vmem:[#allocation13] sm:$0xff]   ;;  %v4102_v58 = vld [vmem:[#allocation14 + $0x38] sm:$0xff]  }
  0x65   :  { %3523 = vmatprep.subr.bf16.mxu0 %v4066_v9  ;;  %v4104_v59 = vld [vmem:[#allocation14 + $0x30] sm:$0xff]   ;;  %v4106_v60 = vld [vmem:[#allocation14 + $0x28] sm:$0xff]   ;;  %v4108_v1 = vld [vmem:[#allocation14 + $0x20] sm:$0xff]  }
  0x66   :  { %v4110_v3 = vld [vmem:[#allocation14 + $0x18] sm:$0xff]   ;;  %v4114_v5 = vld [vmem:[#allocation14 + $0x8] sm:$0xff]  }
  0x67   :  { %3548 = vmatpush3.bf16.msra.mxu1 %v4067_v10  ;;  %v4115_v31 = vld [vmem:[#allocation11 + $0x8] sm:$0xff]  }
  0x68   :  { %3524 = vmatpush3.bf16.msra.mxu0 %v4066_v9  ;;  %3549 = vmatprep.subr.bf16.mxu1 %v4497_v0 }
  0x69   :  { %3525 = vmatprep.subr.bf16.mxu0 %v4068_v11 }
  0x6b   :  { %3550 = vmatpush3.bf16.msra.mxu1 %v4069_v13 }
  0x6c   :  { %3526 = vmatpush3.bf16.msra.mxu0 %v4068_v11  ;;  %3551 = vmatprep.subr.bf16.mxu1 %v4497_v0 }
  0x6d   :  { %3527 = vmatprep.subr.bf16.mxu0 %v4070_v14 }
  0x6f   :  { %3552 = vmatpush3.bf16.msra.mxu1 %v4071_v15 }
  0x70   :  { %3528 = vmatpush3.bf16.msra.mxu0 %v4070_v14  ;;  %3553 = vmatprep.subr.bf16.mxu1 %v4497_v0 }
  0x71   :  { %3529 = vmatprep.subr.bf16.mxu0 %v4072_v16 }
  0x73   :  { %3554 = vmatpush3.bf16.msra.mxu1 %v4073_v17 }
  0x74   :  { %3530 = vmatpush3.bf16.msra.mxu0 %v4072_v16  ;;  %3579 = vmatprep.subr.bf16.mxu1 %v4497_v0 }
  0x75   :  { %3559 = vmatprep.subr.bf16.mxu0 %v4497_v0 }
  0x76   :  { %3556 = vmatmul.mubr.bf16.vlgmr.msra.gmra.mxu1 %v310_v20 }
  0x77   :  { %3532 = vmatmul.mubr.bf16.vlgmr.msra.gmra.mxu0 %v4075_v19  ;;  %3595 = vmatprep.mubr.msk.bf16.mxu1 %vm4498_vm0, %v4497_v0  ;;  %v4103_v19 = vld [vmem:[#allocation11 + $0x38] sm:$0xff]  }
  0x78   :  { %3560 = vmatpush3.bf16.msra.mxu0 %v4059_v2  ;;  %3535 = vmatprep.mubr.bf16.mxu0 %v4076_v21  ;;  %v4105_v21 = vld [vmem:[#allocation11 + $0x30] sm:$0xff]  }
  0x79   :  { %3561 = vmatprep.subr.bf16.mxu0 %v4497_v0  ;;  %3580 = vmatpush3.bf16.msra.mxu1 %v4078_v23  ;;  %v4109_v23 = vld [vmem:[#allocation11 + $0x20] sm:$0xff]  }
  0x7a   :  { %3581 = vmatprep.subr.bf16.mxu1 %v4497_v0 }
  0x7c   :  { %3562 = vmatpush3.bf16.msra.mxu0 %v4061_v4  ;;  %v4112_v4 = vld [vmem:[#allocation14 + $0x10] sm:$0xff]  }
  0x7d   :  { %3563 = vmatprep.subr.bf16.mxu0 %v4497_v0  ;;  %3582 = vmatpush3.bf16.msra.mxu1 %v4079_v24 }
  0x7e   :  { %3583 = vmatprep.subr.bf16.mxu1 %v4497_v0 }
  0x7f   :  { %3536 = vmatmul.mubr.bf16.gmra.mxu0 %v4077_v22  ;;  %v4107_v22 = vld [vmem:[#allocation11 + $0x28] sm:$0xff]  }
  0x80   :  { %3564 = vmatpush3.bf16.msra.mxu0 %v4063_v6  ;;  %3575 = vmatprep.mubr.msk.bf16.mxu0 %vm4498_vm0, %v4497_v0  ;;  %v4116_v6 = vld [vmem:[#allocation14] sm:$0xff]  }
  0x81   :  { %3565 = vmatprep.subr.bf16.mxu0 %v4497_v0  ;;  %3584 = vmatpush3.bf16.msra.mxu1 %v4081_v25  ;;  %v4111_v25 = vld [vmem:[#allocation11 + $0x18] sm:$0xff]  }
  0x82   :  { %3585 = vmatprep.subr.bf16.mxu1 %v4497_v0 }
  0x84   :  { %3566 = vmatpush3.bf16.msra.mxu0 %v4065_v8 }
  0x85   :  { %3567 = vmatprep.subr.bf16.mxu0 %v4497_v0  ;;  %3586 = vmatpush3.bf16.msra.mxu1 %v4083_v26 }
  0x86   :  { %3587 = vmatprep.subr.bf16.mxu1 %v4497_v0 }
  0x88   :  { %3568 = vmatpush3.bf16.msra.mxu0 %v4067_v10 }
  0x89   :  { %3569 = vmatprep.subr.bf16.mxu0 %v4497_v0  ;;  %3588 = vmatpush3.bf16.msra.mxu1 %v4085_v27 }
  0x8a   :  { %3589 = vmatprep.subr.bf16.mxu1 %v4497_v0 }
  0x8c   :  { %3570 = vmatpush3.bf16.msra.mxu0 %v4069_v13 }
  0x8d   :  { %3571 = vmatprep.subr.bf16.mxu0 %v4497_v0  ;;  %3590 = vmatpush3.bf16.msra.mxu1 %v4087_v28 }
  0x8e   :  { %3591 = vmatprep.subr.bf16.mxu1 %v4497_v0 }
  0x90   :  { %3572 = vmatpush3.bf16.msra.mxu0 %v4071_v15 }
  0x91   :  { %3573 = vmatprep.subr.bf16.mxu0 %v4497_v0  ;;  %3592 = vmatpush3.bf16.msra.mxu1 %v4089_v29  ;;  %v4113_v29 = vld [vmem:[#allocation11 + $0x10] sm:$0xff]  }
  0x92   :  { %3593 = vmatprep.subr.bf16.mxu1 %v4497_v0 }
  0x94   :  { %3574 = vmatpush3.bf16.msra.mxu0 %v4073_v17 }
  0x95   :  { %3599 = vmatprep.subr.bf16.mxu0 %v4497_v0  ;;  %3594 = vmatpush3.bf16.msra.mxu1 %v4091_v30 }
  0x96   :  { %3619 = vmatprep.subr.bf16.mxu1 %v4497_v0 }
  0x98   :  { %3596 = vmatmul.mubr.bf16.vlgmr.msra.gmra.mxu1 %v478_v32  ;;  %v4117_v32 = vld [vmem:[#allocation11] sm:$0xff]  }
  0x99   :  { %3635 = vmatprep.mubr.msk.bf16.mxu1 %vm4498_vm0, %v4497_v0  ;;  %3620 = vmatpush3.bf16.msra.mxu1 %v4094_v33 }
  0x9a   :  { %3621 = vmatprep.subr.bf16.mxu1 %v4497_v0 }
  0x9d   :  { %3622 = vmatpush3.bf16.msra.mxu1 %v4095_v34  ;;  %v4118_v34 = vld [vmem:[#allocation13 + $0x38] sm:$0xff]  }
  0x9e   :  { %3623 = vmatprep.subr.bf16.mxu1 %v4497_v0 }
  0xa1   :  { %3624 = vmatpush3.bf16.msra.mxu1 %v4096_v35 }
  0xa2   :  { %3625 = vmatprep.subr.bf16.mxu1 %v4497_v0 }
  0xa5   :  { %3626 = vmatpush3.bf16.msra.mxu1 %v4097_v36  ;;  %v4119_v36 = vld [vmem:[#allocation13 + $0x30] sm:$0xff]  }
  0xa6   :  { %3627 = vmatprep.subr.bf16.mxu1 %v4497_v0 }
  0xa9   :  { %3628 = vmatpush3.bf16.msra.mxu1 %v4098_v54 }
  0xaa   :  { %3629 = vmatprep.subr.bf16.mxu1 %v4497_v0 }
  0xad   :  { %3630 = vmatpush3.bf16.msra.mxu1 %v4099_v55 }
  0xae   :  { %3631 = vmatprep.subr.bf16.mxu1 %v4497_v0 }
  0xb1   :  { %3632 = vmatpush3.bf16.msra.mxu1 %v4100_v56 }
  0xb2   :  { %3633 = vmatprep.subr.bf16.mxu1 %v4497_v0 }
  0xb5   :  { %3634 = vmatpush3.bf16.msra.mxu1 %v4101_v57 }
  0xb6   :  { %3659 = vmatprep.subr.bf16.mxu1 %v4497_v0 }
 0x136   :  { %v409_v37 = vpop.f32.mrf.mxu1 }
 0x137   :  { %v4631_v38 = vpop.f32.mrf.mxu0 }
 0x138   :  { %v3557_v39 = vpop.f32.mrf.mxu1 }
 0x139   :  { %v267_v40 = vpop.f32.mrf.mxu0  ;;  %v4121_v39 = vld [vmem:[#allocation13 + $0x20] sm:$0xff]  }
 0x13a   :  { %v415_v41 = vadd.f32 %v409_v37, %v267_v40  ;;  %v412_v42 = vpop.f32.mrf.mxu1  ;;  %v4120_v37 = vld [vmem:[#allocation13 + $0x28] sm:$0xff]   ;;  %v4122_v40 = vld [vmem:[#allocation13 + $0x18] sm:$0xff]  }
 0x13b   :  { %v4657_v7 = vpop.f32.mrf.mxu0  ;;  %v4124_v42 = vld [vmem:[#allocation13 + $0x8] sm:$0xff]  }
 0x13c   :  { %4262 = vtanh.f32 %v415_v41  ;;  %v3558_v43 = vpop.f32.mrf.mxu1  ;;  %v4123_v41 = vld [vmem:[#allocation13 + $0x10] sm:$0xff]  }
 0x13d   :  { %v270_v8 = vpop.f32.mrf.mxu0  ;;  %v4125_v43 = vld [vmem:[#allocation13] sm:$0xff]  }
 0x13f   :  { %v4659_v9 = vpop.f32.mrf.mxu0 }
 0x141   :  { %v4661_v10 = vpop.f32.mrf.mxu0 }
 0x143   :  { %v4663_v11 = vpop.f32.mrf.mxu0 }
 0x145   :  { %v4665_v12 = vpop.f32.mrf.mxu0 }
 0x149   :  { %v4263_v44 = vpop.eup %4262 }
 0x14a   :  { %v417_v46 = vpack.c.bf16 %v4263_v44, %v4263_v44  ;;  %v4126_v44 = vld [vmem:[#allocation14 + $0x38] sm:$0xff]  }
 0x14c   :  { %3576 = vmatmul.mubr.bf16.vlgmr.msra.gmra.mxu0 %v417_v46 }
 0x14d   :  { %3600 = vmatpush3.bf16.msra.mxu0 %v4080_v45  ;;  %3615 = vmatprep.mubr.msk.bf16.mxu0 %vm4498_vm0, %v4497_v0  ;;  %v4128_v45 = vld [vmem:[#allocation14 + $0x30] sm:$0xff]  }
 0x14e   :  { %3601 = vmatprep.subr.bf16.mxu0 %v4497_v0 }
 0x151   :  { %3602 = vmatpush3.bf16.msra.mxu0 %v4082_v47  ;;  %v4132_v47 = vld [vmem:[#allocation14 + $0x20] sm:$0xff]  }
 0x152   :  { %3603 = vmatprep.subr.bf16.mxu0 %v4497_v0 }
 0x155   :  { %3604 = vmatpush3.bf16.msra.mxu0 %v4084_v48  ;;  %v4134_v48 = vld [vmem:[#allocation14 + $0x18] sm:$0xff]  }
 0x156   :  { %3605 = vmatprep.subr.bf16.mxu0 %v4497_v0 }
 0x158   :  { %v577_v61 = vpop.f32.mrf.mxu1 }
 0x159   :  { %3606 = vmatpush3.bf16.msra.mxu0 %v4086_v49  ;;  %v4136_v49 = vld [vmem:[#allocation14 + $0x10] sm:$0xff]  }
 0x15a   :  { %3607 = vmatprep.subr.bf16.mxu0 %v4497_v0  ;;  %v3597_v62 = vpop.f32.mrf.mxu1 }
 0x15c   :  { %v580_v63 = vpop.f32.mrf.mxu1 }
 0x15d   :  { %3608 = vmatpush3.bf16.msra.mxu0 %v4088_v50  ;;  %v4138_v50 = vld [vmem:[#allocation14 + $0x8] sm:$0xff]  }
 0x15e   :  { %3609 = vmatprep.subr.bf16.mxu0 %v4497_v0  ;;  %v3598_v2 = vpop.f32.mrf.mxu1 }
 0x161   :  { %3610 = vmatpush3.bf16.msra.mxu0 %v4090_v51  ;;  %v4140_v51 = vld [vmem:[#allocation14] sm:$0xff]  }
 0x162   :  { %3611 = vmatprep.subr.bf16.mxu0 %v4497_v0 }
 0x165   :  { %3612 = vmatpush3.bf16.msra.mxu0 %v4092_v52 }
 0x166   :  { %3613 = vmatprep.subr.bf16.mxu0 %v4497_v0 }
 0x169   :  { %3614 = vmatpush3.bf16.msra.mxu0 %v4093_v53 }
 0x16a   :  { %3639 = vmatprep.subr.bf16.mxu0 %v4497_v0 }
 0x16c   :  { %3616 = vmatmul.mubr.bf16.vlgmr.msra.gmra.mxu0 %v417_v46  ;;  %v4130_v46 = vld [vmem:[#allocation14 + $0x28] sm:$0xff]  }
 0x16d   :  { %3655 = vmatprep.mubr.msk.bf16.mxu0 %vm4498_vm0, %v4497_v0  ;;  %3640 = vmatpush3.bf16.msra.mxu0 %v4102_v58  ;;  %v4127_v58 = vld [vmem:[#allocation11 + $0x38] sm:$0xff]  }
 0x16e   :  { %3641 = vmatprep.subr.bf16.mxu0 %v4497_v0 }
 0x171   :  { %3642 = vmatpush3.bf16.msra.mxu0 %v4104_v59 }
 0x172   :  { %3643 = vmatprep.subr.bf16.mxu0 %v4497_v0 }
 0x175   :  { %3644 = vmatpush3.bf16.msra.mxu0 %v4106_v60  ;;  %v4129_v60 = vld [vmem:[#allocation11 + $0x30] sm:$0xff]  }
 0x176   :  { %3645 = vmatprep.subr.bf16.mxu0 %v4497_v0 }
 0x179   :  { %3646 = vmatpush3.bf16.msra.mxu0 %v4108_v1  ;;  %v4135_v1 = vld [vmem:[#allocation11 + $0x18] sm:$0xff]  }
 0x17a   :  { %3647 = vmatprep.subr.bf16.mxu0 %v4497_v0 }
 0x17d   :  { %3648 = vmatpush3.bf16.msra.mxu0 %v4110_v3 }
 0x17e   :  { %3649 = vmatprep.subr.bf16.mxu0 %v4497_v0 }
 0x181   :  { %3650 = vmatpush3.bf16.msra.mxu0 %v4112_v4 }
 0x182   :  { %3651 = vmatprep.subr.bf16.mxu0 %v4497_v0 }
 0x185   :  { %3652 = vmatpush3.bf16.msra.mxu0 %v4114_v5 }
 0x186   :  { %3653 = vmatprep.subr.bf16.mxu0 %v4497_v0 }
 0x189   :  { %3654 = vmatpush3.bf16.msra.mxu0 %v4116_v6 }
 0x18a   :  { %3679 = vmatprep.subr.bf16.mxu0 %v4497_v0 }
 0x20c   :  { %v453_v13 = vpop.f32.mrf.mxu0 }
 0x20d   :  { %v459_v14 = vadd.f32 %v453_v13, %v270_v8  ;;  %v4137_v8 = vld [vmem:[#allocation11 + $0x10] sm:$0xff]  }
 0x20e   :  { %v3577_v15 = vpop.f32.mrf.mxu0 }
 0x20f   :  { %4264 = vtanh.f32 %v459_v14  ;;  %v4139_v15 = vld [vmem:[#allocation11 + $0x8] sm:$0xff]  }
 0x210   :  { %v456_v16 = vpop.f32.mrf.mxu0 }
 0x211   :  { %v4141_v16 = vld [vmem:[#allocation11] sm:$0xff]  }
 0x212   :  { %v3578_v17 = vpop.f32.mrf.mxu0 }
 0x21c   :  { %v4265_v18 = vpop.eup %4264 }
 0x21d   :  { %v461_v20 = vpack.c.bf16 %v4265_v18, %v4265_v18  ;;  %v4142_v18 = vld [vmem:[#allocation13 + $0x38] sm:$0xff]  }
 0x21f   :  { %3636 = vmatmul.mubr.bf16.vlgmr.msra.gmra.mxu1 %v461_v20 }
 0x220   :  { %3660 = vmatpush3.bf16.msra.mxu1 %v4103_v19  ;;  %3675 = vmatprep.mubr.msk.bf16.mxu1 %vm4498_vm0, %v4497_v0 }
 0x221   :  { %3661 = vmatprep.subr.bf16.mxu1 %v4497_v0 }
 0x224   :  { %3662 = vmatpush3.bf16.msra.mxu1 %v4105_v21  ;;  %v4144_v21 = vld [vmem:[#allocation13 + $0x28] sm:$0xff]  }
 0x225   :  { %3663 = vmatprep.subr.bf16.mxu1 %v4497_v0 }
 0x228   :  { %3664 = vmatpush3.bf16.msra.mxu1 %v4107_v22  ;;  %v4145_v22 = vld [vmem:[#allocation13 + $0x20] sm:$0xff]  }
 0x229   :  { %3665 = vmatprep.subr.bf16.mxu1 %v4497_v0 }
 0x22c   :  { %v665_v24 = vpop.f32.mrf.mxu0  ;;  %3666 = vmatpush3.bf16.msra.mxu1 %v4109_v23  ;;  %v4146_v23 = vld [vmem:[#allocation13 + $0x18] sm:$0xff]  }
 0x22d   :  { %v666_v26 = vadd.f32 %v665_v24, %v577_v61  ;;  %3667 = vmatprep.subr.bf16.mxu1 %v4497_v0  ;;  %v4131_v61 = vld [vmem:[#allocation11 + $0x28] sm:$0xff]   ;;  %v4147_v24 = vld [vmem:[#allocation13 + $0x10] sm:$0xff]  }
 0x22e   :  { %v3617_v27 = vpop.f32.mrf.mxu0 }
 0x22f   :  { %4266 = vtanh.f32 %v666_v26  ;;  %v4149_v26 = vld [vmem:[#allocation13] sm:$0xff]   ;;  %v4150_v27 = vld [vmem:[#allocation14 + $0x38] sm:$0xff]  }
 0x230   :  { %v668_v28 = vpop.f32.mrf.mxu0  ;;  %3668 = vmatpush3.bf16.msra.mxu1 %v4111_v25  ;;  %v4148_v25 = vld [vmem:[#allocation13 + $0x8] sm:$0xff]  }
 0x231   :  { %3669 = vmatprep.subr.bf16.mxu1 %v4497_v0  ;;  %v4152_v28 = vld [vmem:[#allocation14 + $0x30] sm:$0xff]  }
 0x232   :  { %v3618_v30 = vpop.f32.mrf.mxu0 }
 0x233   :  { %v4156_v30 = vld [vmem:[#allocation14 + $0x20] sm:$0xff]  }
 0x234   :  { %3670 = vmatpush3.bf16.msra.mxu1 %v4113_v29  ;;  %v4154_v29 = vld [vmem:[#allocation14 + $0x28] sm:$0xff]  }
 0x235   :  { %3671 = vmatprep.subr.bf16.mxu1 %v4497_v0 }
 0x238   :  { %3672 = vmatpush3.bf16.msra.mxu1 %v4115_v31  ;;  %v4158_v31 = vld [vmem:[#allocation14 + $0x18] sm:$0xff]  }
 0x239   :  { %3673 = vmatprep.subr.bf16.mxu1 %v4497_v0 }
 0x23c   :  { %v4676_v33 = vpop.eup %4266  ;;  %3674 = vmatpush3.bf16.msra.mxu1 %v4117_v32  ;;  %v4160_v32 = vld [vmem:[#allocation14 + $0x10] sm:$0xff]  }
 0x23d   :  { %v797_v35 = vpack.c.bf16 %v4676_v33, %v4676_v33  ;;  %3699 = vmatprep.subr.bf16.mxu1 %v4497_v0 }
 0x23f   :  { %3656 = vmatmul.mubr.bf16.vlgmr.msra.gmra.mxu0 %v797_v35  ;;  %3676 = vmatmul.mubr.bf16.vlgmr.msra.gmra.mxu1 %v461_v20  ;;  %v4143_v20 = vld [vmem:[#allocation13 + $0x30] sm:$0xff]   ;;  %v4164_v35 = vld [vmem:[#allocation14] sm:$0xff]  }
 0x240   :  { %3680 = vmatpush3.bf16.msra.mxu0 %v4118_v34  ;;  %3695 = vmatprep.mubr.msk.bf16.mxu0 %vm4498_vm0, %v4497_v0  ;;  %v4162_v34 = vld [vmem:[#allocation14 + $0x8] sm:$0xff]  }
 0x241   :  { %3681 = vmatprep.subr.bf16.mxu0 %v4497_v0  ;;  %3715 = vmatprep.mubr.msk.bf16.mxu1 %vm4498_vm0, %v4497_v0 }
 0x242   :  { %3700 = vmatpush3.bf16.msra.mxu1 %v4126_v44 }
 0x243   :  { %3701 = vmatprep.subr.bf16.mxu1 %v4497_v0 }
 0x244   :  { %3682 = vmatpush3.bf16.msra.mxu0 %v4119_v36 }
 0x245   :  { %3683 = vmatprep.subr.bf16.mxu0 %v4497_v0 }
 0x246   :  { %3702 = vmatpush3.bf16.msra.mxu1 %v4128_v45  ;;  %v4153_v45 = vld [vmem:[#allocation11 + $0x30] sm:$0xff]  }
 0x247   :  { %3703 = vmatprep.subr.bf16.mxu1 %v4497_v0 }
 0x248   :  { %3684 = vmatpush3.bf16.msra.mxu0 %v4120_v37 }
 0x249   :  { %3685 = vmatprep.subr.bf16.mxu0 %v4497_v0 }
 0x24a   :  { %3704 = vmatpush3.bf16.msra.mxu1 %v4130_v46  ;;  %v4155_v46 = vld [vmem:[#allocation11 + $0x28] sm:$0xff]  }
 0x24b   :  { %3705 = vmatprep.subr.bf16.mxu1 %v4497_v0 }
 0x24c   :  { %3686 = vmatpush3.bf16.msra.mxu0 %v4121_v39 }
 0x24d   :  { %3687 = vmatprep.subr.bf16.mxu0 %v4497_v0 }
 0x24e   :  { %3706 = vmatpush3.bf16.msra.mxu1 %v4132_v47 }
 0x24f   :  { %3707 = vmatprep.subr.bf16.mxu1 %v4497_v0 }
 0x250   :  { %3688 = vmatpush3.bf16.msra.mxu0 %v4122_v40 }
 0x251   :  { %3689 = vmatprep.subr.bf16.mxu0 %v4497_v0 }
 0x252   :  { %3708 = vmatpush3.bf16.msra.mxu1 %v4134_v48 }
 0x253   :  { %3709 = vmatprep.subr.bf16.mxu1 %v4497_v0 }
 0x254   :  { %3690 = vmatpush3.bf16.msra.mxu0 %v4123_v41 }
 0x255   :  { %3691 = vmatprep.subr.bf16.mxu0 %v4497_v0 }
 0x256   :  { %3710 = vmatpush3.bf16.msra.mxu1 %v4136_v49  ;;  %v4159_v49 = vld [vmem:[#allocation11 + $0x18] sm:$0xff]  }
 0x257   :  { %3711 = vmatprep.subr.bf16.mxu1 %v4497_v0 }
 0x258   :  { %3692 = vmatpush3.bf16.msra.mxu0 %v4124_v42 }
 0x259   :  { %3693 = vmatprep.subr.bf16.mxu0 %v4497_v0 }
 0x25a   :  { %3712 = vmatpush3.bf16.msra.mxu1 %v4138_v50 }
 0x25b   :  { %3713 = vmatprep.subr.bf16.mxu1 %v4497_v0 }
 0x25c   :  { %3694 = vmatpush3.bf16.msra.mxu0 %v4125_v43  ;;  %v4151_v43 = vld [vmem:[#allocation11 + $0x38] sm:$0xff]  }
 0x25d   :  { %3719 = vmatprep.subr.bf16.mxu0 %v4497_v0 }
 0x25e   :  { %3714 = vmatpush3.bf16.msra.mxu1 %v4140_v51 }
 0x25f   :  { %3739 = vmatprep.subr.bf16.mxu1 %v4497_v0 }
 0x2df   :  { %v772_v52 = vpop.f32.mrf.mxu1 }
 0x2e0   :  { %v778_v53 = vadd.f32 %v4631_v38, %v772_v52  ;;  %v4133_v38 = vld [vmem:[#allocation11 + $0x20] sm:$0xff]  }
 0x2e1   :  { %v3637_v54 = vpop.f32.mrf.mxu1 }
 0x2e2   :  { %4268 = vtanh.f32 %v778_v53 }
 0x2e3   :  { %v775_v55 = vpop.f32.mrf.mxu1 }
 0x2e4   :  { %v4161_v55 = vld [vmem:[#allocation11 + $0x10] sm:$0xff]  }
 0x2e5   :  { %v3638_v56 = vpop.f32.mrf.mxu1 }
 0x2ef   :  { %v4269_v57 = vpop.eup %4268 }
 0x2f0   :  { %v780_v59 = vpack.c.bf16 %v4269_v57, %v4269_v57 }
 0x2f2   :  { %3696 = vmatmul.mubr.bf16.vlgmr.msra.gmra.mxu0 %v780_v59 }
 0x2f3   :  { %3720 = vmatpush3.bf16.msra.mxu0 %v4127_v58  ;;  %3735 = vmatprep.mubr.msk.bf16.mxu0 %vm4498_vm0, %v4497_v0  ;;  %v4163_v58 = vld [vmem:[#allocation11 + $0x8] sm:$0xff]  }
 0x2f4   :  { %3721 = vmatprep.subr.bf16.mxu0 %v4497_v0 }
 0x2f7   :  { %3722 = vmatpush3.bf16.msra.mxu0 %v4129_v60 }
 0x2f8   :  { %3723 = vmatprep.subr.bf16.mxu0 %v4497_v0 }
 0x2fb   :  { %3724 = vmatpush3.bf16.msra.mxu0 %v4131_v61  ;;  %v4166_v61 = vld [vmem:[#allocation13 + $0x38] sm:$0xff]  }
 0x2fc   :  { %3725 = vmatprep.subr.bf16.mxu0 %v4497_v0 }
 0x2ff   :  { %v896_v62 = vpop.f32.mrf.mxu0  ;;  %v984_v63 = vpop.f32.mrf.mxu1  ;;  %3726 = vmatpush3.bf16.msra.mxu0 %v4133_v38 }
 0x300   :  { %v985_v2 = vadd.f32 %v984_v63, %v896_v62  ;;  %3727 = vmatprep.subr.bf16.mxu0 %v4497_v0  ;;  %v4167_v62 = vld [vmem:[#allocation13 + $0x30] sm:$0xff]   ;;  %v4168_v63 = vld [vmem:[#allocation13 + $0x28] sm:$0xff]  }
 0x301   :  { %v3657_v3 = vpop.f32.mrf.mxu0  ;;  %v3677_v4 = vpop.f32.mrf.mxu1 }
 0x302   :  { %4270 = vtanh.f32 %v985_v2  ;;  %v4170_v2 = vld [vmem:[#allocation13 + $0x18] sm:$0xff]   ;;  %v4171_v3 = vld [vmem:[#allocation13 + $0x10] sm:$0xff]   ;;  %v4172_v4 = vld [vmem:[#allocation13 + $0x8] sm:$0xff]  }
 0x303   :  { %v899_v5 = vpop.f32.mrf.mxu0  ;;  %v987_v6 = vpop.f32.mrf.mxu1  ;;  %3728 = vmatpush3.bf16.msra.mxu0 %v4135_v1  ;;  %v4169_v1 = vld [vmem:[#allocation13 + $0x20] sm:$0xff]  }
 0x304   :  { %3729 = vmatprep.subr.bf16.mxu0 %v4497_v0  ;;  %v4173_v5 = vld [vmem:[#allocation13] sm:$0xff]   ;;  %v4174_v6 = vld [vmem:[#allocation14 + $0x38] sm:$0xff]  }
 0x305   :  { %v3658_v13 = vpop.f32.mrf.mxu0  ;;  %v3678_v14 = vpop.f32.mrf.mxu1 }
 0x306   :  { %v4178_v13 = vld [vmem:[#allocation14 + $0x28] sm:$0xff]   ;;  %v4180_v14 = vld [vmem:[#allocation14 + $0x20] sm:$0xff]  }
 0x307   :  { %3730 = vmatpush3.bf16.msra.mxu0 %v4137_v8  ;;  %v4176_v8 = vld [vmem:[#allocation14 + $0x30] sm:$0xff]  }
 0x308   :  { %3731 = vmatprep.subr.bf16.mxu0 %v4497_v0 }
 0x30b   :  { %3732 = vmatpush3.bf16.msra.mxu0 %v4139_v15  ;;  %v4182_v15 = vld [vmem:[#allocation14 + $0x18] sm:$0xff]  }
 0x30c   :  { %3733 = vmatprep.subr.bf16.mxu0 %v4497_v0 }
 0x30f   :  { %v4711_v17 = vpop.eup %4270  ;;  %3734 = vmatpush3.bf16.msra.mxu0 %v4141_v16  ;;  %v4184_v16 = vld [vmem:[#allocation14 + $0x10] sm:$0xff]  }
 0x310   :  { %v1116_v19 = vpack.c.bf16 %v4711_v17, %v4711_v17  ;;  %3759 = vmatprep.subr.bf16.mxu0 %v4497_v0 }
 0x312   :  { %3716 = vmatmul.mubr.bf16.vlgmr.msra.gmra.mxu1 %v1116_v19  ;;  %3736 = vmatmul.mubr.bf16.vlgmr.msra.gmra.mxu0 %v780_v59  ;;  %v4165_v59 = vld [vmem:[#allocation11] sm:$0xff]  }
 0x313   :  { %3740 = vmatpush3.bf16.msra.mxu1 %v4142_v18  ;;  %3755 = vmatprep.mubr.msk.bf16.mxu1 %vm4498_vm0, %v4497_v0  ;;  %v4186_v18 = vld [vmem:[#allocation14 + $0x8] sm:$0xff]   ;;  %v4188_v19 = vld [vmem:[#allocation14] sm:$0xff]  }
 0x314   :  { %3741 = vmatprep.subr.bf16.mxu1 %v4497_v0  ;;  %3775 = vmatprep.mubr.msk.bf16.mxu0 %vm4498_vm0, %v4497_v0 }
 0x315   :  { %3760 = vmatpush3.bf16.msra.mxu0 %v4150_v27 }
 0x316   :  { %3761 = vmatprep.subr.bf16.mxu0 %v4497_v0 }
 0x317   :  { %3742 = vmatpush3.bf16.msra.mxu1 %v4143_v20 }
 0x318   :  { %3743 = vmatprep.subr.bf16.mxu1 %v4497_v0 }
 0x319   :  { %3762 = vmatpush3.bf16.msra.mxu0 %v4152_v28  ;;  %v4177_v28 = vld [vmem:[#allocation11 + $0x30] sm:$0xff]  }
 0x31a   :  { %3763 = vmatprep.subr.bf16.mxu0 %v4497_v0 }
 0x31b   :  { %3744 = vmatpush3.bf16.msra.mxu1 %v4144_v21 }
 0x31c   :  { %3745 = vmatprep.subr.bf16.mxu1 %v4497_v0 }
 0x31d   :  { %3764 = vmatpush3.bf16.msra.mxu0 %v4154_v29  ;;  %v4179_v29 = vld [vmem:[#allocation11 + $0x28] sm:$0xff]  }
 0x31e   :  { %3765 = vmatprep.subr.bf16.mxu0 %v4497_v0 }
 0x31f   :  { %3746 = vmatpush3.bf16.msra.mxu1 %v4145_v22 }
 0x320   :  { %3747 = vmatprep.subr.bf16.mxu1 %v4497_v0 }
 0x321   :  { %3766 = vmatpush3.bf16.msra.mxu0 %v4156_v30 }
 0x322   :  { %3767 = vmatprep.subr.bf16.mxu0 %v4497_v0 }
 0x323   :  { %3748 = vmatpush3.bf16.msra.mxu1 %v4146_v23 }
 0x324   :  { %3749 = vmatprep.subr.bf16.mxu1 %v4497_v0 }
 0x325   :  { %3768 = vmatpush3.bf16.msra.mxu0 %v4158_v31 }
 0x326   :  { %3769 = vmatprep.subr.bf16.mxu0 %v4497_v0 }
 0x327   :  { %3750 = vmatpush3.bf16.msra.mxu1 %v4147_v24 }
 0x328   :  { %3751 = vmatprep.subr.bf16.mxu1 %v4497_v0 }
 0x329   :  { %3770 = vmatpush3.bf16.msra.mxu0 %v4160_v32  ;;  %v4183_v32 = vld [vmem:[#allocation11 + $0x18] sm:$0xff]  }
 0x32a   :  { %3771 = vmatprep.subr.bf16.mxu0 %v4497_v0 }
 0x32b   :  { %3752 = vmatpush3.bf16.msra.mxu1 %v4148_v25 }
 0x32c   :  { %3753 = vmatprep.subr.bf16.mxu1 %v4497_v0 }
 0x32d   :  { %3772 = vmatpush3.bf16.msra.mxu0 %v4162_v34 }
 0x32e   :  { %3773 = vmatprep.subr.bf16.mxu0 %v4497_v0 }
 0x32f   :  { %3754 = vmatpush3.bf16.msra.mxu1 %v4149_v26  ;;  %v4175_v26 = vld [vmem:[#allocation11 + $0x38] sm:$0xff]  }
 0x330   :  { %3779 = vmatprep.subr.bf16.mxu1 %v4497_v0 }
 0x331   :  { %3774 = vmatpush3.bf16.msra.mxu0 %v4164_v35 }
 0x332   :  { %3799 = vmatprep.subr.bf16.mxu0 %v4497_v0 }
 0x3b2   :  { %v1091_v36 = vpop.f32.mrf.mxu0 }
 0x3b3   :  { %v1097_v37 = vadd.f32 %v4657_v7, %v1091_v36  ;;  %v4157_v7 = vld [vmem:[#allocation11 + $0x20] sm:$0xff]  }
 0x3b4   :  { %v3697_v39 = vpop.f32.mrf.mxu0 }
 0x3b5   :  { %4272 = vtanh.f32 %v1097_v37 }
 0x3b6   :  { %v1094_v40 = vpop.f32.mrf.mxu0 }
 0x3b7   :  { %v4185_v40 = vld [vmem:[#allocation11 + $0x10] sm:$0xff]  }
 0x3b8   :  { %v3698_v41 = vpop.f32.mrf.mxu0 }
 0x3c2   :  { %v4273_v42 = vpop.eup %4272 }
 0x3c3   :  { %v1099_v44 = vpack.c.bf16 %v4273_v42, %v4273_v42 }
 0x3c5   :  { %3756 = vmatmul.mubr.bf16.vlgmr.msra.gmra.mxu1 %v1099_v44 }
 0x3c6   :  { %3780 = vmatpush3.bf16.msra.mxu1 %v4151_v43  ;;  %3795 = vmatprep.mubr.msk.bf16.mxu1 %vm4498_vm0, %v4497_v0  ;;  %v4187_v43 = vld [vmem:[#allocation11 + $0x8] sm:$0xff]  }
 0x3c7   :  { %3781 = vmatprep.subr.bf16.mxu1 %v4497_v0 }
 0x3ca   :  { %3782 = vmatpush3.bf16.msra.mxu1 %v4153_v45 }
 0x3cb   :  { %3783 = vmatprep.subr.bf16.mxu1 %v4497_v0 }
 0x3ce   :  { %3784 = vmatpush3.bf16.msra.mxu1 %v4155_v46  ;;  %v4190_v46 = vld [vmem:[#allocation13 + $0x38] sm:$0xff]  }
 0x3cf   :  { %3785 = vmatprep.subr.bf16.mxu1 %v4497_v0 }
 0x3d2   :  { %v1215_v47 = vpop.f32.mrf.mxu1  ;;  %v1303_v48 = vpop.f32.mrf.mxu0  ;;  %3786 = vmatpush3.bf16.msra.mxu1 %v4157_v7 }
 0x3d3   :  { %v1304_v50 = vadd.f32 %v1303_v48, %v1215_v47  ;;  %3787 = vmatprep.subr.bf16.mxu1 %v4497_v0  ;;  %v4191_v47 = vld [vmem:[#allocation13 + $0x30] sm:$0xff]   ;;  %v4192_v48 = vld [vmem:[#allocation13 + $0x28] sm:$0xff]  }
 0x3d4   :  { %v3717_v51 = vpop.f32.mrf.mxu1  ;;  %v3737_v52 = vpop.f32.mrf.mxu0 }
 0x3d5   :  { %4274 = vtanh.f32 %v1304_v50  ;;  %v4194_v50 = vld [vmem:[#allocation13 + $0x18] sm:$0xff]   ;;  %v4195_v51 = vld [vmem:[#allocation13 + $0x10] sm:$0xff]   ;;  %v4196_v52 = vld [vmem:[#allocation13 + $0x8] sm:$0xff]  }
 0x3d6   :  { %v1218_v53 = vpop.f32.mrf.mxu1  ;;  %v1306_v54 = vpop.f32.mrf.mxu0  ;;  %3788 = vmatpush3.bf16.msra.mxu1 %v4159_v49  ;;  %v4193_v49 = vld [vmem:[#allocation13 + $0x20] sm:$0xff]  }
 0x3d7   :  { %3789 = vmatprep.subr.bf16.mxu1 %v4497_v0  ;;  %v4197_v53 = vld [vmem:[#allocation13] sm:$0xff]   ;;  %v4198_v54 = vld [vmem:[#allocation14 + $0x38] sm:$0xff]  }
 0x3d8   :  { %v3718_v56 = vpop.f32.mrf.mxu1  ;;  %v3738_v57 = vpop.f32.mrf.mxu0 }
 0x3d9   :  { %v4202_v56 = vld [vmem:[#allocation14 + $0x28] sm:$0xff]   ;;  %v4204_v57 = vld [vmem:[#allocation14 + $0x20] sm:$0xff]  }
 0x3da   :  { %3790 = vmatpush3.bf16.msra.mxu1 %v4161_v55  ;;  %v4200_v55 = vld [vmem:[#allocation14 + $0x30] sm:$0xff]  }
 0x3db   :  { %3791 = vmatprep.subr.bf16.mxu1 %v4497_v0 }
 0x3de   :  { %3792 = vmatpush3.bf16.msra.mxu1 %v4163_v58  ;;  %v4206_v58 = vld [vmem:[#allocation14 + $0x18] sm:$0xff]  }
 0x3df   :  { %3793 = vmatprep.subr.bf16.mxu1 %v4497_v0 }
 0x3e2   :  { %v4746_v60 = vpop.eup %4274  ;;  %3794 = vmatpush3.bf16.msra.mxu1 %v4165_v59  ;;  %v4208_v59 = vld [vmem:[#allocation14 + $0x10] sm:$0xff]  }
 0x3e3   :  { %v1435_v38 = vpack.c.bf16 %v4746_v60, %v4746_v60  ;;  %3819 = vmatprep.subr.bf16.mxu1 %v4497_v0 }
 0x3e5   :  { %3776 = vmatmul.mubr.bf16.vlgmr.msra.gmra.mxu0 %v1435_v38  ;;  %3796 = vmatmul.mubr.bf16.vlgmr.msra.gmra.mxu1 %v1099_v44  ;;  %v4189_v44 = vld [vmem:[#allocation11] sm:$0xff]  }
 0x3e6   :  { %3800 = vmatpush3.bf16.msra.mxu0 %v4166_v61  ;;  %3815 = vmatprep.mubr.msk.bf16.mxu0 %vm4498_vm0, %v4497_v0  ;;  %v4210_v61 = vld [vmem:[#allocation14 + $0x8] sm:$0xff]   ;;  %v4212_v38 = vld [vmem:[#allocation14] sm:$0xff]  }
 0x3e7   :  { %3801 = vmatprep.subr.bf16.mxu0 %v4497_v0  ;;  %3835 = vmatprep.mubr.msk.bf16.mxu1 %vm4498_vm0, %v4497_v0 }
 0x3e8   :  { %3820 = vmatpush3.bf16.msra.mxu1 %v4174_v6 }
 0x3e9   :  { %3821 = vmatprep.subr.bf16.mxu1 %v4497_v0 }
 0x3ea   :  { %3802 = vmatpush3.bf16.msra.mxu0 %v4167_v62 }
 0x3eb   :  { %3803 = vmatprep.subr.bf16.mxu0 %v4497_v0 }
 0x3ec   :  { %3822 = vmatpush3.bf16.msra.mxu1 %v4176_v8  ;;  %v4201_v8 = vld [vmem:[#allocation11 + $0x30] sm:$0xff]  }
 0x3ed   :  { %3823 = vmatprep.subr.bf16.mxu1 %v4497_v0 }
 0x3ee   :  { %3804 = vmatpush3.bf16.msra.mxu0 %v4168_v63 }
 0x3ef   :  { %3805 = vmatprep.subr.bf16.mxu0 %v4497_v0 }
 0x3f0   :  { %3824 = vmatpush3.bf16.msra.mxu1 %v4178_v13  ;;  %v4203_v13 = vld [vmem:[#allocation11 + $0x28] sm:$0xff]  }
 0x3f1   :  { %3825 = vmatprep.subr.bf16.mxu1 %v4497_v0 }
 0x3f2   :  { %3806 = vmatpush3.bf16.msra.mxu0 %v4169_v1 }
 0x3f3   :  { %3807 = vmatprep.subr.bf16.mxu0 %v4497_v0 }
 0x3f4   :  { %3826 = vmatpush3.bf16.msra.mxu1 %v4180_v14 }
 0x3f5   :  { %3827 = vmatprep.subr.bf16.mxu1 %v4497_v0 }
 0x3f6   :  { %3808 = vmatpush3.bf16.msra.mxu0 %v4170_v2 }
 0x3f7   :  { %3809 = vmatprep.subr.bf16.mxu0 %v4497_v0 }
 0x3f8   :  { %3828 = vmatpush3.bf16.msra.mxu1 %v4182_v15 }
 0x3f9   :  { %3829 = vmatprep.subr.bf16.mxu1 %v4497_v0 }
 0x3fa   :  { %3810 = vmatpush3.bf16.msra.mxu0 %v4171_v3 }
 0x3fb   :  { %3811 = vmatprep.subr.bf16.mxu0 %v4497_v0 }
 0x3fc   :  { %3830 = vmatpush3.bf16.msra.mxu1 %v4184_v16  ;;  %v4207_v16 = vld [vmem:[#allocation11 + $0x18] sm:$0xff]  }
 0x3fd   :  { %3831 = vmatprep.subr.bf16.mxu1 %v4497_v0 }
 0x3fe   :  { %3812 = vmatpush3.bf16.msra.mxu0 %v4172_v4 }
 0x3ff   :  { %3813 = vmatprep.subr.bf16.mxu0 %v4497_v0 }
 0x400   :  { %3832 = vmatpush3.bf16.msra.mxu1 %v4186_v18 }
 0x401   :  { %3833 = vmatprep.subr.bf16.mxu1 %v4497_v0 }
 0x402   :  { %3814 = vmatpush3.bf16.msra.mxu0 %v4173_v5  ;;  %v4199_v5 = vld [vmem:[#allocation11 + $0x38] sm:$0xff]  }
 0x403   :  { %3839 = vmatprep.subr.bf16.mxu0 %v4497_v0 }
 0x404   :  { %3834 = vmatpush3.bf16.msra.mxu1 %v4188_v19 }
 0x405   :  { %3859 = vmatprep.subr.bf16.mxu1 %v4497_v0 }
 0x485   :  { %v1410_v20 = vpop.f32.mrf.mxu1 }
 0x486   :  { %v1416_v21 = vadd.f32 %v1410_v20, %v4661_v10  ;;  %v4181_v10 = vld [vmem:[#allocation11 + $0x20] sm:$0xff]  }
 0x487   :  { %v3757_v22 = vpop.f32.mrf.mxu1 }
 0x488   :  { %4276 = vtanh.f32 %v1416_v21 }
 0x489   :  { %v1413_v23 = vpop.f32.mrf.mxu1 }
 0x48a   :  { %v4209_v23 = vld [vmem:[#allocation11 + $0x10] sm:$0xff]  }
 0x48b   :  { %v3758_v24 = vpop.f32.mrf.mxu1 }
 0x495   :  { %v4277_v25 = vpop.eup %4276 }
 0x496   :  { %v1418_v27 = vpack.c.bf16 %v4277_v25, %v4277_v25 }
 0x498   :  { %3816 = vmatmul.mubr.bf16.vlgmr.msra.gmra.mxu0 %v1418_v27 }
 0x499   :  { %3840 = vmatpush3.bf16.msra.mxu0 %v4175_v26  ;;  %3855 = vmatprep.mubr.msk.bf16.mxu0 %vm4498_vm0, %v4497_v0  ;;  %v4211_v26 = vld [vmem:[#allocation11 + $0x8] sm:$0xff]  }
 0x49a   :  { %3841 = vmatprep.subr.bf16.mxu0 %v4497_v0 }
 0x49d   :  { %3842 = vmatpush3.bf16.msra.mxu0 %v4177_v28 }
 0x49e   :  { %3843 = vmatprep.subr.bf16.mxu0 %v4497_v0 }
 0x4a1   :  { %3844 = vmatpush3.bf16.msra.mxu0 %v4179_v29  ;;  %v4214_v29 = vld [vmem:[#allocation13 + $0x38] sm:$0xff]  }
 0x4a2   :  { %3845 = vmatprep.subr.bf16.mxu0 %v4497_v0 }
 0x4a5   :  { %v1534_v30 = vpop.f32.mrf.mxu0  ;;  %v1622_v31 = vpop.f32.mrf.mxu1  ;;  %3846 = vmatpush3.bf16.msra.mxu0 %v4181_v10 }
 0x4a6   :  { %v1623_v34 = vadd.f32 %v1622_v31, %v1534_v30  ;;  %3847 = vmatprep.subr.bf16.mxu0 %v4497_v0  ;;  %v4215_v30 = vld [vmem:[#allocation13 + $0x30] sm:$0xff]   ;;  %v4216_v31 = vld [vmem:[#allocation13 + $0x28] sm:$0xff]  }
 0x4a7   :  { %v3777_v35 = vpop.f32.mrf.mxu0  ;;  %v3797_v36 = vpop.f32.mrf.mxu1 }
 0x4a8   :  { %4278 = vtanh.f32 %v1623_v34  ;;  %v4218_v34 = vld [vmem:[#allocation13 + $0x18] sm:$0xff]   ;;  %v4219_v35 = vld [vmem:[#allocation13 + $0x10] sm:$0xff]   ;;  %v4220_v36 = vld [vmem:[#allocation13 + $0x8] sm:$0xff]  }
 0x4a9   :  { %v1537_v37 = vpop.f32.mrf.mxu0  ;;  %v1625_v39 = vpop.f32.mrf.mxu1  ;;  %3848 = vmatpush3.bf16.msra.mxu0 %v4183_v32  ;;  %v4217_v32 = vld [vmem:[#allocation13 + $0x20] sm:$0xff]  }
 0x4aa   :  { %3849 = vmatprep.subr.bf16.mxu0 %v4497_v0  ;;  %v4221_v37 = vld [vmem:[#allocation13] sm:$0xff]   ;;  %v4222_v39 = vld [vmem:[#allocation14 + $0x38] sm:$0xff]  }
 0x4ab   :  { %v3778_v41 = vpop.f32.mrf.mxu0  ;;  %v3798_v42 = vpop.f32.mrf.mxu1 }
 0x4ac   :  { %v4226_v41 = vld [vmem:[#allocation14 + $0x28] sm:$0xff]   ;;  %v4228_v42 = vld [vmem:[#allocation14 + $0x20] sm:$0xff]  }
 0x4ad   :  { %3850 = vmatpush3.bf16.msra.mxu0 %v4185_v40  ;;  %v4224_v40 = vld [vmem:[#allocation14 + $0x30] sm:$0xff]  }
 0x4ae   :  { %3851 = vmatprep.subr.bf16.mxu0 %v4497_v0 }
 0x4b1   :  { %3852 = vmatpush3.bf16.msra.mxu0 %v4187_v43  ;;  %v4230_v43 = vld [vmem:[#allocation14 + $0x18] sm:$0xff]  }
 0x4b2   :  { %3853 = vmatprep.subr.bf16.mxu0 %v4497_v0 }
 0x4b5   :  { %v4781_v45 = vpop.eup %4278  ;;  %3854 = vmatpush3.bf16.msra.mxu0 %v4189_v44  ;;  %v4232_v44 = vld [vmem:[#allocation14 + $0x10] sm:$0xff]  }
 0x4b6   :  { %v1754_v7 = vpack.c.bf16 %v4781_v45, %v4781_v45  ;;  %3879 = vmatprep.subr.bf16.mxu0 %v4497_v0 }
 0x4b8   :  { %3836 = vmatmul.mubr.bf16.vlgmr.msra.gmra.mxu1 %v1754_v7  ;;  %3856 = vmatmul.mubr.bf16.vlgmr.msra.gmra.mxu0 %v1418_v27  ;;  %v4213_v27 = vld [vmem:[#allocation11] sm:$0xff]  }
 0x4b9   :  { %3860 = vmatpush3.bf16.msra.mxu1 %v4190_v46  ;;  %3875 = vmatprep.mubr.msk.bf16.mxu1 %vm4498_vm0, %v4497_v0  ;;  %v4234_v46 = vld [vmem:[#allocation14 + $0x8] sm:$0xff]   ;;  %v4236_v7 = vld [vmem:[#allocation14] sm:$0xff]  }
 0x4ba   :  { %3861 = vmatprep.subr.bf16.mxu1 %v4497_v0  ;;  %3895 = vmatprep.mubr.msk.bf16.mxu0 %vm4498_vm0, %v4497_v0 }
 0x4bb   :  { %3880 = vmatpush3.bf16.msra.mxu0 %v4198_v54 }
 0x4bc   :  { %3881 = vmatprep.subr.bf16.mxu0 %v4497_v0 }
 0x4bd   :  { %3862 = vmatpush3.bf16.msra.mxu1 %v4191_v47 }
 0x4be   :  { %3863 = vmatprep.subr.bf16.mxu1 %v4497_v0 }
 0x4bf   :  { %3882 = vmatpush3.bf16.msra.mxu0 %v4200_v55  ;;  %v4225_v55 = vld [vmem:[#allocation11 + $0x30] sm:$0xff]  }
 0x4c0   :  { %3883 = vmatprep.subr.bf16.mxu0 %v4497_v0 }
 0x4c1   :  { %3864 = vmatpush3.bf16.msra.mxu1 %v4192_v48 }
 0x4c2   :  { %3865 = vmatprep.subr.bf16.mxu1 %v4497_v0 }
 0x4c3   :  { %3884 = vmatpush3.bf16.msra.mxu0 %v4202_v56  ;;  %v4227_v56 = vld [vmem:[#allocation11 + $0x28] sm:$0xff]  }
 0x4c4   :  { %3885 = vmatprep.subr.bf16.mxu0 %v4497_v0 }
 0x4c5   :  { %3866 = vmatpush3.bf16.msra.mxu1 %v4193_v49 }
 0x4c6   :  { %3867 = vmatprep.subr.bf16.mxu1 %v4497_v0 }
 0x4c7   :  { %3886 = vmatpush3.bf16.msra.mxu0 %v4204_v57 }
 0x4c8   :  { %3887 = vmatprep.subr.bf16.mxu0 %v4497_v0 }
 0x4c9   :  { %3868 = vmatpush3.bf16.msra.mxu1 %v4194_v50 }
 0x4ca   :  { %3869 = vmatprep.subr.bf16.mxu1 %v4497_v0 }
 0x4cb   :  { %3888 = vmatpush3.bf16.msra.mxu0 %v4206_v58 }
 0x4cc   :  { %3889 = vmatprep.subr.bf16.mxu0 %v4497_v0 }
 0x4cd   :  { %3870 = vmatpush3.bf16.msra.mxu1 %v4195_v51 }
 0x4ce   :  { %3871 = vmatprep.subr.bf16.mxu1 %v4497_v0 }
 0x4cf   :  { %3890 = vmatpush3.bf16.msra.mxu0 %v4208_v59  ;;  %v4231_v59 = vld [vmem:[#allocation11 + $0x18] sm:$0xff]  }
 0x4d0   :  { %3891 = vmatprep.subr.bf16.mxu0 %v4497_v0 }
 0x4d1   :  { %3872 = vmatpush3.bf16.msra.mxu1 %v4196_v52 }
 0x4d2   :  { %3873 = vmatprep.subr.bf16.mxu1 %v4497_v0 }
 0x4d3   :  { %3892 = vmatpush3.bf16.msra.mxu0 %v4210_v61 }
 0x4d4   :  { %3893 = vmatprep.subr.bf16.mxu0 %v4497_v0 }
 0x4d5   :  { %3874 = vmatpush3.bf16.msra.mxu1 %v4197_v53  ;;  %v4223_v53 = vld [vmem:[#allocation11 + $0x38] sm:$0xff]  }
 0x4d6   :  { %3899 = vmatprep.subr.bf16.mxu1 %v4497_v0 }
 0x4d7   :  { %3894 = vmatpush3.bf16.msra.mxu0 %v4212_v38 }
 0x4d8   :  { %3919 = vmatprep.subr.bf16.mxu0 %v4497_v0 }
 0x558   :  { %v1729_v62 = vpop.f32.mrf.mxu0 }
 0x559   :  { %v1735_v63 = vadd.f32 %v1729_v62, %v4665_v12  ;;  %v4205_v12 = vld [vmem:[#allocation11 + $0x20] sm:$0xff]  }
 0x55a   :  { %v3817_v1 = vpop.f32.mrf.mxu0 }
 0x55b   :  { %4280 = vtanh.f32 %v1735_v63 }
 0x55c   :  { %v1732_v2 = vpop.f32.mrf.mxu0 }
 0x55d   :  { %v4233_v2 = vld [vmem:[#allocation11 + $0x10] sm:$0xff]  }
 0x55e   :  { %v3818_v3 = vpop.f32.mrf.mxu0 }
 0x568   :  { %v4281_v4 = vpop.eup %4280 }
 0x569   :  { %v1737_v6 = vpack.c.bf16 %v4281_v4, %v4281_v4 }
 0x56b   :  { %3876 = vmatmul.mubr.bf16.vlgmr.msra.gmra.mxu1 %v1737_v6 }
 0x56c   :  { %3900 = vmatpush3.bf16.msra.mxu1 %v4199_v5  ;;  %3915 = vmatprep.mubr.msk.bf16.mxu1 %vm4498_vm0, %v4497_v0  ;;  %v4235_v5 = vld [vmem:[#allocation11 + $0x8] sm:$0xff]  }
 0x56d   :  { %3901 = vmatprep.subr.bf16.mxu1 %v4497_v0 }
 0x570   :  { %3902 = vmatpush3.bf16.msra.mxu1 %v4201_v8 }
 0x571   :  { %3903 = vmatprep.subr.bf16.mxu1 %v4497_v0 }
 0x574   :  { %3904 = vmatpush3.bf16.msra.mxu1 %v4203_v13  ;;  %v4238_v13 = vld [vmem:[#allocation11 + $0x38] sm:$0xff]  }
 0x575   :  { %3905 = vmatprep.subr.bf16.mxu1 %v4497_v0 }
 0x578   :  { %v1853_v14 = vpop.f32.mrf.mxu1  ;;  %v1941_v15 = vpop.f32.mrf.mxu0  ;;  %3906 = vmatpush3.bf16.msra.mxu1 %v4205_v12 }
 0x579   :  { %v1942_v18 = vadd.f32 %v1941_v15, %v1853_v14  ;;  %3907 = vmatprep.subr.bf16.mxu1 %v4497_v0  ;;  %v4239_v14 = vld [vmem:[#allocation11 + $0x30] sm:$0xff]   ;;  %v4240_v15 = vld [vmem:[#allocation11 + $0x28] sm:$0xff]  }
 0x57a   :  { %v3837_v19 = vpop.f32.mrf.mxu1  ;;  %v3857_v20 = vpop.f32.mrf.mxu0 }
 0x57b   :  { %4282 = vtanh.f32 %v1942_v18  ;;  %v4242_v18 = vld [vmem:[#allocation11 + $0x18] sm:$0xff]   ;;  %v4243_v19 = vld [vmem:[#allocation11 + $0x10] sm:$0xff]   ;;  %v4244_v20 = vld [vmem:[#allocation11 + $0x8] sm:$0xff]  }
 0x57c   :  { %v1856_v21 = vpop.f32.mrf.mxu1  ;;  %v1944_v22 = vpop.f32.mrf.mxu0  ;;  %3908 = vmatpush3.bf16.msra.mxu1 %v4207_v16  ;;  %v4241_v16 = vld [vmem:[#allocation11 + $0x20] sm:$0xff]  }
 0x57d   :  { %3909 = vmatprep.subr.bf16.mxu1 %v4497_v0  ;;  %v4245_v21 = vld [vmem:[#allocation11] sm:$0xff]   ;;  %v4246_v22 = vld [vmem:[#allocation14 + $0x38] sm:$0xff]  }
 0x57e   :  { %v3838_v24 = vpop.f32.mrf.mxu1  ;;  %v3858_v25 = vpop.f32.mrf.mxu0 }
 0x57f   :  { %v4248_v24 = vld [vmem:[#allocation14 + $0x28] sm:$0xff]   ;;  %v4249_v25 = vld [vmem:[#allocation14 + $0x20] sm:$0xff]  }
 0x580   :  { %3910 = vmatpush3.bf16.msra.mxu1 %v4209_v23  ;;  %v4247_v23 = vld [vmem:[#allocation14 + $0x30] sm:$0xff]  }
 0x581   :  { %3911 = vmatprep.subr.bf16.mxu1 %v4497_v0 }
 0x584   :  { %3912 = vmatpush3.bf16.msra.mxu1 %v4211_v26  ;;  %v4250_v26 = vld [vmem:[#allocation14 + $0x18] sm:$0xff]  }
 0x585   :  { %3913 = vmatprep.subr.bf16.mxu1 %v4497_v0 }
 0x588   :  { %v4816_v28 = vpop.eup %4282  ;;  %3914 = vmatpush3.bf16.msra.mxu1 %v4213_v27  ;;  %v4251_v27 = vld [vmem:[#allocation14 + $0x10] sm:$0xff]  }
 0x589   :  { %v2073_v10 = vpack.c.bf16 %v4816_v28, %v4816_v28  ;;  %3939 = vmatprep.subr.bf16.mxu1 %v4497_v0 }
 0x58b   :  { %3896 = vmatmul.mubr.bf16.vlgmr.msra.gmra.mxu0 %v2073_v10  ;;  %3916 = vmatmul.mubr.bf16.vlgmr.msra.gmra.mxu1 %v1737_v6  ;;  %v4237_v6 = vld [vmem:[#allocation11] sm:$0xff]  }
 0x58c   :  { %3920 = vmatpush3.bf16.msra.mxu0 %v4214_v29  ;;  %3935 = vmatprep.mubr.msk.bf16.mxu0 %vm4498_vm0, %v4497_v0  ;;  %v4252_v29 = vld [vmem:[#allocation14 + $0x8] sm:$0xff]   ;;  %v4253_v10 = vld [vmem:[#allocation14] sm:$0xff]  }
 0x58d   :  { %3921 = vmatprep.subr.bf16.mxu0 %v4497_v0  ;;  %3955 = vmatprep.mubr.msk.bf16.mxu1 %vm4498_vm0, %v4497_v0 }
 0x58e   :  { %3940 = vmatpush3.bf16.msra.mxu1 %v4222_v39 }
 0x58f   :  { %3941 = vmatprep.subr.bf16.mxu1 %v4497_v0 }
 0x590   :  { %3922 = vmatpush3.bf16.msra.mxu0 %v4215_v30  ;;  %v4254_v30 = vld [vmem:[#allocation16 + $0x38] sm:$0xff]  }
 0x591   :  { %3923 = vmatprep.subr.bf16.mxu0 %v4497_v0 }
 0x592   :  { %3942 = vmatpush3.bf16.msra.mxu1 %v4224_v40 }
 0x593   :  { %3943 = vmatprep.subr.bf16.mxu1 %v4497_v0 }
 0x594   :  { %3924 = vmatpush3.bf16.msra.mxu0 %v4216_v31 }
 0x595   :  { %3925 = vmatprep.subr.bf16.mxu0 %v4497_v0 }
 0x596   :  { %3944 = vmatpush3.bf16.msra.mxu1 %v4226_v41 }
 0x597   :  { %3945 = vmatprep.subr.bf16.mxu1 %v4497_v0 }
 0x598   :  { %3926 = vmatpush3.bf16.msra.mxu0 %v4217_v32 }
 0x599   :  { %3927 = vmatprep.subr.bf16.mxu0 %v4497_v0 }
 0x59a   :  { %3946 = vmatpush3.bf16.msra.mxu1 %v4228_v42 }
 0x59b   :  { %3947 = vmatprep.subr.bf16.mxu1 %v4497_v0 }
 0x59c   :  { %3928 = vmatpush3.bf16.msra.mxu0 %v4218_v34 }
 0x59d   :  { %3929 = vmatprep.subr.bf16.mxu0 %v4497_v0 }
 0x59e   :  { %3948 = vmatpush3.bf16.msra.mxu1 %v4230_v43 }
 0x59f   :  { %3949 = vmatprep.subr.bf16.mxu1 %v4497_v0 }
 0x5a0   :  { %3930 = vmatpush3.bf16.msra.mxu0 %v4219_v35 }
 0x5a1   :  { %3931 = vmatprep.subr.bf16.mxu0 %v4497_v0 }
 0x5a2   :  { %3950 = vmatpush3.bf16.msra.mxu1 %v4232_v44 }
 0x5a3   :  { %3951 = vmatprep.subr.bf16.mxu1 %v4497_v0 }
 0x5a4   :  { %3932 = vmatpush3.bf16.msra.mxu0 %v4220_v36 }
 0x5a5   :  { %3933 = vmatprep.subr.bf16.mxu0 %v4497_v0 }
 0x5a6   :  { %3952 = vmatpush3.bf16.msra.mxu1 %v4234_v46 }
 0x5a7   :  { %3953 = vmatprep.subr.bf16.mxu1 %v4497_v0 }
 0x5a8   :  { %3934 = vmatpush3.bf16.msra.mxu0 %v4221_v37 }
 0x5a9   :  { %3959 = vmatprep.subr.bf16.mxu0 %v4497_v0 }
 0x5aa   :  { %3954 = vmatpush3.bf16.msra.mxu1 %v4236_v7 }
 0x5ab   :  { %3979 = vmatprep.subr.bf16.mxu1 %v4497_v0 }
 0x62b   :  { %v2048_v47 = vpop.f32.mrf.mxu1 }
 0x62c   :  { %v2054_v48 = vadd.f32 %v4659_v9, %v2048_v47  ;;  %v4229_v9 = vld [vmem:[#allocation11 + $0x20] sm:$0xff]  }
 0x62d   :  { %v3877_v49 = vpop.f32.mrf.mxu1 }
 0x62e   :  { %4284 = vtanh.f32 %v2054_v48  ;;  %v4255_v49 = vld [vmem:[#allocation16 + $0x30] sm:$0xff]  }
 0x62f   :  { %v2051_v50 = vpop.f32.mrf.mxu1 }
 0x630   :  { %v2808_v50 = vpack.c.bf16 %v4711_v17, %v4676_v33  ;;  %v4261_v33 = vld [vmem:[#allocation16] sm:$0xff]   ;;  %v2809_v17 = vpack.c.bf16 %v4781_v45, %v4746_v60  ;;  %v3227_v45 = vld [vmem:[%s4903_s7] ss:$0 sm:$0xff] }
 0x631   :  { %v3878_v51 = vpop.f32.mrf.mxu1 }
 0x632   :  { %v4256_v51 = vld [vmem:[#allocation16 + $0x28] sm:$0xff]  }
 0x63b   :  { %v4285_v52 = vpop.eup %4284 }
 0x63c   :  { %v2056_v54 = vpack.c.bf16 %v4285_v52, %v4285_v52  ;;  %v4257_v52 = vld [vmem:[#allocation16 + $0x20] sm:$0xff]  }
 0x63e   :  { %3936 = vmatmul.mubr.bf16.vlgmr.msra.gmra.mxu0 %v2056_v54 }
 0x63f   :  { %3960 = vmatpush3.bf16.msra.mxu0 %v4223_v53  ;;  %3975 = vmatprep.mubr.msk.bf16.mxu0 %vm4498_vm0, %v4497_v0  ;;  %v4258_v53 = vld [vmem:[#allocation16 + $0x18] sm:$0xff]  }
 0x640   :  { %3961 = vmatprep.subr.bf16.mxu0 %v4497_v0 }
 0x643   :  { %3962 = vmatpush3.bf16.msra.mxu0 %v4225_v55  ;;  %v4260_v55 = vld [vmem:[#allocation16 + $0x8] sm:$0xff]  }
 0x644   :  { %3963 = vmatprep.subr.bf16.mxu0 %v4497_v0 }
 0x647   :  { %3964 = vmatpush3.bf16.msra.mxu0 %v4227_v56 }
 0x648   :  { %3965 = vmatprep.subr.bf16.mxu0 %v4497_v0 }
 0x64b   :  { %v2172_v57 = vpop.f32.mrf.mxu0  ;;  %v2260_v58 = vpop.f32.mrf.mxu1  ;;  %3966 = vmatpush3.bf16.msra.mxu0 %v4229_v9 }
 0x64c   :  { %v2261_v61 = vadd.f32 %v2260_v58, %v2172_v57  ;;  %3967 = vmatprep.subr.bf16.mxu0 %v4497_v0 }
 0x64d   :  { %v3897_v38 = vpop.f32.mrf.mxu0  ;;  %v3917_v62 = vpop.f32.mrf.mxu1 }
 0x64e   :  { %4286 = vtanh.f32 %v2261_v61 }
 0x64f   :  { %v2175_v63 = vpop.f32.mrf.mxu0  ;;  %v2263_v1 = vpop.f32.mrf.mxu1  ;;  %3968 = vmatpush3.bf16.msra.mxu0 %v4231_v59 }
 0x650   :  { %3969 = vmatprep.subr.bf16.mxu0 %v4497_v0 }
 0x651   :  { %v3898_v3 = vpop.f32.mrf.mxu0  ;;  %v3918_v4 = vpop.f32.mrf.mxu1 }
 0x653   :  { %3970 = vmatpush3.bf16.msra.mxu0 %v4233_v2 }
 0x654   :  { %3971 = vmatprep.subr.bf16.mxu0 %v4497_v0 }
 0x657   :  { %3972 = vmatpush3.bf16.msra.mxu0 %v4235_v5 }
 0x658   :  { %3973 = vmatprep.subr.bf16.mxu0 %v4497_v0 }
 0x65b   :  { %v4851_v8 = vpop.eup %4286  ;;  %3974 = vmatpush3.bf16.msra.mxu0 %v4237_v6 }
 0x65c   :  { %v2392_v12 = vpack.c.bf16 %v4851_v8, %v4851_v8  ;;  %3999 = vmatprep.subr.bf16.mxu0 %v4497_v0  ;;  %v2810_v56 = vpack.c.bf16 %v4851_v8, %v4816_v28 }
 0x65e   :  { %3956 = vmatmul.mubr.bf16.vlgmr.msra.gmra.mxu1 %v2392_v12  ;;  %3976 = vmatmul.mubr.bf16.vlgmr.msra.gmra.mxu0 %v2056_v54  ;;  %v4259_v54 = vld [vmem:[#allocation16 + $0x10] sm:$0xff]  }
 0x65f   :  { %4000 = vmatpush3.bf16.msra.mxu0 %v4238_v13  ;;  %4015 = vmatprep.mubr.msk.bf16.mxu0 %vm4498_vm0, %v4497_v0 }
 0x660   :  { %4001 = vmatprep.subr.bf16.mxu0 %v4497_v0  ;;  %3995 = vmatprep.mubr.msk.bf16.mxu1 %vm4498_vm0, %v4497_v0 }
 0x661   :  { %3980 = vmatpush3.bf16.msra.mxu1 %v4246_v22 }
 0x662   :  { %3981 = vmatprep.subr.bf16.mxu1 %v4497_v0 }
 0x663   :  { %4002 = vmatpush3.bf16.msra.mxu0 %v4239_v14 }
 0x664   :  { %4003 = vmatprep.subr.bf16.mxu0 %v4497_v0 }
 0x665   :  { %3982 = vmatpush3.bf16.msra.mxu1 %v4247_v23 }
 0x666   :  { %3983 = vmatprep.subr.bf16.mxu1 %v4497_v0 }
 0x667   :  { %4004 = vmatpush3.bf16.msra.mxu0 %v4240_v15 }
 0x668   :  { %4005 = vmatprep.subr.bf16.mxu0 %v4497_v0 }
 0x669   :  { %3984 = vmatpush3.bf16.msra.mxu1 %v4248_v24 }
 0x66a   :  { %3985 = vmatprep.subr.bf16.mxu1 %v4497_v0 }
 0x66b   :  { %4006 = vmatpush3.bf16.msra.mxu0 %v4241_v16 }
 0x66c   :  { %4007 = vmatprep.subr.bf16.mxu0 %v4497_v0 }
 0x66d   :  { %3986 = vmatpush3.bf16.msra.mxu1 %v4249_v25 }
 0x66e   :  { %3987 = vmatprep.subr.bf16.mxu1 %v4497_v0 }
 0x66f   :  { %4008 = vmatpush3.bf16.msra.mxu0 %v4242_v18 }
 0x670   :  { %4009 = vmatprep.subr.bf16.mxu0 %v4497_v0 }
 0x671   :  { %3988 = vmatpush3.bf16.msra.mxu1 %v4250_v26 }
 0x672   :  { %3989 = vmatprep.subr.bf16.mxu1 %v4497_v0 }
 0x673   :  { %4010 = vmatpush3.bf16.msra.mxu0 %v4243_v19 }
 0x674   :  { %4011 = vmatprep.subr.bf16.mxu0 %v4497_v0 }
 0x675   :  { %3990 = vmatpush3.bf16.msra.mxu1 %v4251_v27 }
 0x676   :  { %3991 = vmatprep.subr.bf16.mxu1 %v4497_v0 }
 0x677   :  { %4012 = vmatpush3.bf16.msra.mxu0 %v4244_v20 }
 0x678   :  { %4013 = vmatprep.subr.bf16.mxu0 %v4497_v0 }
 0x679   :  { %3992 = vmatpush3.bf16.msra.mxu1 %v4252_v29 }
 0x67a   :  { %3993 = vmatprep.subr.bf16.mxu1 %v4497_v0 }
 0x67b   :  { %4014 = vmatpush3.bf16.msra.mxu0 %v4245_v21 }
 0x67d   :  { %3994 = vmatpush3.bf16.msra.mxu1 %v4253_v10 }
 0x67e   :  { %4019 = vmatprep.subr.bf16.mxu1 %v4254_v30 }
 0x6fe   :  { %v2367_v31 = vpop.f32.mrf.mxu0 }
 0x6ff   :  { %v2373_v32 = vadd.f32 %v4663_v11, %v2367_v31 }
 0x700   :  { %v3937_v34 = vpop.f32.mrf.mxu0 }
 0x701   :  { %4288 = vtanh.f32 %v2373_v32 }
 0x702   :  { %v2370_v35 = vpop.f32.mrf.mxu0 }
 0x704   :  { %v3938_v36 = vpop.f32.mrf.mxu0 }
 0x70e   :  { %v4289_v37 = vpop.eup %4288 }
 0x70f   :  { %2993 = vst [vmem:[#allocation18] sm:$0xff] %v4289_v37  ;;  %v2375_v39 = vpack.c.bf16 %v4289_v37, %v4289_v37 }
 0x711   :  { %4016 = vmatmul.mubr.bf16.vlgmr.msra.gmra.mxu0 %v2375_v39 }
 0x71e   :  { %v2491_v40 = vpop.f32.mrf.mxu1  ;;  %v2579_v41 = vpop.f32.mrf.mxu0 }
 0x71f   :  { %v2580_v42 = vadd.f32 %v2579_v41, %v2491_v40 }
 0x720   :  { %v3957_v43 = vpop.f32.mrf.mxu1  ;;  %v3977_v44 = vpop.f32.mrf.mxu0 }
 0x721   :  { %4290 = vtanh.f32 %v2580_v42 }
 0x722   :  { %v2494_v0 = vpop.f32.mrf.mxu1  ;;  %v2582_v46 = vpop.f32.mrf.mxu0 }
 0x724   :  { %v3958_v7 = vpop.f32.mrf.mxu1  ;;  %v3978_v47 = vpop.f32.mrf.mxu0 }
 0x72e   :  { %v4291_v48 = vpop.eup %4290 }
 0x72f   :  { %v2603_v11 = vpack.c.bf16 %v4291_v48, %v4291_v48 }
 0x731   :  { %3996 = vmatmul.mubr.bf16.vlgmr.msra.gmra.mxu1 %v2603_v11 }
 0x732   :  { %4020 = vmatpush3.bf16.msra.mxu1 %v4254_v30  ;;  %4035 = vmatprep.mubr.bf16.mxu1 %v2808_v50 }
 0x733   :  { %4021 = vmatprep.subr.bf16.mxu1 %v4255_v49 }
 0x736   :  { %4022 = vmatpush3.bf16.msra.mxu1 %v4255_v49 }
 0x737   :  { %4023 = vmatprep.subr.bf16.mxu1 %v4256_v51 }
 0x73a   :  { %4024 = vmatpush3.bf16.msra.mxu1 %v4256_v51 }
 0x73b   :  { %4025 = vmatprep.subr.bf16.mxu1 %v4257_v52 }
 0x73e   :  { %4026 = vmatpush3.bf16.msra.mxu1 %v4257_v52 }
 0x73f   :  { %4027 = vmatprep.subr.bf16.mxu1 %v4258_v53 }
 0x742   :  { %4028 = vmatpush3.bf16.msra.mxu1 %v4258_v53 }
 0x743   :  { %4029 = vmatprep.subr.bf16.mxu1 %v4259_v54 }
 0x746   :  { %4030 = vmatpush3.bf16.msra.mxu1 %v4259_v54 }
 0x747   :  { %4031 = vmatprep.subr.bf16.mxu1 %v4260_v55 }
 0x74a   :  { %4032 = vmatpush3.bf16.msra.mxu1 %v4260_v55 }
 0x74b   :  { %4033 = vmatprep.subr.bf16.mxu1 %v4261_v33 }
 0x74e   :  { %4034 = vmatpush3.bf16.msra.mxu1 %v4261_v33 }
 0x751   :  { %4036 = vmatmul.mubr.bf16.vlgmr.msra.gmra.mxu1 %v2809_v17 }
 0x752   :  { %4039 = vmatprep.mubr.bf16.mxu1 %v2810_v56 }
 0x7d1   :  { %v2790_v9 = vpop.f32.mrf.mxu0 }
 0x7d3   :  { %v4017_v57 = vpop.f32.mrf.mxu0 }
 0x7d5   :  { %v2793_v58 = vpop.f32.mrf.mxu0 }
 0x7d7   :  { %v4018_v59 = vpop.f32.mrf.mxu0 }
 0x7f1   :  { %v2702_v61 = vpop.f32.mrf.mxu1 }
 0x7f2   :  { %v2791_v38 = vadd.f32 %v2790_v9, %v2702_v61 }
 0x7f3   :  { %v3997_v62 = vpop.f32.mrf.mxu1 }
 0x7f4   :  { %4292 = vtanh.f32 %v2791_v38 }
 0x7f5   :  { %v2705_v63 = vpop.f32.mrf.mxu1 }
 0x7f7   :  { %v3998_v1 = vpop.f32.mrf.mxu1 }
 0x801   :  { %v4293_v2 = vpop.eup %4292 }
 0x802   :  { %2994 = vst [vmem:[#allocation18 + $0x8] sm:$0xff] %v4293_v2  ;;  %v2811_v3 = vpack.c.bf16 %v4293_v2, %v4291_v48 }
 0x804   :  { %4040 = vmatmul.mubr.bf16.gmra.mxu1 %v2811_v3 }
 0x811   :  { %v4037_v60 = vpop.f32.mrf.mxu1 }
 0x812   :  { %v2926_v5 = vadd.f32 %v4037_v60, %v3227_v45 }
 0x813   :  { %v2917_v28 = vpop.f32.mrf.mxu1 }
 0x814   :  { %v2918_v13 = vadd.f32 %v3227_v45, %v2917_v28 }
 0x815   :  { %v4038_v4 = vpop.f32.mrf.mxu1 }
 0x816   :  { %v2929_v6 = vadd.f32 %v4038_v4, %v3227_v45 }
 0x817   :  { %v2920_v8 = vpop.f32.mrf.mxu1 }
 0x818   :  { %v3260_v12 = vpack.c.bf16 %v2929_v6, %v2926_v5  ;;  %v2921_v14 = vadd.f32 %v3227_v45, %v2920_v8 }
 0x81a   :  { %3272 = vst [vmem:[#allocation17 + $0x8] sm:$0xff] %v3260_v12   ;;  %v3255_v15 = vpack.c.bf16 %v2921_v14, %v2918_v13 }
 0x81c   :  { %3256 = vst [vmem:[#allocation17] sm:$0xff] %v3255_v15  }
 0x81d   :  { %4445 = shalt.err (!%p4442_p11)
}
 0x81e   :  { %3018 = dma.vmem_to_hbm [thread:$0]  %s3013_s26, 256, %s4905_s9, [#allocation19], %s4487_s12, %s4487_s12, %s4488_s13  }
 0x81f   :  { %s4500_s29 = smov [#allocation17]  }
 0x820   :  { %s3000_s3 = sshll.u32 %s4500_s29, 4  ;;  %s3001_s3 = int_to_ptr.vmem [resolvable:$true] %s3000_s3 }
 0x821   :  { %s4454_s30 = scalar_lea.vmem %s3001_s3, 512  ;;  %p4459_p13 = scmp.lt.s32.totalorder %s3001_s3, %s3001_s3 }
 0x822   :  { %p4455_p12 = scmp.ne.s32.totalorder %s3001_s3, %s4454_s30  ;;  %p4460_p0 = scmp.lt.s32.totalorder %s4454_s30, %s4454_s30 }
 0x824   :  { %p4461_p1 = por %p4460_p0, %p4459_p13 }
 0x826   :  { %p4462_p2 = pnand %p4461_p1, %p4455_p12 }
 0x8c4   :  { %v4041_v16 = vpop.f32.mrf.mxu1 }
 0x8c5   :  { %v2942_v20 = vadd.f32 %v4041_v16, %v3227_v45 }
 0x8c6   :  { %v2933_v18 = vpop.f32.mrf.mxu1 }
 0x8c7   :  { %v2934_v23 = vadd.f32 %v3227_v45, %v2933_v18 }
 0x8c8   :  { %v4042_v19 = vpop.f32.mrf.mxu1 }
 0x8c9   :  { %v2945_v21 = vadd.f32 %v4042_v19, %v3227_v45 }
 0x8ca   :  { %v2936_v22 = vpop.f32.mrf.mxu1 }
 0x8cb   :  { %v3270_v24 = vpack.c.bf16 %v2945_v21, %v2942_v20  ;;  %v2937_v25 = vadd.f32 %v3227_v45, %v2936_v22 }
 0x8cd   :  { %3274 = vst [vmem:[#allocation17 + $0x18] sm:$0xff] %v3270_v24   ;;  %v3265_v26 = vpack.c.bf16 %v2937_v25, %v2934_v23 }
 0x8cf   :  { %3273 = vst [vmem:[#allocation17 + $0x10] sm:$0xff] %v3265_v26  }
 0x8d0   :  { %4465 = shalt.err (!%p4462_p2)
}
 0x8d1   :  { %3006 = dma.vmem_to_hbm [thread:$0]  %s3001_s3, 512, %s4904_s8, [#allocation7], %s4491_s21, %s4491_s21, %s4492_s22  }
 0x8d2   :  { %4482 = dma.done.wait [#allocation7], 512  }
 0x8d3   :  { %4483 = vsyncadd [#allocation7], 4294966784 }
 0x8d4   :  { %4484 = dma.done.wait [#allocation19], 256  }
 0x8d5   :  { %4485 = vsyncadd [#allocation19], 4294967040 }
 0x8d6   :  { %3025 = vsyncpa [#allocation6], 1 }
 0x8d7   :  { %3026 = vsyncpa [#allocation9], 1 }
 0x8d8   :  { %3027 = vsyncpa [#allocation12], 1 }
 0x8d9   :  { %3028 = vsyncpa [#allocation15], 1 }
 0x8da   :  { %3029 = vsyncpa [#allocation7], 1 }
 0x8db   :  { %3030 = vsyncpa [#allocation19], 1 }

</bundles_post_ra>
